<compile_context>
chip_gen: v7x
topology: tpu7x:2x2x1
jax: 0.10.0
libtpu: 0.0.40
codegen_flags: <defaults>
</compile_context>

<pallas_src>
import functools

import jax
import jax.numpy as jnp
from jax import lax
from jax.experimental import pallas as pl
from jax.experimental.pallas import tpu as pltpu

_HALO = 128  # halo slab width (>= chain reach of 3 columns, multiple of 128)


def _prelu(v, alpha):
    return jnp.where(v > 0, v, alpha * v)


def _shift(v, s):
    """_shift(v, s)[:, w] == v[:, w + s] for in-range columns.

    Wrap-around from jnp.roll only affects window-edge columns that are
    >= HALO-3 lanes away from the central tile that is actually stored.
    # TODO(synk): pltpu.roll would move this onto the XLU slot; jnp.roll is
    # used because its shift-direction semantics are unambiguous.
    """
    return jnp.roll(v, -s, axis=1)


def _d_up_block_kernel(xh_prev_ref, x_cur_ref, xh_next_ref,
                       w1_ref, wb1_ref, w2f_ref, wb3_ref,
                       b1_ref, bd1_ref, b2_ref, bd3_ref,
                       alpha_ref, o_ref, *, seq_len, halo):
    """One (batch, L-tile) grid step of the fused D_UpBlock forward.

    Layout: channels on sublanes, length on lanes.  The working window is
    [prev 128-lane halo | central TL tile | next 128-lane halo]; only the
    central tile is stored.  o_ref block is (1, 4*C, TL): row r*C + c at
    column g holds output channel c at output position 4*g + r (phase-major;
    interleaved by the wrapper).
    """
    cdt = w1_ref.dtype                       # matmul operand dtype (bf16/f32)
    c = w1_ref.shape[0]
    tl = o_ref.shape[2]
    win = tl + 2 * halo
    j = pl.program_id(1)

    # ---- working window assembly (cast to compute dtype before the concat
    #      so the copies are half-width in the bf16 path) ---------------------
    xw = jnp.concatenate(
        [xh_prev_ref[0].astype(cdt),
         x_cur_ref[0].astype(cdt),
         xh_next_ref[0].astype(cdt)], axis=1)                  # (C_in, W)

    # Window column w maps to global column j*TL - HALO + w; columns outside
    # [0, L) emulate the zero padding of the (de)conv stages.
    gcol = j * tl - halo + lax.broadcasted_iota(jnp.int32, (1, win), 1)
    valid = jnp.logical_and(gcol >= 0, gcol < seq_len).astype(jnp.float32)

    a0 = alpha_ref[0]
    a1 = alpha_ref[1]
    a2 = alpha_ref[2]
    a3 = alpha_ref[3]

    # ---- stage 1: 1x1 ConvBlock (pointwise matmul) + PReLU ------------------
    xp = jnp.dot(w1_ref[...], xw, preferred_element_type=jnp.float32)
    xp = _prelu(xp + b1_ref[...], a0) * valid                  # (C, W) f32

    # ---- stage 2: up1 = ConvTranspose1d(k=8, s=4, p=2) + PReLU --------------
    # All 8 taps folded into one matmul; rows of h are the 4 output phases
    # [H0; H1; H2; H3] with h0[:, 4g + r] == H_r[:, g].
    xp_c = xp.astype(cdt)
    xs = jnp.concatenate([_shift(xp_c, -1), xp_c, _shift(xp_c, 1)], axis=0)
    h = jnp.dot(wb1_ref[...], xs, preferred_element_type=jnp.float32)
    h = _prelu(h + bd1_ref[...], a1) * valid                   # (4C, W) f32
    h_keep = h[:, halo:halo + tl]           # residual snapshot, short live h

    # ---- stage 3: up2 = Conv1d(k=8, s=4, p=2) + PReLU -----------------------
    # Stacked rows follow conv tap order t = 0..7:
    #   [H2[g-1]; H3[g-1]; H0[g]; H1[g]; H2[g]; H3[g]; H0[g+1]; H1[g+1]]
    h_c = h.astype(cdt)
    ys = jnp.concatenate(
        [_shift(h_c[2 * c:4 * c], -1), h_c, _shift(h_c[0:2 * c], 1)], axis=0)
    l0 = jnp.dot(w2f_ref[...], ys, preferred_element_type=jnp.float32)
    l0 = _prelu(l0 + b2_ref[...], a2)                          # (C, W) f32

    # ---- stage 4: up3 = ConvTranspose1d(k=8, s=4, p=2) on (l0 - x') ---------
    d = ((l0 - xp) * valid).astype(cdt)
    ds = jnp.concatenate([_shift(d, -1), d, _shift(d, 1)], axis=0)
    h1 = jnp.dot(wb3_ref[...], ds, preferred_element_type=jnp.float32)
    h1 = _prelu(h1 + bd3_ref[...], a3)                         # (4C, W) f32

    # ---- residual add; keep central tile only; lane-dense (TL-wide) store ---
    o_ref[0] = (h1[:, halo:halo + tl] + h_keep).astype(o_ref.dtype)


def d_up_block_forward(x, params, *, kernel_size=8, stride=4, padding=2,
                       max_l_tile=512, compute_dtype=jnp.bfloat16,
                       phase_major_output=False):
    """Fused D_UpBlock forward.  x: (N, C_in, L) -> (N, C, 4*L)."""
    if (kernel_size, stride, padding) != (8, 4, 2):
        # TODO(synk): phase decomposition is hard-coded for the D_UpBlock
        # defaults (kernel_size=8, stride=4, padding=2).
        raise NotImplementedError("only kernel_size=8, stride=4, padding=2")

    n, c_in, length = x.shape
    c = params["conv_w"].shape[0]

    if length % _HALO != 0:
        # TODO(synk): arbitrary lengths need a masked/padded final tile.
        raise ValueError("sequence length must be a multiple of 128")

    # Largest L tile <= max_l_tile that is a multiple of 128 and divides L.
    # v5e: keep <= 512; v6e can go to 1024-2048; v7x ~512-1024 (64 MiB VMEM).
    tl = max(min(int(max_l_tile), length) // _HALO * _HALO, _HALO)
    while length % tl != 0:
        tl -= _HALO
    n_tiles = length // tl
    r_slabs = tl // _HALO                 # 128-lane halo slabs per L tile
    n_slabs = length // _HALO

    # ---- one-off repacking of the PyTorch-layout parameters (all tiny) ------
    w1 = params["conv_w"][:, :, 0].astype(compute_dtype)         # (C, C_in)
    b1 = params["conv_b"].astype(jnp.float32)[:, None]           # (C, 1)

    def deconv_phase_weight(wd):
        # wd: ConvTranspose1d weight (C_in, C_out, 8); tap matrix for tap t is
        # wd[:, :, t].T.  Row blocks = output phases r=0..3, column blocks act
        # on the stacked input [x[g-1]; x[g]; x[g+1]].
        t = [wd[:, :, i].T.astype(jnp.float32) for i in range(8)]
        z = jnp.zeros_like(t[0])
        m = jnp.concatenate(
            [jnp.concatenate([t[6], t[2], z], axis=1),   # phase r=0 (o = 4g)
             jnp.concatenate([t[7], t[3], z], axis=1),   # phase r=1
             jnp.concatenate([z, t[4], t[0]], axis=1),   # phase r=2
             jnp.concatenate([z, t[5], t[1]], axis=1)],  # phase r=3
            axis=0)                                      # (4C, 3C)
        return m.astype(compute_dtype)

    wb1 = deconv_phase_weight(params["up1_w"])
    wb3 = deconv_phase_weight(params["up3_w"])
    w2f = jnp.concatenate(
        [params["up2_w"][:, :, i].astype(jnp.float32) for i in range(8)],
        axis=1).astype(compute_dtype)                            # (C, 8C)
    bd1 = jnp.tile(params["up1_b"].astype(jnp.float32)[:, None], (4, 1))
    b2 = params["up2_b"].astype(jnp.float32)[:, None]
    bd3 = jnp.tile(params["up3_b"].astype(jnp.float32)[:, None], (4, 1))
    alphas = params["alphas"].astype(jnp.float32)                # (4,)
    # TODO(synk): biases could be folded into the matmuls (ones row + bias
    # column); kept separate so all sublane concats stay tile-aligned.

    const = lambda b, j: (0, 0)
    grid_spec = pltpu.PrefetchScalarGridSpec(
        num_scalar_prefetch=0,
        grid=(n, n_tiles),
        in_specs=[
            # 128-lane halo slab from the previous tile (clamped at j=0; the
            # duplicate data is zeroed by the in-kernel validity mask).
            pl.BlockSpec((1, c_in, _HALO),
                         lambda b, j: (b, 0, jnp.maximum(j * r_slabs - 1, 0))),
            # central L tile.
            pl.BlockSpec((1, c_in, tl), lambda b, j: (b, 0, j)),
            # 128-lane halo slab from the next tile (clamped at the end).
            pl.BlockSpec((1, c_in, _HALO),
                         lambda b, j: (b, 0, jnp.minimum(j * r_slabs + r_slabs,
                                                         n_slabs - 1))),
            # folded weights / biases: constant index -> resident in VMEM.
            pl.BlockSpec((c, c_in), const),
            pl.BlockSpec((4 * c, 3 * c), const),
            pl.BlockSpec((c, 8 * c), const),
            pl.BlockSpec((4 * c, 3 * c), const),
            pl.BlockSpec((c, 1), const),
            pl.BlockSpec((4 * c, 1), const),
            pl.BlockSpec((c, 1), const),
            pl.BlockSpec((4 * c, 1), const),
            # PReLU slopes: scalars, live in SMEM.
            pl.BlockSpec(memory_space=pltpu.MemorySpace.SMEM),
        ],
        out_specs=pl.BlockSpec((1, 4 * c, tl), lambda b, j: (b, 0, j)),
    )

    out_phases = pl.pallas_call(
        functools.partial(_d_up_block_kernel, seq_len=length, halo=_HALO),
        out_shape=jax.ShapeDtypeStruct((n, 4 * c, length), x.dtype),
        grid_spec=grid_spec,
        compiler_params=pltpu.CompilerParams(
            dimension_semantics=("parallel", "parallel"),
            vmem_limit_bytes=48 * 1024 * 1024),
    )(x, x, x, w1, wb1, w2f, wb3, b1, bd1, b2, bd3, alphas)

    if phase_major_output:
        # (N, 4, C, L) phase-major, no extra HBM pass; out[:, r, c, g] is
        # output channel c at position 4*g + r.
        return out_phases.reshape(n, 4, c, length)

    # Interleave the 4 output phases back into the length axis.
    # TODO(synk): this transpose is one extra HBM pass over the largest
    # tensor; fuse into the consumer (or consume phase-major) when possible.
    return (out_phases.reshape(n, 4, c, length)
            .transpose(0, 2, 3, 1)
            .reshape(n, c, 4 * length))


def reference_forward(x, params, *, kernel_size=8, stride=4, padding=2):
    """Pure-JAX (lax conv) reference for the D_UpBlock forward pass."""
    a = params["alphas"]
    prec = lax.Precision.HIGHEST

    def conv1d(v, w, b, s, pad):
        out = lax.conv_general_dilated(
            v, w, window_strides=(s,), padding=[(pad, pad)],
            dimension_numbers=("NCH", "OIH", "NCH"), precision=prec)
        return out + b[None, :, None]

    def deconv1d(v, w, b, s, pad):
        k = w.shape[2]
        kern = jnp.flip(jnp.transpose(w, (1, 0, 2)), axis=2)   # (out, in, k)
        out = lax.conv_general_dilated(
            v, kern, window_strides=(1,), padding=[(k - 1 - pad, k - 1 - pad)],
            lhs_dilation=(s,), dimension_numbers=("NCH", "OIH", "NCH"),
            precision=prec)
        return out + b[None, :, None]

    xp = _prelu(conv1d(x, params["conv_w"], params["conv_b"], 1, 0), a[0])
    h0 = _prelu(deconv1d(xp, params["up1_w"], params["up1_b"], stride, padding), a[1])
    l0 = _prelu(conv1d(h0, params["up2_w"], params["up2_b"], stride, padding), a[2])
    h1 = _prelu(deconv1d(l0 - xp, params["up3_w"], params["up3_b"], stride, padding), a[3])
    return h1 + h0


def init_params(key, channels, c_in, kernel_size=8):
    """Deterministic parameters in PyTorch layouts (Conv1d: (out, in, k);
    ConvTranspose1d: (in, out, k)); uniform +/- 1/sqrt(fan_in) like nn.Conv1d."""
    ks = jax.random.split(key, 8)

    def unif(k, shape, fan_in):
        bound = 1.0 / jnp.sqrt(jnp.float32(fan_in))
        return jax.random.uniform(k, shape, jnp.float32, -bound, bound)

    k = kernel_size
    return {
        "conv_w": unif(ks[0], (channels, c_in, 1), c_in),
        "conv_b": unif(ks[1], (channels,), c_in),
        "up1_w": unif(ks[2], (channels, channels, k), channels * k),
        "up1_b": unif(ks[3], (channels,), channels * k),
        "up2_w": unif(ks[4], (channels, channels, k), channels * k),
        "up2_b": unif(ks[5], (channels,), channels * k),
        "up3_w": unif(ks[6], (channels, channels, k), channels * k),
        "up3_b": unif(ks[7], (channels,), channels * k),
        # nn.PReLU() default init is 0.25; distinct values exercise each stage.
        "alphas": jnp.array([0.25, 0.20, 0.30, 0.15], jnp.float32),
    }


if __name__ == "__main__":
    key = jax.random.PRNGKey(0)
    k_x, k_p = jax.random.split(key)

    # batch=2, channels=32, num_stages=1, L=2048: 4 L-tiles of 512 per batch
    # row (exercises halo stitching between tiles and the clamped boundaries).
    N, CHANNELS, NUM_STAGES, L = 2, 32, 1, 2048
    C_IN = CHANNELS * NUM_STAGES

    x = jax.random.normal(k_x, (N, C_IN, L), dtype=jnp.float32)
    params = init_params(k_p, CHANNELS, C_IN)

    ref = reference_forward(x, params)

    # f32 matmul operands: tight structural check against the lax reference.
    fwd_f32 = jax.jit(functools.partial(d_up_block_forward,
                                        compute_dtype=jnp.float32))
    out_f32 = jax.block_until_ready(fwd_f32(x, params))
    # default path: bf16 matmul operands with f32 accumulation (MXU-rate).
    fwd_bf16 = jax.jit(d_up_block_forward)
    out_bf16 = jax.block_until_ready(fwd_bf16(x, params))

    assert out_f32.shape == (N, CHANNELS, 4 * L), out_f32.shape
    assert out_bf16.shape == (N, CHANNELS, 4 * L), out_bf16.shape

    err_f32 = float(jnp.max(jnp.abs(out_f32 - ref)))
    err_bf16 = float(jnp.max(jnp.abs(out_bf16 - ref)))
    assert err_f32 < 1e-2, f"f32 path mismatch: max abs err {err_f32}"
    assert err_bf16 < 3e-2, f"bf16 path mismatch: max abs err {err_bf16}"

    print("KERNEL_OK")
</pallas_src>

<mosaic_0001>
module attributes {stable_mosaic.version = 11 : i64} {
  func.func @_d_up_block_kernel(%arg0: i32, %arg1: i32, %arg2: memref<1x32x128xf32, #tpu.memory_space<vmem>>, %arg3: memref<1x32x512xf32, #tpu.memory_space<vmem>>, %arg4: memref<1x32x128xf32, #tpu.memory_space<vmem>>, %arg5: memref<32x32xf32, #tpu.memory_space<vmem>>, %arg6: memref<128x96xf32, #tpu.memory_space<vmem>>, %arg7: memref<32x256xf32, #tpu.memory_space<vmem>>, %arg8: memref<128x96xf32, #tpu.memory_space<vmem>>, %arg9: memref<32x1xf32, #tpu.memory_space<vmem>>, %arg10: memref<128x1xf32, #tpu.memory_space<vmem>>, %arg11: memref<32x1xf32, #tpu.memory_space<vmem>>, %arg12: memref<128x1xf32, #tpu.memory_space<vmem>>, %arg13: memref<4xf32, #tpu.memory_space<smem>>, %arg14: memref<1x128x512xf32, #tpu.memory_space<vmem>>) attributes {dimension_semantics = [#tpu.dimension_semantics<parallel>, #tpu.dimension_semantics<parallel>], iteration_bounds = array<i64: 2, 4>, scalar_prefetch = 0 : i64, scratch_operands = 0 : i64, tpu.core_type = #tpu.core_type<tc>, window_params = [{transform_indices = @transform_0, window_bounds = array<i64: 1, 32, 128>}, {transform_indices = @transform_1, window_bounds = array<i64: 1, 32, 512>}, {transform_indices = @transform_2, window_bounds = array<i64: 1, 32, 128>}, {pipeline_mode = #tpu.pipeline_mode<synchronous>, transform_indices = @transform_3, window_bounds = array<i64: 32, 32>}, {pipeline_mode = #tpu.pipeline_mode<synchronous>, transform_indices = @transform_4, window_bounds = array<i64: 128, 96>}, {pipeline_mode = #tpu.pipeline_mode<synchronous>, transform_indices = @transform_5, window_bounds = array<i64: 32, 256>}, {pipeline_mode = #tpu.pipeline_mode<synchronous>, transform_indices = @transform_6, window_bounds = array<i64: 128, 96>}, {pipeline_mode = #tpu.pipeline_mode<synchronous>, transform_indices = @transform_7, window_bounds = array<i64: 32, 1>}, {pipeline_mode = #tpu.pipeline_mode<synchronous>, transform_indices = @transform_8, window_bounds = array<i64: 128, 1>}, {pipeline_mode = #tpu.pipeline_mode<synchronous>, transform_indices = @transform_9, window_bounds = array<i64: 32, 1>}, {pipeline_mode = #tpu.pipeline_mode<synchronous>, transform_indices = @transform_10, window_bounds = array<i64: 128, 1>}, {transform_indices = @transform_11, window_bounds = array<i64: 4>}, {transform_indices = @transform_12, window_bounds = array<i64: 1, 128, 512>}]} {
    %c0 = arith.constant 0 : index
    %c0_0 = arith.constant 0 : index
    %c0_1 = arith.constant 0 : index
    %0 = vector.load %arg2[%c0, %c0_0, %c0_1] : memref<1x32x128xf32, #tpu.memory_space<vmem>>, vector<1x32x128xf32>
    %1 = vector.shape_cast %0 : vector<1x32x128xf32> to vector<32x128xf32>
    %c0_2 = arith.constant 0 : index
    %c0_3 = arith.constant 0 : index
    %c0_4 = arith.constant 0 : index
    %2 = vector.load %arg3[%c0_2, %c0_3, %c0_4] : memref<1x32x512xf32, #tpu.memory_space<vmem>>, vector<1x32x512xf32>
    %3 = vector.shape_cast %2 : vector<1x32x512xf32> to vector<32x512xf32>
    %c0_5 = arith.constant 0 : index
    %c0_6 = arith.constant 0 : index
    %c0_7 = arith.constant 0 : index
    %4 = vector.load %arg4[%c0_5, %c0_6, %c0_7] : memref<1x32x128xf32, #tpu.memory_space<vmem>>, vector<1x32x128xf32>
    %5 = vector.shape_cast %4 : vector<1x32x128xf32> to vector<32x128xf32>
    %6 = tpu.concatenate %1, %3, %5 in 1 : vector<32x128xf32>, vector<32x512xf32>, vector<32x128xf32> -> vector<32x768xf32>
    %c512_i32 = arith.constant 512 : i32
    %7 = arith.muli %arg1, %c512_i32 : i32
    %c128_i32 = arith.constant 128 : i32
    %8 = arith.subi %7, %c128_i32 : i32
    %9 = tpu.iota {dimensions = array<i32: 1>} : vector<1x768xi32>
    %10 = vector.broadcast %8 : i32 to vector<1x768xi32>
    %11 = arith.addi %10, %9 : vector<1x768xi32>
    %c0_i32 = arith.constant 0 : i32
    %12 = vector.broadcast %c0_i32 : i32 to vector<1x768xi32>
    %13 = arith.cmpi sge, %11, %12 : vector<1x768xi32>
    %c2048_i32 = arith.constant 2048 : i32
    %14 = vector.broadcast %c2048_i32 : i32 to vector<1x768xi32>
    %15 = arith.cmpi slt, %11, %14 : vector<1x768xi32>
    %16 = arith.andi %13, %15 : vector<1x768xi1>
    %17 = arith.extui %16 : vector<1x768xi1> to vector<1x768xi32>
    %18 = arith.sitofp %17 : vector<1x768xi32> to vector<1x768xf32>
    %c0_8 = arith.constant 0 : index
    %19 = memref.load %arg13[%c0_8] : memref<4xf32, #tpu.memory_space<smem>>
    %c1 = arith.constant 1 : index
    %20 = memref.load %arg13[%c1] : memref<4xf32, #tpu.memory_space<smem>>
    %c2 = arith.constant 2 : index
    %21 = memref.load %arg13[%c2] : memref<4xf32, #tpu.memory_space<smem>>
    %c3 = arith.constant 3 : index
    %22 = memref.load %arg13[%c3] : memref<4xf32, #tpu.memory_space<smem>>
    %c0_9 = arith.constant 0 : index
    %c0_10 = arith.constant 0 : index
    %23 = vector.load %arg5[%c0_9, %c0_10] : memref<32x32xf32, #tpu.memory_space<vmem>>, vector<32x32xf32>
    %cst = arith.constant dense<0.000000e+00> : vector<32x768xf32>
    %24 = tpu.matmul %23, %6, %cst {dimension_numbers = #tpu.dot_dimension_numbers<[1], [0], [0], [1], [0, 0, 1, 1], [], []>} : vector<32x32xf32>, vector<32x768xf32>, vector<32x768xf32> -> vector<32x768xf32>
    %c0_11 = arith.constant 0 : index
    %c0_12 = arith.constant 0 : index
    %25 = vector.load %arg9[%c0_11, %c0_12] : memref<32x1xf32, #tpu.memory_space<vmem>>, vector<32x1xf32>
    %26 = vector.broadcast %25 : vector<32x1xf32> to vector<32x768xf32>
    %27 = arith.addf %24, %26 : vector<32x768xf32>
    %cst_13 = arith.constant 0.000000e+00 : f32
    %28 = vector.broadcast %cst_13 : f32 to vector<32x768xf32>
    %29 = arith.cmpf ogt, %27, %28 : vector<32x768xf32>
    %30 = vector.broadcast %19 : f32 to vector<32x768xf32>
    %31 = arith.mulf %30, %27 : vector<32x768xf32>
    %32 = arith.select %29, %27, %31 : vector<32x768xi1>, vector<32x768xf32>
    %33 = vector.broadcast %18 : vector<1x768xf32> to vector<32x768xf32>
    %34 = arith.mulf %32, %33 : vector<32x768xf32>
    %35 = vector.extract_strided_slice %34 {offsets = [0, 767], sizes = [32, 1], strides = [1, 1]} : vector<32x768xf32> to vector<32x1xf32>
    %36 = vector.extract_strided_slice %34 {offsets = [0, 0], sizes = [32, 767], strides = [1, 1]} : vector<32x768xf32> to vector<32x767xf32>
    %37 = tpu.concatenate %35, %36 in 1 : vector<32x1xf32>, vector<32x767xf32> -> vector<32x768xf32>
    %38 = vector.extract_strided_slice %34 {offsets = [0, 1], sizes = [32, 767], strides = [1, 1]} : vector<32x768xf32> to vector<32x767xf32>
    %39 = vector.extract_strided_slice %34 {offsets = [0, 0], sizes = [32, 1], strides = [1, 1]} : vector<32x768xf32> to vector<32x1xf32>
    %40 = tpu.concatenate %38, %39 in 1 : vector<32x767xf32>, vector<32x1xf32> -> vector<32x768xf32>
    %41 = tpu.concatenate %37, %34, %40 in 0 : vector<32x768xf32>, vector<32x768xf32>, vector<32x768xf32> -> vector<96x768xf32>
    %c0_14 = arith.constant 0 : index
    %c0_15 = arith.constant 0 : index
    %42 = vector.load %arg6[%c0_14, %c0_15] : memref<128x96xf32, #tpu.memory_space<vmem>>, vector<128x96xf32>
    %cst_16 = arith.constant dense<0.000000e+00> : vector<128x768xf32>
    %43 = tpu.matmul %42, %41, %cst_16 {dimension_numbers = #tpu.dot_dimension_numbers<[1], [0], [0], [1], [0, 0, 1, 1], [], []>} : vector<128x96xf32>, vector<96x768xf32>, vector<128x768xf32> -> vector<128x768xf32>
    %c0_17 = arith.constant 0 : index
    %c0_18 = arith.constant 0 : index
    %44 = vector.load %arg10[%c0_17, %c0_18] : memref<128x1xf32, #tpu.memory_space<vmem>>, vector<128x1xf32>
    %45 = vector.broadcast %44 : vector<128x1xf32> to vector<128x768xf32>
    %46 = arith.addf %43, %45 : vector<128x768xf32>
    %cst_19 = arith.constant 0.000000e+00 : f32
    %47 = vector.broadcast %cst_19 : f32 to vector<128x768xf32>
    %48 = arith.cmpf ogt, %46, %47 : vector<128x768xf32>
    %49 = vector.broadcast %20 : f32 to vector<128x768xf32>
    %50 = arith.mulf %49, %46 : vector<128x768xf32>
    %51 = arith.select %48, %46, %50 : vector<128x768xi1>, vector<128x768xf32>
    %52 = vector.broadcast %18 : vector<1x768xf32> to vector<128x768xf32>
    %53 = arith.mulf %51, %52 : vector<128x768xf32>
    %54 = vector.extract_strided_slice %53 {offsets = [0, 128], sizes = [128, 512], strides = [1, 1]} : vector<128x768xf32> to vector<128x512xf32>
    %55 = vector.extract_strided_slice %53 {offsets = [64, 0], sizes = [64, 768], strides = [1, 1]} : vector<128x768xf32> to vector<64x768xf32>
    %56 = vector.extract_strided_slice %55 {offsets = [0, 767], sizes = [64, 1], strides = [1, 1]} : vector<64x768xf32> to vector<64x1xf32>
    %57 = vector.extract_strided_slice %55 {offsets = [0, 0], sizes = [64, 767], strides = [1, 1]} : vector<64x768xf32> to vector<64x767xf32>
    %58 = tpu.concatenate %56, %57 in 1 : vector<64x1xf32>, vector<64x767xf32> -> vector<64x768xf32>
    %59 = vector.extract_strided_slice %53 {offsets = [0, 0], sizes = [64, 768], strides = [1, 1]} : vector<128x768xf32> to vector<64x768xf32>
    %60 = vector.extract_strided_slice %59 {offsets = [0, 1], sizes = [64, 767], strides = [1, 1]} : vector<64x768xf32> to vector<64x767xf32>
    %61 = vector.extract_strided_slice %59 {offsets = [0, 0], sizes = [64, 1], strides = [1, 1]} : vector<64x768xf32> to vector<64x1xf32>
    %62 = tpu.concatenate %60, %61 in 1 : vector<64x767xf32>, vector<64x1xf32> -> vector<64x768xf32>
    %63 = tpu.concatenate %58, %53, %62 in 0 : vector<64x768xf32>, vector<128x768xf32>, vector<64x768xf32> -> vector<256x768xf32>
    %c0_20 = arith.constant 0 : index
    %c0_21 = arith.constant 0 : index
    %64 = vector.load %arg7[%c0_20, %c0_21] : memref<32x256xf32, #tpu.memory_space<vmem>>, vector<32x256xf32>
    %cst_22 = arith.constant dense<0.000000e+00> : vector<32x768xf32>
    %65 = tpu.matmul %64, %63, %cst_22 {dimension_numbers = #tpu.dot_dimension_numbers<[1], [0], [0], [1], [0, 0, 1, 1], [], []>} : vector<32x256xf32>, vector<256x768xf32>, vector<32x768xf32> -> vector<32x768xf32>
    %c0_23 = arith.constant 0 : index
    %c0_24 = arith.constant 0 : index
    %66 = vector.load %arg11[%c0_23, %c0_24] : memref<32x1xf32, #tpu.memory_space<vmem>>, vector<32x1xf32>
    %67 = vector.broadcast %66 : vector<32x1xf32> to vector<32x768xf32>
    %68 = arith.addf %65, %67 : vector<32x768xf32>
    %cst_25 = arith.constant 0.000000e+00 : f32
    %69 = vector.broadcast %cst_25 : f32 to vector<32x768xf32>
    %70 = arith.cmpf ogt, %68, %69 : vector<32x768xf32>
    %71 = vector.broadcast %21 : f32 to vector<32x768xf32>
    %72 = arith.mulf %71, %68 : vector<32x768xf32>
    %73 = arith.select %70, %68, %72 : vector<32x768xi1>, vector<32x768xf32>
    %74 = arith.subf %73, %34 : vector<32x768xf32>
    %75 = vector.broadcast %18 : vector<1x768xf32> to vector<32x768xf32>
    %76 = arith.mulf %74, %75 : vector<32x768xf32>
    %77 = vector.extract_strided_slice %76 {offsets = [0, 767], sizes = [32, 1], strides = [1, 1]} : vector<32x768xf32> to vector<32x1xf32>
    %78 = vector.extract_strided_slice %76 {offsets = [0, 0], sizes = [32, 767], strides = [1, 1]} : vector<32x768xf32> to vector<32x767xf32>
    %79 = tpu.concatenate %77, %78 in 1 : vector<32x1xf32>, vector<32x767xf32> -> vector<32x768xf32>
    %80 = vector.extract_strided_slice %76 {offsets = [0, 1], sizes = [32, 767], strides = [1, 1]} : vector<32x768xf32> to vector<32x767xf32>
    %81 = vector.extract_strided_slice %76 {offsets = [0, 0], sizes = [32, 1], strides = [1, 1]} : vector<32x768xf32> to vector<32x1xf32>
    %82 = tpu.concatenate %80, %81 in 1 : vector<32x767xf32>, vector<32x1xf32> -> vector<32x768xf32>
    %83 = tpu.concatenate %79, %76, %82 in 0 : vector<32x768xf32>, vector<32x768xf32>, vector<32x768xf32> -> vector<96x768xf32>
    %c0_26 = arith.constant 0 : index
    %c0_27 = arith.constant 0 : index
    %84 = vector.load %arg8[%c0_26, %c0_27] : memref<128x96xf32, #tpu.memory_space<vmem>>, vector<128x96xf32>
    %cst_28 = arith.constant dense<0.000000e+00> : vector<128x768xf32>
    %85 = tpu.matmul %84, %83, %cst_28 {dimension_numbers = #tpu.dot_dimension_numbers<[1], [0], [0], [1], [0, 0, 1, 1], [], []>} : vector<128x96xf32>, vector<96x768xf32>, vector<128x768xf32> -> vector<128x768xf32>
    %c0_29 = arith.constant 0 : index
    %c0_30 = arith.constant 0 : index
    %86 = vector.load %arg12[%c0_29, %c0_30] : memref<128x1xf32, #tpu.memory_space<vmem>>, vector<128x1xf32>
    %87 = vector.broadcast %86 : vector<128x1xf32> to vector<128x768xf32>
    %88 = arith.addf %85, %87 : vector<128x768xf32>
    %cst_31 = arith.constant 0.000000e+00 : f32
    %89 = vector.broadcast %cst_31 : f32 to vector<128x768xf32>
    %90 = arith.cmpf ogt, %88, %89 : vector<128x768xf32>
    %91 = vector.broadcast %22 : f32 to vector<128x768xf32>
    %92 = arith.mulf %91, %88 : vector<128x768xf32>
    %93 = arith.select %90, %88, %92 : vector<128x768xi1>, vector<128x768xf32>
    %94 = vector.extract_strided_slice %93 {offsets = [0, 128], sizes = [128, 512], strides = [1, 1]} : vector<128x768xf32> to vector<128x512xf32>
    %95 = arith.addf %94, %54 : vector<128x512xf32>
    %c0_32 = arith.constant 0 : index
    %c0_33 = arith.constant 0 : index
    %c0_34 = arith.constant 0 : index
    %96 = vector.load %arg14[%c0_32, %c0_33, %c0_34] : memref<1x128x512xf32, #tpu.memory_space<vmem>>, vector<1x128x512xf32>
    %97 = vector.shape_cast %96 : vector<1x128x512xf32> to vector<128x512xf32>
    %98 = vector.shape_cast %95 : vector<128x512xf32> to vector<1x128x512xf32>
    tpu.vector_store %arg14[%c0_32, %c0_33, %c0_34], %98 {strides = array<i32>} : memref<1x128x512xf32, #tpu.memory_space<vmem>>, vector<1x128x512xf32>,
    return
  }
  func.func @transform_0(%arg0: i32, %arg1: i32) -> (i32, i32, i32) {
    %c4_i32 = arith.constant 4 : i32
    %0 = arith.muli %arg1, %c4_i32 : i32
    %c1_i32 = arith.constant 1 : i32
    %1 = arith.subi %0, %c1_i32 : i32
    %c0_i32 = arith.constant 0 : i32
    %2 = arith.maxsi %1, %c0_i32 : i32
    %c0_i32_0 = arith.constant 0 : i32
    %c0_i32_1 = arith.constant 0 : i32
    return %arg0, %c0_i32_0, %2 : i32, i32, i32
  }
  func.func @transform_1(%arg0: i32, %arg1: i32) -> (i32, i32, i32) {
    %c0_i32 = arith.constant 0 : i32
    %c0_i32_0 = arith.constant 0 : i32
    return %arg0, %c0_i32, %arg1 : i32, i32, i32
  }
  func.func @transform_2(%arg0: i32, %arg1: i32) -> (i32, i32, i32) {
    %c4_i32 = arith.constant 4 : i32
    %0 = arith.muli %arg1, %c4_i32 : i32
    %c4_i32_0 = arith.constant 4 : i32
    %1 = arith.addi %0, %c4_i32_0 : i32
    %c15_i32 = arith.constant 15 : i32
    %2 = arith.minsi %1, %c15_i32 : i32
    %c0_i32 = arith.constant 0 : i32
    %c0_i32_1 = arith.constant 0 : i32
    return %arg0, %c0_i32, %2 : i32, i32, i32
  }
  func.func @transform_3(%arg0: i32, %arg1: i32) -> (i32, i32) {
    %c0_i32 = arith.constant 0 : i32
    %c0_i32_0 = arith.constant 0 : i32
    %c0_i32_1 = arith.constant 0 : i32
    return %c0_i32, %c0_i32_0 : i32, i32
  }
  func.func @transform_4(%arg0: i32, %arg1: i32) -> (i32, i32) {
    %c0_i32 = arith.constant 0 : i32
    %c0_i32_0 = arith.constant 0 : i32
    %c0_i32_1 = arith.constant 0 : i32
    return %c0_i32, %c0_i32_0 : i32, i32
  }
  func.func @transform_5(%arg0: i32, %arg1: i32) -> (i32, i32) {
    %c0_i32 = arith.constant 0 : i32
    %c0_i32_0 = arith.constant 0 : i32
    %c0_i32_1 = arith.constant 0 : i32
    return %c0_i32, %c0_i32_0 : i32, i32
  }
  func.func @transform_6(%arg0: i32, %arg1: i32) -> (i32, i32) {
    %c0_i32 = arith.constant 0 : i32
    %c0_i32_0 = arith.constant 0 : i32
    %c0_i32_1 = arith.constant 0 : i32
    return %c0_i32, %c0_i32_0 : i32, i32
  }
  func.func @transform_7(%arg0: i32, %arg1: i32) -> (i32, i32) {
    %c0_i32 = arith.constant 0 : i32
    %c0_i32_0 = arith.constant 0 : i32
    %c0_i32_1 = arith.constant 0 : i32
    return %c0_i32, %c0_i32_0 : i32, i32
  }
  func.func @transform_8(%arg0: i32, %arg1: i32) -> (i32, i32) {
    %c0_i32 = arith.constant 0 : i32
    %c0_i32_0 = arith.constant 0 : i32
    %c0_i32_1 = arith.constant 0 : i32
    return %c0_i32, %c0_i32_0 : i32, i32
  }
  func.func @transform_9(%arg0: i32, %arg1: i32) -> (i32, i32) {
    %c0_i32 = arith.constant 0 : i32
    %c0_i32_0 = arith.constant 0 : i32
    %c0_i32_1 = arith.constant 0 : i32
    return %c0_i32, %c0_i32_0 : i32, i32
  }
  func.func @transform_10(%arg0: i32, %arg1: i32) -> (i32, i32) {
    %c0_i32 = arith.constant 0 : i32
    %c0_i32_0 = arith.constant 0 : i32
    %c0_i32_1 = arith.constant 0 : i32
    return %c0_i32, %c0_i32_0 : i32, i32
  }
  func.func @transform_11(%arg0: i32, %arg1: i32) -> i32 {
    %c0_i32 = arith.constant 0 : i32
    %c0_i32_0 = arith.constant 0 : i32
    return %c0_i32 : i32
  }
  func.func @transform_12(%arg0: i32, %arg1: i32) -> (i32, i32, i32) {
    %c0_i32 = arith.constant 0 : i32
    %c0_i32_0 = arith.constant 0 : i32
    return %arg0, %c0_i32, %arg1 : i32, i32, i32
  }
}

</mosaic_0001>

<bundles_post_ra>
// kernel: d_up_block_forward.1
= control target key start
LH: loop header
LB: loop body
LE: loop exit
PB: predicated region body
PF: predicated region fallthrough
CT: control target
= control target key end

     0   :  { %s9948_s0 = inlined_call_operand.vmem [shape: f32[2,32,2048], index: 0, kind: input, shape index: {}, may-alias: {0,1,2}]   ;;  %s9949_s1 = inlined_call_operand.vmem [shape: f32[2,32,2048], index: 1, kind: input, shape index: {}, may-alias: {0,1,2}]   ;;  %s9950_s2 = inlined_call_operand.vmem [shape: f32[2,32,2048], index: 2, kind: input, shape index: {}, may-alias: {0,1,2}]   ;;  %s9951_s3 = inlined_call_operand.vmem [shape: f32[32,32], index: 3, kind: input, shape index: {}]   ;;  %s9952_s4 = inlined_call_operand.vmem [shape: f32[128,96], index: 4, kind: input, shape index: {}]   ;;  %s9953_s5 = inlined_call_operand.vmem [shape: f32[32,256], index: 5, kind: input, shape index: {}]   ;;  %s9954_s6 = inlined_call_operand.vmem [shape: f32[128,96], index: 6, kind: input, shape index: {}]   ;;  %s9955_s7 = inlined_call_operand.vmem [shape: f32[32,1], index: 7, kind: input, shape index: {}]   ;;  %s9956_s8 = inlined_call_operand.vmem [shape: f32[128,1], index: 8, kind: input, shape index: {}]   ;;  %s9957_s9 = inlined_call_operand.vmem [shape: f32[32,1], index: 9, kind: input, shape index: {}]   ;;  %s9958_s10 = inlined_call_operand.vmem [shape: f32[128,1], index: 10, kind: input, shape index: {}]   ;;  %s9959_s11 = inlined_call_operand.vmem [shape: f32[4], index: 11, kind: input, shape index: {}]   ;;  %s9960_s12 = inlined_call_operand.vmem [shape: f32[2,128,2048], index: 12, kind: output, shape index: {}]  }
   0x1   :  { %10234 = sst [smem:[#allocation141_spill]] %s9952_s4 }
   0x2   :  { %10235 = sst [smem:[#allocation142_spill]] %s9953_s5 }
   0x3   :  { %10236 = sst [smem:[#allocation143_spill]] %s9954_s6 }
   0x4   :  { %10237 = sst [smem:[#allocation144_spill]] %s9956_s8 }
   0x5   :  { %10238 = sst [smem:[#allocation145_spill]] %s9957_s9 }
   0x6   :  { %10239 = sst [smem:[#allocation146_spill]] %s9958_s10 }
   0x7   :  { %10240 = sst [smem:[#allocation147_spill]] %s9959_s11 }
   0x8   :  { %10241 = sst [smem:[#allocation148_spill]] %s9960_s12 }
   0x9   :  { %17 = vsyncpa [#allocation6], 0  ;;  %s6040_s21 = smov 0   ;;  %s6042_s22 = smov 0  }
   0xa   :  { %s6044_s23 = smov 0   ;;  %s6046_s24 = smov 0  }
   0xb   :  { %s6048_s25 = smov 0   ;;  %s6050_s26 = smov 0  }
   0xc   :  { %s6052_s27 = smov 0   ;;  %s6054_s28 = smov 0  }
   0xd   :  { %s6056_s29 = smov 0   ;;  %s6058_s30 = smov 0  }
   0xe   :  { %s6060_s13 = smov 0  }
   0xf LB: > { %10242 = sst [smem:[#allocation9_spill]] %s5952_s27  ;;  %s32_s15 = sadd.s32 1, %s5960_s29  ;;  %s5968_s13 = sphi %s6060_s13, %s23_s13   ;;  %s5964_s30 = sphi %s6058_s30, %s10851_s30   ;;  %s5960_s29 = sphi %s6056_s29, %s10842_s29   ;;  %s5956_s28 = sphi %s6054_s28, %s10850_s28   ;;  %s5952_s27 = sphi %s6052_s27, %s10841_s27   ;;  %s5948_s26 = sphi %s6050_s26, %s10849_s26   ;;  %s5944_s25 = sphi %s6048_s25, %s10848_s25   ;;  %s5940_s24 = sphi %s6046_s24, %s10847_s24   ;;  %s5936_s23 = sphi %s6044_s23, %s10846_s23   ;;  %s5932_s22 = sphi %s6042_s22, %s10845_s22   ;;  %s5928_s21 = sphi %s6040_s21, %s10844_s21  }
  0x10   : > { %10243 = sst [smem:[#allocation10_spill]] %s5956_s28  ;;  %p33_p0 = scmp.ge.s32.totalorder %s32_s15, 4 }
  0x11   : > { %10244 = sst [smem:[#allocation11_spill]] %s5960_s29  ;;  %s35_s16 = sadd.s32 1, %s5964_s30 }
  0x12   : > { %s6099_s17 = sshll.u32 %s5960_s29, 2  ;;  %s52_s18 = sadd.s32 1, %s5948_s26 }
  0x13   : > { %s10853_s15 = smov (%p33_p0, %s32_s15), 0  ;;  %s10855_s16 = smov (!%p33_p0, %s35_s16), %s5964_s30 }
  0x14   : > { %10245 = sst [smem:[#allocation12_spill]] %s10853_s15  ;;  %s4754_s19 = sadd.s32 4294967295, %s6099_s17 }
  0x15   : > { %s4755_s20 = sshll.u32 %s10853_s15, 2  ;;  %p37_p1 = scmp.ge.s32.totalorder %s10855_s16, 2 }
  0x16   : > { %p41_p2 = scmp.gt.s32.totalorder %s4754_s19, 0  ;;  %s4756_s14 = sadd.s32 4294967295, %s4755_s20 }
  0x17   : > { %p59_p3 = scmp.ne.s32.totalorder %s5948_s26, %s5944_s25  ;;  %s10857_s16 = smov (%p37_p1, %s10855_s16), 0 }
  0x18   : > { %10246 = sst [smem:[#allocation13_spill]] %s10857_s16  ;;  %s10859_s19 = smov (!%p41_p2, %s4754_s19), 0 }
  0x19   : > { %p45_p4 = scmp.gt.s32.totalorder %s4756_s14, 0  ;;  %s47_s12 = ssub.s32 %s5964_s30, %s10857_s16 }
  0x1a   : > { %p60_p5 = scmp.eq.s32.totalorder %s5968_s13, 0  ;;  %s76_s28 = ssub.s32 %s5960_s29, %s10853_s15 }
  0x1b   : > { %s10861_s14 = smov (!%p45_p4, %s4756_s14), 0  ;;  %s77_s10 = sor.u32 %s76_s28, %s47_s12 }
  0x1c   : > { %p6120_p6 = por %p60_p5, %p59_p3  ;;  %s48_s9 = ssub.s32 %s10859_s19, %s10861_s14 }
  0x1d   : > { %p78_p7 = scmp.eq.s32.totalorder %s77_s10, 0  ;;  %s49_s5 = sor.u32 %s48_s9, %s47_s12 }
  0x1e   : > { %s80_s4 = sadd.s32 1, %s5940_s24  ;;  %p50_p8 = scmp.eq.s32.totalorder %s49_s5, 0 }
  0x1f   : > { %p87_p9 = scmp.ne.s32.totalorder %s5940_s24, %s5936_s23  ;;  %s104_s10 = sadd.s32 4, %s6099_s17 }
  0x20   : > { %s6129_s16 = scalar_select %p78_p7, %s5940_s24, %s80_s4  }
  0x21   : > { %s6132_s15 = scalar_select %p50_p8, %s5948_s26, %s52_s18  }
  0x22   : > { %10248 = sst [smem:[#allocation14_spill]] %s6129_s16  ;;  %p6139_p10 = por %p87_p9, %p60_p5 }
  0x23   : > { %10249 = sst [smem:[#allocation15_spill]] %s6132_s15  ;;  %p105_p11 = scmp.lt.s32.totalorder %s104_s10, 15 }
  0x24   : > { %s10250_s28 = scalar_select %p6139_p10, 1, 0 }
  0x25   : > { %s108_s9 = sadd.s32 4, %s4755_s20  ;;  %s116_s5 = sadd.s32 1, %s5932_s22 }
  0x26   : > { %p109_p12 = scmp.lt.s32.totalorder %s108_s9, 15  ;;  %s10863_s10 = smov (!%p105_p11, %s104_s10), 15 }
  0x27   : > { %p123_p13 = scmp.ne.s32.totalorder %s5932_s22, %s5928_s21  ;;  %s10251_s4 = sadd.s32 4294967295, %s5968_s13  }
  0x28   : > { %s10865_s9 = smov (!%p109_p12, %s108_s9), 15  ;;  %p344_p0 = scmp.eq.s32.totalorder %s10251_s4, 7 }
  0x29   : > { %s112_s14 = ssub.s32 %s10863_s10, %s10865_s9  ;;  %p4759_p1 = scmp.ge.s32.totalorder %s5968_s13, 1 }
  0x2a   : > { %s113_s18 = sor.u32 %s112_s14, %s47_s12  ;;  %p6155_p2 = por %p123_p13, %p60_p5 }
  0x2b   : > { %p114_p3 = scmp.eq.s32.totalorder %s113_s18, 0  ;;  %p6162_p4 = por %p344_p0, %p87_p9 }
  0x2c   : > { %s10252_s29 = scalar_select %p6155_p2, 1, 0 }
  0x2d   : > { %s10253_s20 = scalar_select %p6162_p4, 1, 0 }
  0x2e   : > { %p357_p7 = scmp.lt.s32.totalorder %s5968_s13, 9  ;;  %s10257_s9 = smov %s10251_s4 }
  0x2f   : > { %10254 = sst [smem:[#allocation16_spill]] %s10253_s20  ;;  %p6176_p11 = scmp.eq.s32.totalorder %s10257_s9, 0 }
  0x30   : > { %s6168_s15 = scalar_select %p114_p3, %s5932_s22, %s116_s5  }
  0x31   : > { %p6170_p8 = pnand %p4759_p1, %p357_p7  ;;  %s10259_s11 = sld [smem:[#allocation147_spill]] }
  0x32   : > { %10255 = sst [smem:[#allocation17_spill]] %s6168_s15 }
  0x33   : > { %p5282_p5 = pneg %p6170_p8 }
  0x35   : > { %p5283_p9 = pnand %p6176_p11, %p5282_p5 }
  0x37   : > { %s394_s18 = sshll.u32 %s10259_s11, 4  ;;  %p5865_p13 = pneg %p5283_p9  ;;  %s395_s18 = int_to_ptr.vmem [resolvable:$true] %s394_s18 }
  0x38   : > { %s5863_s5 = scalar_lea.vmem %s395_s18, 16  ;;  %p5871_p3 = scmp.lt.s32.totalorder %s395_s18, %s395_s18 }
  0x39   : > { %p5864_p12 = scmp.ne.s32.totalorder %s395_s18, %s5863_s5  ;;  %p5872_p7 = scmp.lt.s32.totalorder %s5863_s5, %s5863_s5 }
  0x3b   : > { %p5866_p0 = pnand %p5865_p13, %p5864_p12  ;;  %p5873_p4 = por %p5872_p7, %p5871_p3 }
  0x3d   : > { %p5867_p1 = pneg %p5866_p0 }
  0x3f   : > { %p5874_p2 = pnand %p5873_p4, %p5867_p1 }
  0x41   : > { %5877 = shalt.err (!%p5874_p2)
}
  0x42   : > { %s5970_s9 = smov [#allocation5]   ;;  %p4761_p10 = scmp.ge.s32.totalorder %s5968_s13, 8 }
  0x43   : > { %5285 = dma.vmem_to_smem (!%p5283_p9), %s395_s18, 16, %s5970_s9, [#allocation6]  }
  0x44   : > { %401 = sbr.rel (%p4761_p10) target bundleno = 111 (0x6f), region = 52 }
  0x4b   : > { %404 = sbr.rel (!%p6120_p6) target bundleno = 85 (0x55), region = 56  ;;  %s406_s4 = sand.u32 (%p6120_p6), 1, %s5948_s26  }
  0x4c   : > { %s4765_s14 = sshll.u32 (%p6120_p6), %s5964_s30, 6  ;;  %s4762_s11 = sshll.u32 (%p6120_p6), %s406_s4, 5 }
  0x4d   : > { %s414_s15 = sadd.s32 (%p6120_p6), %s4765_s14, %s10859_s19  ;;  %s408_s18 = scalar_lea.vmem (%p6120_p6), [#allocation2], %s4762_s11 }
  0x4e   : > { %s4766_s20 = sshll.u32 (%p6120_p6), %s414_s15, 3 }
  0x4f   : > { %s416_s27 = scalar_lea.vmem (%p6120_p6), %s9948_s0, %s4766_s20 }
  0x50   : > { %v450_v0 = vld [vmem:[%s416_s27] sm:$0xff] (%p6120_p6) }
  0x51   : > { %v452_v1 = vld [vmem:[%s416_s27 + $0x80] sm:$0xff] (%p6120_p6)  ;;  %451 = vst [vmem:[%s408_s18] sm:$0xff] (%p6120_p6), %v450_v0 }
  0x52   : > { %v454_v2 = vld [vmem:[%s416_s27 + $0x100] sm:$0xff]  ;;  %453 = vst [vmem:[%s408_s18 + $0x8] sm:$0xff] %v452_v1 }
  0x53   : > { %455 = vst [vmem:[%s408_s18 + $0x10] sm:$0xff] %v454_v2  ;;  %v456_v3 = vld [vmem:[%s416_s27 + $0x180] sm:$0xff] }
  0x54   : > { %457 = vst [vmem:[%s408_s18 + $0x18] sm:$0xff] %v456_v3 }
  0x55 PF: > { %p10260_p6 = scmp.ne.s32.totalorder %s10250_s28, 0 }
  0x56   : > { %s465_s6 = sand.u32 (%p10260_p6), 1, %s5940_s24   ;;  %s4769_s15 = sshll.u32 (%p10260_p6), %s5964_s30, 6 }
  0x57   : > { %463 = sbr.rel (!%p10260_p6) target bundleno = 100 (0x64), region = 94  ;;  %s4767_s8 = sshll.u32 (%p10260_p6), %s465_s6, 7 }
  0x58   : > { %s470_s19 = sadd.s32 (%p10260_p6), %s4769_s15, %s6099_s17  ;;  %s467_s27 = scalar_lea.vmem (%p10260_p6), [#allocation3], %s4767_s8 }
  0x59   : > { %s4770_s20 = sshll.u32 (%p10260_p6), %s470_s19, 3 }
  0x5a   : > { %s6204_s11 = scalar_lea.vmem (%p10260_p6), %s9949_s1, %s4770_s20 }
  0x5b   : > { %v485_v4 = vld [vmem:[%s6204_s11] sm:$0xff] (%p10260_p6)  ;;  %v487_v5 = vld [vmem:[%s6204_s11 + $0x8] sm:$0xff] (%p10260_p6)  ;;  %v489_v6 = vld [vmem:[%s6204_s11 + $0x10] sm:$0xff] (%p10260_p6) }
  0x5c   : > { %486 = vst [vmem:[%s467_s27] sm:$0xff] (%p10260_p6), %v485_v4  ;;  %488 = vst [vmem:[%s467_s27 + $0x8] sm:$0xff] (%p10260_p6), %v487_v5  ;;  %v491_v7 = vld [vmem:[%s6204_s11 + $0x18] sm:$0xff] (%p10260_p6)  ;;  %v493_v8 = vld [vmem:[%s6204_s11 + $0x80] sm:$0xff] (%p10260_p6) }
  0x5d   : > { %490 = vst [vmem:[%s467_s27 + $0x10] sm:$0xff] (%p10260_p6), %v489_v6  ;;  %v495_v9 = vld [vmem:[%s6204_s11 + $0x88] sm:$0xff] (%p10260_p6)  ;;  %492 = vst [vmem:[%s467_s27 + $0x18] sm:$0xff] (%p10260_p6), %v491_v7  ;;  %v497_v10 = vld [vmem:[%s6204_s11 + $0x90] sm:$0xff] (%p10260_p6) }
  0x5e   : > { %494 = vst [vmem:[%s467_s27 + $0x20] sm:$0xff] %v493_v8  ;;  %496 = vst [vmem:[%s467_s27 + $0x28] sm:$0xff] %v495_v9  ;;  %v499_v11 = vld [vmem:[%s6204_s11 + $0x98] sm:$0xff]  ;;  %v501_v12 = vld [vmem:[%s6204_s11 + $0x100] sm:$0xff] }
  0x5f   : > { %498 = vst [vmem:[%s467_s27 + $0x30] sm:$0xff] %v497_v10  ;;  %500 = vst [vmem:[%s467_s27 + $0x38] sm:$0xff] %v499_v11  ;;  %v503_v13 = vld [vmem:[%s6204_s11 + $0x108] sm:$0xff]  ;;  %v505_v14 = vld [vmem:[%s6204_s11 + $0x110] sm:$0xff] }
  0x60   : > { %502 = vst [vmem:[%s467_s27 + $0x40] sm:$0xff] %v501_v12  ;;  %v507_v15 = vld [vmem:[%s6204_s11 + $0x118] sm:$0xff]  ;;  %504 = vst [vmem:[%s467_s27 + $0x48] sm:$0xff] %v503_v13  ;;  %v509_v16 = vld [vmem:[%s6204_s11 + $0x180] sm:$0xff] }
  0x61   : > { %506 = vst [vmem:[%s467_s27 + $0x50] sm:$0xff] %v505_v14  ;;  %508 = vst [vmem:[%s467_s27 + $0x58] sm:$0xff] %v507_v15  ;;  %v511_v17 = vld [vmem:[%s6204_s11 + $0x188] sm:$0xff]  ;;  %v513_v18 = vld [vmem:[%s6204_s11 + $0x190] sm:$0xff] }
  0x62   : > { %510 = vst [vmem:[%s467_s27 + $0x60] sm:$0xff] %v509_v16  ;;  %512 = vst [vmem:[%s467_s27 + $0x68] sm:$0xff] %v511_v17  ;;  %v515_v19 = vld [vmem:[%s6204_s11 + $0x198] sm:$0xff] }
  0x63   : > { %514 = vst [vmem:[%s467_s27 + $0x70] sm:$0xff] %v513_v18  ;;  %516 = vst [vmem:[%s467_s27 + $0x78] sm:$0xff] %v515_v19 }
  0x64 PF: > { %p10261_p10 = scmp.ne.s32.totalorder %s10252_s29, 0 }
  0x65   : > { %s524_s17 = sand.u32 (%p10261_p10), 1, %s5932_s22   ;;  %s4773_s28 = sshll.u32 (%p10261_p10), %s5964_s30, 6 }
  0x66   : > { %522 = sbr.rel (!%p10261_p10) target bundleno = 111 (0x6f), region = 117  ;;  %s4771_s14 = sshll.u32 (%p10261_p10), %s524_s17, 5 }
  0x67   : > { %s532_s5 = sadd.s32 (%p10261_p10), %s4773_s28, %s10863_s10  ;;  %s526_s19 = scalar_lea.vmem (%p10261_p10), [#allocation4], %s4771_s14 }
  0x68   : > { %s4774_s18 = sshll.u32 (%p10261_p10), %s532_s5, 3 }
  0x69   : > { %s534_s8 = scalar_lea.vmem (%p10261_p10), %s9950_s2, %s4774_s18 }
  0x6a   : > { %v568_v20 = vld [vmem:[%s534_s8] sm:$0xff] (%p10261_p10) }
  0x6b   : > { %v570_v21 = vld [vmem:[%s534_s8 + $0x80] sm:$0xff] (%p10261_p10)  ;;  %569 = vst [vmem:[%s526_s19] sm:$0xff] (%p10261_p10), %v568_v20 }
  0x6c   : > { %v572_v22 = vld [vmem:[%s534_s8 + $0x100] sm:$0xff] (%p10261_p10)  ;;  %571 = vst [vmem:[%s526_s19 + $0x8] sm:$0xff] (%p10261_p10), %v570_v21 }
  0x6d   : > { %573 = vst [vmem:[%s526_s19 + $0x10] sm:$0xff] %v572_v22  ;;  %v574_v23 = vld [vmem:[%s534_s8 + $0x180] sm:$0xff] }
  0x6e   : > { %575 = vst [vmem:[%s526_s19 + $0x18] sm:$0xff] %v574_v23 }
  0x6f PF: > { %584 = sbr.rel (%p6170_p8) target bundleno = 1829 (0x725), region = 155 }
  0x76   : > { %s587_s29 = sand.u32 1, %s5944_s25   ;;  %s594_s10 = sand.u32 1, %s5936_s23  }
  0x77   : > { %s4776_s20 = sshll.u32 %s587_s29, 5  ;;  %s4777_s9 = sshll.u32 %s594_s10, 7 }
  0x78   : > { %s601_s4 = sand.u32 1, %s5928_s21   ;;  %s589_s27 = scalar_lea.vmem [#allocation2], %s4776_s20 }
  0x79   : > { %s4778_s11 = sshll.u32 %s601_s4, 5  ;;  %s6237_s17 = scalar_lea.vmem [#allocation3], %s4777_s9 }
  0x7a   : > { %s6239_s28 = scalar_lea.vmem [#allocation4], %s4778_s11 }
  0x7b   : > { %5923 = dma.done.wait (%p6176_p11), [#allocation6], 16  }
  0x7c   : > { %5925 = vsyncadd (%p6176_p11), [#allocation6], 4294967280 }
  0x7d   : > { %611 = sfence }
  0x7e   : > { %v668_v24 = vld [vmem:[%s6237_s17] sm:$0xff]  ;;  %v665_v28 = vld [vmem:[%s589_s27 + $0x8] sm:$0xff]  ;;  %v670_v29 = vld [vmem:[%s6237_s17 + $0x10] sm:$0xff]  ;;  %v9980_v31 = vmov 0.0   ;;  %v5972_v37 = vmov 0   ;;  %vm766_vm0 = vcmask 261120   ;;  %v690_v6 = vlaneseq }
  0x7f   : > { %v672_v25 = vld [vmem:[%s6237_s17 + $0x20] sm:$0xff]  ;;  %v674_v30 = vld [vmem:[%s6237_s17 + $0x30] sm:$0xff]  ;;  %843 = vmatprep.mubr.f32.mxu0 %v9980_v31  ;;  %932 = vmatprep.mubr.f32.mxu1 %v9980_v31  ;;  %v669_v34 = vld [vmem:[%s6237_s17 + $0x8] sm:$0xff]  ;;  %s734_s21 = sld [smem:[#allocation5]]  ;;  %s5973_s25 = smov 1  }
  0x80   : > { %v664_v26 = vld [vmem:[%s589_s27] sm:$0xff]  ;;  %v4906_v27 = vpack.c.bf16 %v672_v25, %v668_v24  ;;  %v4914_v33 = vpack.c.bf16 %v674_v30, %v670_v29  ;;  %v673_v35 = vld [vmem:[%s6237_s17 + $0x28] sm:$0xff]  ;;  %5381 = vset.pattern.permute.xlu0 %v5972_v37  ;;  %5382 = vset.pattern.permute.xlu1 %v5972_v37  ;;  %v666_v40 = vld [vmem:[%s589_s27 + $0x10] sm:$0xff]  ;;  %v6316_v7 = vand.u32 127, %v690_v6  ;;  %s5974_s16 = smov 127   ;;  %s10295_s5 = sld [smem:[#allocation144_spill]] }
  0x81   : > { %v4908_v32 = vpack.c.bf16 %v665_v28, %v664_v26  ;;  %v676_v36 = vld [vmem:[%s6237_s17 + $0x40] sm:$0xff]  ;;  %v4916_v38 = vpack.c.bf16 %v673_v35, %v669_v34  ;;  %v667_v41 = vld [vmem:[%s589_s27 + $0x18] sm:$0xff]  ;;  %v678_v44 = vld [vmem:[%s6237_s17 + $0x50] sm:$0xff]  ;;  %s10262_s27 = sld [smem:[#allocation9_spill]]  ;;  %s10296_s18 = sld [smem:[#allocation141_spill]] }
  0x82   : > { %4907 = vmatprep.subr.bf16.mxu0 %v4906_v27  ;;  %v680_v39 = vld [vmem:[%s6237_s17 + $0x60] sm:$0xff]  ;;  %4915 = vmatprep.subr.bf16.mxu1 %v4914_v33  ;;  %v4912_v43 = vpack.c.bf16 %v667_v41, %v666_v40  ;;  %v682_v45 = vld [vmem:[%s6237_s17 + $0x70] sm:$0xff]  ;;  %v677_v46 = vld [vmem:[%s6237_s17 + $0x48] sm:$0xff]  ;;  %v692_v9 = vadd.s32 128, %v6316_v7  ;;  %s4789_s6 = sld [smem:[#allocation5 + $0x1]]  ;;  %s10553_s9 = sld [smem:[#allocation145_spill]] }
  0x83   : > { %4909 = vmatpush1.bf16.msra.mxu0 %v4908_v32  ;;  %v4910_v42 = vpack.c.bf16 %v680_v39, %v676_v36  ;;  %4917 = vmatpush1.bf16.msra.mxu1 %v4916_v38  ;;  %v4918_v47 = vpack.c.bf16 %v682_v45, %v678_v44  ;;  %v681_v48 = vld [vmem:[%s6237_s17 + $0x68] sm:$0xff]  ;;  %v684_v49 = vld [vmem:[%s6239_s28] sm:$0xff]  ;;  %v671_v52 = vld [vmem:[%s6237_s17 + $0x18] sm:$0xff]  ;;  %s10525_s19 = sld [smem:[#allocation142_spill]]  ;;  %s4790_s14 = sld [smem:[#allocation5 + $0x2]] }
  0x84   : > { %v4920_v50 = vpack.c.bf16 %v681_v48, %v677_v46  ;;  %v685_v51 = vld [vmem:[%s6239_s28 + $0x8] sm:$0xff]  ;;  %v675_v53 = vld [vmem:[%s6237_s17 + $0x38] sm:$0xff]  ;;  %v686_v55 = vld [vmem:[%s6239_s28 + $0x10] sm:$0xff]  ;;  %s10749_s8 = sld [smem:[#allocation146_spill]]  ;;  %s4780_s12 = sshll.u32 %s594_s10, 9 }
  0x85   : > { %4911 = vmatprep.subr.bf16.mxu0 %v4910_v42  ;;  %4919 = vmatprep.subr.bf16.mxu1 %v4918_v47  ;;  %v4922_v54 = vpack.c.bf16 %v685_v51, %v684_v49  ;;  %v738_v56 = vld [vmem:[%s9951_s3] sm:$0xff]  ;;  %v4924_v57 = vpack.c.bf16 %v675_v53, %v671_v52  ;;  %v687_v58 = vld [vmem:[%s6239_s28 + $0x18] sm:$0xff]  ;;  %v744_v63 = vld [vmem:[%s9955_s7 + $0x10] sm:$0xff]  ;;  %v6326_v14 = vstv %s734_s21  ;;  %v696_v49 = vadd.s32 640, %v6316_v7  ;;  %s4791_s21 = sld [smem:[#allocation5 + $0x3]]  ;;  %s9499_s23 = scalar_lea.vmem [#allocation7], %s4780_s12 }
  0x86   : > { %v742_v59 = vld [vmem:[%s9955_s7] sm:$0xff]  ;;  %v4926_v60 = vpack.c.bf16 %v687_v58, %v686_v55  ;;  %v679_v61 = vld [vmem:[%s6237_s17 + $0x58] sm:$0xff]  ;;  %v743_v0 = vld [vmem:[%s9955_s7 + $0x8] sm:$0xff]  ;;  %758 = vperm.xlu1 %5382, %v744_v63   ;;  %v693_v55 = vadd.s32 256, %v6316_v7  ;;  %s10833_s10 = sld [smem:[#allocation16_spill]] }
  0x87   : > { %4913 = vmatpush1.bf16.msra.mxu0 %v4912_v43  ;;  %4921 = vmatpush1.bf16.msra.mxu1 %v4920_v50  ;;  %v683_v62 = vld [vmem:[%s6237_s17 + $0x78] sm:$0xff]  ;;  %v739_v1 = vld [vmem:[%s9951_s3 + $0x8] sm:$0xff]  ;;  %v740_v4 = vld [vmem:[%s9951_s3 + $0x10] sm:$0xff]  ;;  %s4781_s17 = sshll.u32 %s10262_s27, 9 }
  0x88   : > { %4923 = vmatprep.subr.bf16.mxu0 %v4922_v54  ;;  %748 = vperm.xlu0 %5381, %v742_v59   ;;  %v745_v2 = vld [vmem:[%s9955_s7 + $0x18] sm:$0xff]  ;;  %v4928_v3 = vpack.c.bf16 %v683_v62, %v679_v61  ;;  %s4782_s28 = sadd.s32 4294967168, %s4781_s17 }
  0x89   : > { %v741_v5 = vld [vmem:[%s9951_s3 + $0x18] sm:$0xff]  ;;  %v6318_v8 = vstv %s4782_s28 }
  0x8a   : > { %4792 = vmatmul.mubr.msk.f32.vlgmr.msra.gmra.mrb[0].mxu0 %vm766_vm0, %v738_v56  ;;  %4796 = vmatmul.mubr.msk.f32.vlgmr.msra.gmra.mrb[0].mxu1 %vm766_vm0, %v738_v56  ;;  %v698_v10 = vadd.s32 %v6318_v8, %v6316_v7  ;;  %v699_v12 = vadd.s32 %v6318_v8, %v692_v9  ;;  %v703_v61 = vadd.s32 %v6318_v8, %v696_v49 }
  0x8b   : > { %4925 = vmatpush1.bf16.msra.mxu0 %v4924_v57  ;;  %849 = vmatprep.mubr.f32.mxu0 %v9980_v31 }
  0x8c   : > { %938 = vmatprep.mubr.f32.mxu1 %v9980_v31  ;;  %4927 = vmatprep.subr.bf16.mxu0 %v4926_v60  ;;  %vm704_vm1 = vcmp.ge.s32.totalorder %v698_v10, 0  ;;  %vm710_vm2 = vcmp.lt.s32.totalorder %v698_v10, 2048  ;;  %vm705_vm3 = vcmp.ge.s32.totalorder %v699_v12, 0  ;;  %vm711_vm4 = vcmp.lt.s32.totalorder %v699_v12, 2048  ;;  %p10834_p2 = scmp.ne.s32.totalorder %s10833_s10, 0 }
  0x8d   : > { %753 = vperm.xlu0 %5381, %v743_v0   ;;  %763 = vperm.xlu1 %5382, %v745_v2   ;;  %vm716_vm5 = vmand %vm704_vm1, %vm710_vm2  ;;  %v700_v2 = vadd.s32 %v6318_v8, %v693_v55  ;;  %vm709_vm13 = vcmp.ge.s32.totalorder %v703_v61, 0  ;;  %vm715_vm14 = vcmp.lt.s32.totalorder %v703_v61, 2048  ;;  %s10837_s27 = sld [smem:[#allocation148_spill]] (%p10834_p2) }
  0x8e   : > { %4793 = vmatmul.mubr.msk.f32.gmra.mrb[2].mxu0 %vm766_vm0, %v739_v1  ;;  %4797 = vmatmul.mubr.msk.f32.gmra.mrb[2].mxu1 %vm766_vm0, %v739_v1  ;;  %vm717_vm7 = vmand %vm705_vm3, %vm711_vm4  ;;  %v6339_v24 = vsel %vm716_vm5, 1.0, %v9980_v31 }
  0x8f   : > { %855 = vmatprep.mubr.f32.mxu0 %v9980_v31  ;;  %944 = vmatprep.mubr.f32.mxu1 %v9980_v31  ;;  %10263 = vst [vmem:[#allocation18_spill] sm:$0xff] %v6339_v24  ;;  %v6345_v29 = vsel %vm717_vm7, 1.0, %v9980_v31  ;;  %vm706_vm15 = vcmp.ge.s32.totalorder %v700_v2, 0  ;;  %vm721_vm1 = vmand %vm709_vm13, %vm715_vm14 }
  0x90   : > { %4929 = vmatpush1.bf16.msra.mxu0 %v4928_v3  ;;  %10264 = vst [vmem:[#allocation19_spill] sm:$0xff] %v6345_v29 }
  0x92   : > { %4794 = vmatmul.mubr.msk.f32.gmra.mrb[4].mxu0 %vm766_vm0, %v740_v4  ;;  %4798 = vmatmul.mubr.msk.f32.gmra.mrb[4].mxu1 %vm766_vm0, %v740_v4 }
  0x93   : > { %861 = vmatprep.mubr.f32.mxu0 %v9980_v31  ;;  %950 = vmatprep.mubr.f32.mxu1 %v9980_v31 }
  0x96   : > { %4795 = vmatmul.mubr.msk.f32.gmra.mrb[6].mxu0 %vm766_vm0, %v741_v5  ;;  %4799 = vmatmul.mubr.msk.f32.gmra.mrb[6].mxu1 %vm766_vm0, %v741_v5 }
  0x97   : > { %1021 = vmatprep.mubr.f32.mxu0 %v9980_v31  ;;  %1630 = vmatprep.mubr.f32.mxu1 %v9980_v31 }
  0x9a   : > { %4800 = vmatmul.mubr.msk.f32.vlgmr.msra.gmra.mrb[8].mxu0 %vm766_vm0, %v738_v56 }
  0x9b   : > { %1027 = vmatprep.mubr.f32.mxu0 %v9980_v31 }
  0x9e   : > { %4801 = vmatmul.mubr.msk.f32.gmra.mrb[10].mxu0 %vm766_vm0, %v739_v1 }
  0x9f   : > { %1033 = vmatprep.mubr.f32.mxu0 %v9980_v31 }
  0xa2   : > { %4802 = vmatmul.mubr.msk.f32.gmra.mrb[12].mxu0 %vm766_vm0, %v740_v4 }
  0xa3   : > { %1039 = vmatprep.mubr.f32.mxu0 %v9980_v31 }
  0xa6   : > { %4803 = vmatmul.mubr.msk.f32.gmra.mrb[14].mxu0 %vm766_vm0, %v741_v5  ;;  %vm712_vm0 = vcmp.lt.s32.totalorder %v700_v2, 2048 }
  0xa7   : > { %1594 = vmatprep.mubr.f32.mxu0 %v9980_v31  ;;  %vm718_vm3 = vmand %vm706_vm15, %vm712_vm0 }
 0x105   : > { %v6348_v33 = vpop.permute.xlu1 %758 }
 0x107   : > { %v6323_v11 = vpop.permute.xlu0 %748 }
 0x10c   : > { %v6332_v19 = vpop.permute.xlu0 %753  ;;  %v6395_v3 = vpop.permute.xlu1 %763 }
 0x15d   : > { %v845_v13 = vpop.f32.mrb[0].mxu0  ;;  %v6329_v17 = vpop.f32.mrb[0].mxu1 }
 0x15e   : > { %v846_v15 = vadd.f32 %v845_v13, %v6323_v11  ;;  %v847_v16 = vpop.f32.mrb[1].mxu0  ;;  %v6334_v20 = vpop.f32.mrb[1].mxu1  ;;  %v935_v13 = vadd.f32 %v6329_v17, %v6323_v11 }
 0x15f   : > { %v848_v18 = vadd.f32 %v847_v16, %v6323_v11 }
 0x160   : > { %vm1046_vm6 = vcmp.gt.f32.partialorder %v846_v15, 0.0  ;;  %v1071_v21 = vmul.f32 %v6326_v14, %v846_v15  ;;  %vm1048_vm7 = vcmp.gt.f32.partialorder %v935_v13, 0.0 }
 0x161   : > { %vm1047_vm8 = vcmp.gt.f32.partialorder %v848_v18, 0.0  ;;  %v1072_v22 = vmul.f32 %v6326_v14, %v848_v18  ;;  %v851_v23 = vpop.f32.mrb[2].mxu0  ;;  %v6342_v27 = vpop.f32.mrb[2].mxu1 }
 0x162   : > { %v852_v25 = vadd.f32 %v851_v23, %v6332_v19  ;;  %v853_v26 = vpop.f32.mrb[3].mxu0  ;;  %v1095_v28 = vsel %vm1046_vm6, %v846_v15, %v1071_v21  ;;  %v6350_v34 = vpop.f32.mrb[3].mxu1  ;;  %v694_v21 = vadd.s32 384, %v6316_v7 }
 0x163   : > { %v1096_v30 = vsel %vm1047_vm8, %v848_v18, %v1072_v22  ;;  %v854_v32 = vadd.f32 %v853_v26, %v6332_v19  ;;  %v6355_v38 = vmul.f32 %v6339_v24, %v1095_v28  ;;  %v1073_v26 = vmul.f32 %v6326_v14, %v935_v13 }
 0x164   : > { %vm1052_vm9 = vcmp.gt.f32.partialorder %v852_v25, 0.0  ;;  %v1077_v35 = vmul.f32 %v6326_v14, %v852_v25  ;;  %v6358_v39 = vmul.f32 %v6345_v29, %v1096_v30  ;;  %v941_v28 = vadd.f32 %v6342_v27, %v6332_v19 }
 0x165   : > { %vm1053_vm10 = vcmp.gt.f32.partialorder %v854_v32, 0.0  ;;  %v1078_v36 = vmul.f32 %v6326_v14, %v854_v32  ;;  %v857_v37 = vpop.f32.mrb[4].mxu0  ;;  %10265 = vst [vmem:[#allocation20_spill] sm:$0xff] %v6355_v38  ;;  %v6361_v42 = vpop.f32.mrb[4].mxu1  ;;  %v6420_v30 = vsel %vm721_vm1, 1.0, %v9980_v31 }
 0x166   : > { %10266 = vst [vmem:[#allocation21_spill] sm:$0xff] %v6358_v39  ;;  %v858_v40 = vadd.f32 %v857_v37, %v6348_v33  ;;  %v859_v41 = vpop.f32.mrb[5].mxu0  ;;  %v1101_v43 = vsel %vm1052_vm9, %v852_v25, %v1077_v35  ;;  %v6363_v45 = vpop.f32.mrb[5].mxu1  ;;  %v5383_v52 = vpack.i.bf16 %v6358_v39, %v6355_v38  ;;  %10271 = vst [vmem:[#allocation26_spill] sm:$0xff] %v6420_v30  ;;  %v6423_v35 = vsel %vm718_vm3, 1.0, %v9980_v31 }
 0x167   : > { %v1102_v44 = vsel %vm1053_vm10, %v854_v32, %v1078_v36  ;;  %v860_v47 = vadd.f32 %v859_v41, %v6348_v33  ;;  %v6369_v50 = vmul.f32 %v6339_v24, %v1101_v43  ;;  %10272 = vst [vmem:[#allocation27_spill] sm:$0xff] %v6423_v35  ;;  %v701_v41 = vadd.s32 %v6318_v8, %v694_v21 }
 0x168   : > { %vm1058_vm11 = vcmp.gt.f32.partialorder %v858_v40, 0.0  ;;  %v1083_v46 = vmul.f32 %v6326_v14, %v858_v40  ;;  %v6372_v51 = vmul.f32 %v6345_v29, %v1102_v44  ;;  %5384 = vrot.lane.b32.xlu0 %v5383_v52, %s5973_s25  ;;  %v1097_v52 = vsel %vm1048_vm7, %v935_v13, %v1073_v26 }
 0x169   : > { %v863_v48 = vpop.f32.mrb[6].mxu0  ;;  %10267 = vst [vmem:[#allocation22_spill] sm:$0xff] %v6369_v50  ;;  %v6376_v54 = vpop.f32.mrb[6].mxu1  ;;  %vm1059_vm12 = vcmp.gt.f32.partialorder %v860_v47, 0.0  ;;  %v1084_v57 = vmul.f32 %v6326_v14, %v860_v47  ;;  %v947_v55 = vadd.f32 %v6361_v42, %v6348_v33  ;;  %vm1054_vm9 = vcmp.gt.f32.partialorder %v941_v28, 0.0 }
 0x16a   : > { %10268 = vst [vmem:[#allocation23_spill] sm:$0xff] %v6372_v51  ;;  %v865_v53 = vpop.f32.mrb[7].mxu0  ;;  %v1107_v56 = vsel %vm1058_vm11, %v858_v40, %v1083_v46  ;;  %v6380_v58 = vpop.f32.mrb[7].mxu1  ;;  %v5388_v0 = vpack.i.bf16 %v6372_v51, %v6369_v50  ;;  %v864_v6 = vadd.f32 %v863_v48, %v6395_v3  ;;  %v953_v61 = vadd.f32 %v6376_v54, %v6395_v3 }
 0x16b   : > { %v1108_v59 = vsel %vm1059_vm12, %v860_v47, %v1084_v57  ;;  %v6387_v62 = vmul.f32 %v6339_v24, %v1107_v56  ;;  %v866_v9 = vadd.f32 %v865_v53, %v6395_v3  ;;  %v695_v47 = vadd.s32 512, %v6316_v7 }
 0x16c   : > { %v6390_v63 = vmul.f32 %v6345_v29, %v1108_v59  ;;  %5389 = vrot.lane.b32.xlu1 %v5388_v0, %s5973_s25  ;;  %v1089_v22 = vmul.f32 %v6326_v14, %v864_v6  ;;  %vm1064_vm4 = vcmp.gt.f32.partialorder %v864_v6, 0.0  ;;  %v1079_v53 = vmul.f32 %v6326_v14, %v941_v28 }
 0x16d   : > { %v6383_v60 = vpop.f32.mrb[8].mxu0  ;;  %10269 = vst [vmem:[#allocation24_spill] sm:$0xff] %v6387_v62  ;;  %v1090_v23 = vmul.f32 %v6326_v14, %v866_v9  ;;  %vm1065_vm5 = vcmp.gt.f32.partialorder %v866_v9, 0.0  ;;  %v702_v2 = vadd.s32 %v6318_v8, %v695_v47  ;;  %vm1060_vm11 = vcmp.gt.f32.partialorder %v947_v55, 0.0 }
 0x16e   : > { %10270 = vst [vmem:[#allocation25_spill] sm:$0xff] %v6390_v63  ;;  %v1025_v1 = vpop.f32.mrb[9].mxu0  ;;  %v5393_v10 = vpack.i.bf16 %v6390_v63, %v6387_v62  ;;  %v1113_v43 = vsel %vm1064_vm4, %v864_v6, %v1089_v22  ;;  %v1103_v6 = vsel %vm1054_vm9, %v941_v28, %v1079_v53  ;;  %vm707_vm12 = vcmp.ge.s32.totalorder %v701_v41, 0 }
 0x16f   : > { %v1026_v4 = vadd.f32 %v1025_v1, %v6323_v11  ;;  %v1114_v44 = vsel %vm1065_vm5, %v866_v9, %v1090_v23  ;;  %v6440_v57 = vmul.f32 %v6339_v24, %v1113_v43  ;;  %v937_v1 = vadd.f32 %v6334_v20, %v6323_v11 }
 0x170   : > { %5394 = vrot.lane.b32.xlu1 %v5393_v10, %s5973_s25  ;;  %v6443_v7 = vmul.f32 %v6345_v29, %v1114_v44  ;;  %v1085_v9 = vmul.f32 %v6326_v14, %v947_v55  ;;  %v943_v20 = vadd.f32 %v6350_v34, %v6332_v19  ;;  %v1091_v13 = vmul.f32 %v6326_v14, %v953_v61 }
 0x171   : > { %v6399_v5 = vpop.f32.mrb[10].mxu0  ;;  %v1076_v15 = vmul.f32 %v6326_v14, %v1026_v4  ;;  %vm1051_vm2 = vcmp.gt.f32.partialorder %v1026_v4, 0.0  ;;  %10275 = vst [vmem:[#allocation30_spill] sm:$0xff] %v6440_v57  ;;  %vm713_vm13 = vcmp.lt.s32.totalorder %v701_v41, 2048  ;;  %vm1066_vm14 = vcmp.gt.f32.partialorder %v953_v61, 0.0 }
 0x172   : > { %v1031_v12 = vpop.f32.mrb[11].mxu0  ;;  %10276 = vst [vmem:[#allocation31_spill] sm:$0xff] %v6443_v7  ;;  %v5403_v8 = vpack.i.bf16 %v6443_v7, %v6440_v57  ;;  %v1109_v22 = vsel %vm1060_vm11, %v947_v55, %v1085_v9  ;;  %vm708_vm15 = vcmp.ge.s32.totalorder %v702_v2, 0  ;;  %vm714_vm0 = vcmp.lt.s32.totalorder %v702_v2, 2048 }
 0x173   : > { %v1032_v16 = vadd.f32 %v1031_v12, %v6332_v19  ;;  %v1100_v32 = vsel %vm1051_vm2, %v1026_v4, %v1076_v15  ;;  %v6458_v4 = vmul.f32 %v6423_v35, %v1097_v52  ;;  %v1030_v15 = vadd.f32 %v6399_v5, %v6332_v19  ;;  %vm6490_vm2 = vmand %vm707_vm12, %vm713_vm13 }
 0x174   : > { %v6432_v48 = vmul.f32 %v6420_v30, %v1100_v32  ;;  %v1024_v34 = vadd.f32 %v6383_v60, %v6323_v11  ;;  %vm1049_vm1 = vcmp.gt.f32.partialorder %v937_v1, 0.0  ;;  %v1074_v19 = vmul.f32 %v6326_v14, %v937_v1  ;;  %vm720_vm3 = vmand %vm708_vm15, %vm714_vm0 }
 0x175   : > { %v6410_v18 = vpop.f32.mrb[12].mxu0  ;;  %vm1057_vm6 = vcmp.gt.f32.partialorder %v1032_v16, 0.0  ;;  %v1082_v17 = vmul.f32 %v6326_v14, %v1032_v16  ;;  %10277 = vst [vmem:[#allocation32_spill] sm:$0xff] %v6458_v4  ;;  %v5413_v5 = vpack.i.bf16 %v6458_v4, %v6358_v39  ;;  %v1081_v26 = vmul.f32 %v6326_v14, %v1030_v15 }
 0x176   : > { %v1037_v25 = vpop.f32.mrb[13].mxu0  ;;  %10274 = vst [vmem:[#allocation29_spill] sm:$0xff] %v6432_v48  ;;  %v6498_v60 = vmul.f32 %v6423_v35, %v1109_v22  ;;  %v949_v28 = vadd.f32 %v6363_v45, %v6348_v33  ;;  %vm1056_vm4 = vcmp.gt.f32.partialorder %v1030_v15, 0.0  ;;  %vm1055_vm5 = vcmp.gt.f32.partialorder %v943_v20, 0.0 }
 0x177   : > { %v1106_v36 = vsel %vm1057_vm6, %v1032_v16, %v1082_v17  ;;  %v1038_v37 = vadd.f32 %v1037_v25, %v6348_v33  ;;  %v6475_v16 = vmul.f32 %v6423_v35, %v1103_v6  ;;  %v1080_v25 = vmul.f32 %v6326_v14, %v943_v20 }
 0x178   : > { %v6428_v46 = vmul.f32 %v6420_v30, %v1106_v36  ;;  %v1115_v17 = vsel %vm1066_vm14, %v953_v61, %v1091_v13  ;;  %10283 = vst [vmem:[#allocation36_spill] sm:$0xff] %v6498_v60  ;;  %v1075_v36 = vmul.f32 %v6326_v14, %v1024_v34  ;;  %v6513_v45 = vsel %vm6490_vm2, 1.0, %v9980_v31 }
 0x179   : > { %v1041_v40 = vpop.f32.mrb[14].mxu0  ;;  %vm1063_vm8 = vcmp.gt.f32.partialorder %v1038_v37, 0.0  ;;  %v1088_v49 = vmul.f32 %v6326_v14, %v1038_v37  ;;  %10280 = vst [vmem:[#allocation35_spill] sm:$0xff] %v6475_v16  ;;  %v5418_v32 = vpack.i.bf16 %v6475_v16, %v6372_v51  ;;  %10284 = vst [vmem:[#allocation37_spill] sm:$0xff] %v6513_v45  ;;  %v6516_v41 = vmul.f32 %v6423_v35, %v1115_v17  ;;  %v1396_v17 = vld [vmem:[%s10295_s5 + $0x58] sm:$0xff] }
 0x17a   : > { %10273 = vst [vmem:[#allocation28_spill] sm:$0xff] %v6428_v46  ;;  %v1043_v27 = vpop.f32.mrb[15].mxu0  ;;  %v6447_v59 = vpack.i.bf16 %v6428_v46, %v6432_v48  ;;  %v1042_v11 = vadd.f32 %v1041_v40, %v6395_v3  ;;  %v1036_v40 = vadd.f32 %v6410_v18, %v6348_v33  ;;  %vm1050_vm6 = vcmp.gt.f32.partialorder %v1024_v34, 0.0 }
 0x17b   : > { %v1044_v56 = vadd.f32 %v1043_v27, %v6395_v3  ;;  %v1112_v0 = vsel %vm1063_vm8, %v1038_v37, %v1088_v49  ;;  %v955_v37 = vadd.f32 %v6380_v58, %v6395_v3  ;;  %10285 = vst [vmem:[#allocation38_spill] sm:$0xff] %v6516_v41  ;;  %v5423_v43 = vpack.i.bf16 %v6369_v50, %v6355_v38 }
 0x17c   : > { %5399 = vrot.lane.b32.xlu0 %v6447_v59, %s5973_s25  ;;  %v6462_v54 = vmul.f32 %v6420_v30, %v1112_v0  ;;  %v1098_v44 = vsel %vm1049_vm1, %v937_v1, %v1074_v19  ;;  %v6523_v58 = vsel %vm720_vm3, 1.0, %v9980_v31  ;;  %v1105_v33 = vsel %vm1056_vm4, %v1030_v15, %v1081_v26  ;;  %v1397_v26 = vld [vmem:[%s10295_s5 + $0x60] sm:$0xff] }
 0x17d   : > { %vm1069_vm10 = vcmp.gt.f32.partialorder %v1044_v56, 0.0  ;;  %v1094_v42 = vmul.f32 %v6326_v14, %v1044_v56  ;;  %10286 = vst [vmem:[#allocation39_spill] sm:$0xff] %v6523_v58  ;;  %v1093_v3 = vmul.f32 %v6326_v14, %v1042_v11  ;;  %v1104_v18 = vsel %vm1055_vm5, %v943_v20, %v1080_v25  ;;  %v1395_v25 = vld [vmem:[%s10295_s5 + $0x50] sm:$0xff] }
 0x17e   : > { %10278 = vst [vmem:[#allocation33_spill] sm:$0xff] %v6462_v54  ;;  %vm1061_vm7 = vcmp.gt.f32.partialorder %v949_v28, 0.0  ;;  %vm1068_vm8 = vcmp.gt.f32.partialorder %v1042_v11, 0.0  ;;  %v5428_v27 = vpack.i.bf16 %v6498_v60, %v6390_v63  ;;  %v1086_v47 = vmul.f32 %v6326_v14, %v949_v28 }
 0x17f   : > { %v1118_v10 = vsel %vm1069_vm10, %v1044_v56, %v1094_v42  ;;  %v1099_v49 = vsel %vm1050_vm6, %v1024_v34, %v1075_v36  ;;  %v1092_v52 = vmul.f32 %v6326_v14, %v955_v37  ;;  %v1087_v53 = vmul.f32 %v6326_v14, %v1036_v40  ;;  %v1385_v36 = vld [vmem:[%s10295_s5] sm:$0xff] }
 0x180   : > { %v6465_v12 = vmul.f32 %v6420_v30, %v1118_v10  ;;  %5404 = vrot.lane.b32.xlu0 %v5403_v8, %s5973_s25  ;;  %v6533_v55 = vmul.f32 %v6523_v58, %v1105_v33  ;;  %vm1067_vm9 = vcmp.gt.f32.partialorder %v955_v37, 0.0  ;;  %vm1062_vm10 = vcmp.gt.f32.partialorder %v1036_v40, 0.0  ;;  %v1390_v33 = vld [vmem:[%s10295_s5 + $0x28] sm:$0xff] }
 0x181   : > { %v5433_v56 = vpack.i.bf16 %v6516_v41, %v6443_v7  ;;  %v1117_v61 = vsel %vm1068_vm8, %v1042_v11, %v1093_v3  ;;  %v6539_v0 = vmul.f32 %v6513_v45, %v1098_v44  ;;  %v6542_v42 = vmul.f32 %v6513_v45, %v1104_v18  ;;  %v1398_v11 = vld [vmem:[%s10295_s5 + $0x68] sm:$0xff]  ;;  %v1389_v44 = vld [vmem:[%s10295_s5 + $0x20] sm:$0xff]  ;;  %v1391_v3 = vld [vmem:[%s10295_s5 + $0x30] sm:$0xff] }
 0x182   : > { %10279 = vst [vmem:[#allocation34_spill] sm:$0xff] %v6465_v12  ;;  %v6480_v21 = vpack.i.bf16 %v6465_v12, %v6462_v54  ;;  %10287 = vst [vmem:[#allocation40_spill] sm:$0xff] %v6533_v55  ;;  %v6545_v1 = vmul.f32 %v6523_v58, %v1099_v49  ;;  %v5438_v14 = vpack.i.bf16 %v6440_v57, %v6387_v62  ;;  %v1392_v18 = vld [vmem:[%s10295_s5 + $0x38] sm:$0xff]  ;;  %vm1219_vm11 = vcmask 7168  }
 0x183   : > { %10288 = vst [vmem:[#allocation41_spill] sm:$0xff] %v6539_v0  ;;  %10289 = vst [vmem:[#allocation42_spill] sm:$0xff] %v6542_v42  ;;  %v1110_v2 = vsel %vm1061_vm7, %v949_v28, %v1086_v47  ;;  %v1116_v6 = vsel %vm1067_vm9, %v955_v37, %v1092_v52  ;;  %v1111_v9 = vsel %vm1062_vm10, %v1036_v40, %v1087_v53  ;;  %v1399_v28 = vld [vmem:[%s10295_s5 + $0x70] sm:$0xff]  ;;  %v1386_v37 = vld [vmem:[%s10295_s5 + $0x8] sm:$0xff]  ;;  %vm1316_vm12 = vcmask 1039360  }
 0x184   : > { %5409 = vrot.lane.b32.xlu1 %v6480_v21, %s5973_s25  ;;  %5414 = vrot.lane.b32.xlu0 %v5413_v5, %s5974_s16  ;;  %10290 = vst [vmem:[#allocation43_spill] sm:$0xff] %v6545_v1  ;;  %v6552_v10 = vmul.f32 %v6523_v58, %v1117_v61  ;;  %v5443_v8 = vpack.i.bf16 %v6533_v55, %v6545_v1  ;;  %v1387_v40 = vld [vmem:[%s10295_s5 + $0x10] sm:$0xff]  ;;  %vm1481_vm13 = vcmask 785408  }
 0x185   : > { %v6558_v20 = vmul.f32 %v6513_v45, %v1110_v2  ;;  %v6561_v13 = vmul.f32 %v6513_v45, %v1116_v6  ;;  %v6564_v15 = vmul.f32 %v6523_v58, %v1111_v9  ;;  %v5448_v22 = vpack.i.bf16 %v6542_v42, %v6539_v0 }
 0x186   : > { %10291 = vst [vmem:[#allocation44_spill] sm:$0xff] %v6552_v10  ;;  %v5483_v5 = vpack.i.bf16 %v6475_v16, %v6458_v4  ;;  %v5488_v23 = vpack.i.bf16 %v6516_v41, %v6498_v60 }
 0x187   : > { %10292 = vst [vmem:[#allocation45_spill] sm:$0xff] %v6558_v20  ;;  %10293 = vst [vmem:[#allocation46_spill] sm:$0xff] %v6561_v13  ;;  %v5453_v34 = vpack.i.bf16 %v6552_v10, %v6564_v15  ;;  %v5458_v19 = vpack.i.bf16 %v6561_v13, %v6558_v20 }
 0x188   : > { %5419 = vrot.lane.b32.xlu1 %v5418_v32, %s5974_s16  ;;  %5424 = vrot.lane.b32.xlu0 %v5423_v43, %s5974_s16  ;;  %10294 = vst [vmem:[#allocation47_spill] sm:$0xff] %v6564_v15  ;;  %v1400_v32 = vld [vmem:[%s10295_s5 + $0x78] sm:$0xff] }
 0x189   : > { %v1388_v43 = vld [vmem:[%s10295_s5 + $0x18] sm:$0xff] }
 0x18c   : > { %5429 = vrot.lane.b32.xlu1 %v5428_v27, %s5974_s16  ;;  %5434 = vrot.lane.b32.xlu0 %v5433_v56, %s5974_s16 }
 0x190   : > { %5439 = vrot.lane.b32.xlu1 %v5438_v14, %s5974_s16  ;;  %5444 = vrot.lane.b32.xlu0 %v5443_v8, %s5973_s25 }
 0x194   : > { %5449 = vrot.lane.b32.xlu1 %v5448_v22, %s5973_s25  ;;  %5454 = vrot.lane.b32.xlu0 %v5453_v34, %s5973_s25 }
 0x198   : > { %5459 = vrot.lane.b32.xlu1 %v5458_v19, %s5973_s25  ;;  %5464 = vrot.lane.b32.xlu0 %v6447_v59, %s5974_s16  ;;  %v1393_v59 = vld [vmem:[%s10295_s5 + $0x40] sm:$0xff] }
 0x19c   : > { %5469 = vrot.lane.b32.xlu1 %v5443_v8, %s5974_s16  ;;  %5474 = vrot.lane.b32.xlu0 %v6480_v21, %s5974_s16  ;;  %v1394_v21 = vld [vmem:[%s10295_s5 + $0x48] sm:$0xff] }
 0x1a0   : > { %5479 = vrot.lane.b32.xlu1 %v5453_v34, %s5974_s16  ;;  %5484 = vrot.lane.b32.xlu0 %v5483_v5, %s5973_s25 }
 0x1a4   : > { %5489 = vrot.lane.b32.xlu1 %v5488_v23, %s5973_s25  ;;  %5494 = vrot.lane.b32.xlu0 %v5448_v22, %s5974_s16 }
 0x1a8   : > { %5499 = vrot.lane.b32.xlu1 %v5458_v19, %s5974_s16  ;;  %1443 = vperm.xlu0 %5381, %v1393_v59  }
 0x1ac   : > { %1448 = vperm.xlu1 %5382, %v1394_v21   ;;  %1453 = vperm.xlu0 %5381, %v1395_v25  }
 0x1b0   : > { %1458 = vperm.xlu1 %5382, %v1396_v17   ;;  %1463 = vperm.xlu0 %5381, %v1397_v26  }
 0x1b4   : > { %1468 = vperm.xlu1 %5382, %v1398_v11   ;;  %1473 = vperm.xlu0 %5381, %v1399_v28  }
 0x1b8   : > { %1478 = vperm.xlu1 %5382, %v1400_v32   ;;  %1403 = vperm.xlu0 %5381, %v1385_v36  }
 0x1bc   : > { %1408 = vperm.xlu1 %5382, %v1386_v37   ;;  %1413 = vperm.xlu0 %5381, %v1387_v40  }
 0x1c0   : > { %1418 = vperm.xlu1 %5382, %v1388_v43   ;;  %1423 = vperm.xlu0 %5381, %v1389_v44  }
 0x1c4   : > { %1428 = vperm.xlu1 %5382, %v1390_v33   ;;  %1433 = vperm.xlu0 %5381, %v1391_v3  }
 0x1c8   : > { %1438 = vperm.xlu1 %5382, %v1392_v18  }
 0x1da   : > { %v6638_v27 = vpop.permute.xlu0 %5384 }
 0x1db   : > { %v9974_v47 = vunpack.i.h.bf16 %v6638_v27  ;;  %v5386_v49 = vunpack.i.l.bf16 %v6638_v27 }
 0x1dd   : > { %v1220_v61 = vsel %vm1219_vm11, %v5386_v49, %v9974_v47 }
 0x1de   : > { %v6642_v52 = vpop.permute.xlu1 %5389 }
 0x1df   : > { %v9975_v53 = vunpack.i.h.bf16 %v6642_v52  ;;  %v5391_v56 = vunpack.i.l.bf16 %v6642_v52 }
 0x1e1   : > { %v1225_v14 = vsel %vm1219_vm11, %v5391_v56, %v9975_v53 }
 0x1e2   : > { %v4930_v2 = vpack.c.bf16 %v1225_v14, %v1220_v61  ;;  %v6652_v6 = vpop.permute.xlu1 %5394 }
 0x1e3   : > { %v9973_v34 = vunpack.i.h.bf16 %v6652_v6  ;;  %v5396_v19 = vunpack.i.l.bf16 %v6652_v6 }
 0x1e4   : > { %4931 = vmatprep.subr.bf16.mxu0 %v4930_v2  ;;  %5266 = vmatprep.subr.bf16.mxu1 %v4930_v2 }
 0x1e5   : > { %v1230_v32 = vsel %vm1219_vm11, %v5396_v19, %v9973_v34 }
 0x1ee   : > { %v6654_v9 = vpop.permute.xlu0 %5399 }
 0x1ef   : > { %v5402_v8 = vunpack.i.h.bf16 %v6654_v9  ;;  %v5401_v22 = vunpack.i.l.bf16 %v6654_v9 }
 0x1f1   : > { %v1265_v5 = vsel %vm1219_vm11, %v5402_v8, %v5391_v56  ;;  %v1264_v23 = vsel %vm1219_vm11, %v5401_v22, %v5386_v49  ;;  %v4938_v56 = vpack.c.bf16 %v6372_v51, %v6358_v39 }
 0x1f2   : > { %v6666_v59 = vpop.permute.xlu0 %5404  ;;  %v4932_v21 = vpack.c.bf16 %v1265_v5, %v1264_v23 }
 0x1f3   : > { %v9971_v25 = vunpack.i.h.bf16 %v6666_v59  ;;  %v5406_v17 = vunpack.i.l.bf16 %v6666_v59 }
 0x1f4   : > { %4933 = vmatpush1.bf16.msra.mxu0 %v4932_v21  ;;  %5272 = vmatpush1.bf16.msra.mxu1 %v4932_v21  ;;  %v4940_v21 = vpack.c.bf16 %v6369_v50, %v6355_v38 }
 0x1f5   : > { %v1235_v36 = vsel %vm1219_vm11, %v5406_v17, %v9971_v25 }
 0x1f6   : > { %v6670_v26 = vpop.permute.xlu1 %5409  ;;  %v6680_v37 = vpop.permute.xlu0 %5414  ;;  %v4934_v40 = vpack.c.bf16 %v1235_v36, %v1230_v32  ;;  %v4942_v36 = vpack.c.bf16 %v6443_v7, %v6390_v63 }
 0x1f7   : > { %v9982_v11 = vunpack.i.h.bf16 %v6670_v26  ;;  %v5411_v28 = vunpack.i.l.bf16 %v6670_v26  ;;  %v9976_v14 = vunpack.i.h.bf16 %v6680_v37  ;;  %v5416_v2 = vunpack.i.l.bf16 %v6680_v37 }
 0x1f8   : > { %4935 = vmatprep.subr.bf16.mxu0 %v4934_v40  ;;  %5267 = vmatprep.subr.bf16.mxu1 %v4934_v40 }
 0x1f9   : > { %v1266_v43 = vsel %vm1219_vm11, %v5411_v28, %v5396_v19  ;;  %v1267_v44 = vsel %vm1219_vm11, %v9982_v11, %v5406_v17 }
 0x1fa   : > { %v6688_v33 = vpop.permute.xlu1 %5419  ;;  %v4936_v3 = vpack.c.bf16 %v1267_v44, %v1266_v43  ;;  %v6694_v61 = vpop.permute.xlu0 %5424 }
 0x1fb   : > { %v9972_v18 = vunpack.i.h.bf16 %v6688_v33  ;;  %v5421_v49 = vunpack.i.l.bf16 %v6688_v33  ;;  %v9977_v19 = vunpack.i.h.bf16 %v6694_v61  ;;  %v9978_v5 = vunpack.i.l.bf16 %v6694_v61 }
 0x1fc   : > { %4937 = vmatpush1.bf16.msra.mxu0 %v4936_v3  ;;  %5273 = vmatpush1.bf16.msra.mxu1 %v4936_v3 }
 0x1fd   : > { %4939 = vmatprep.subr.bf16.mxu0 %v4938_v56  ;;  %5268 = vmatprep.subr.bf16.mxu1 %v4938_v56  ;;  %v1323_v40 = vsel %vm1316_vm12, %v5421_v49, %v9972_v18  ;;  %v1318_v56 = vsel %vm1316_vm12, %v5416_v2, %v9976_v14  ;;  %v1322_v25 = vsel %vm1316_vm12, %v9977_v19, %v5421_v49 }
 0x1fe   : > { %v6700_v23 = vpop.permute.xlu1 %5429  ;;  %v6711_v43 = vpop.permute.xlu0 %5434  ;;  %v1317_v18 = vsel %vm1316_vm12, %v9978_v5, %v5416_v2  ;;  %v4946_v47 = vpack.c.bf16 %v1323_v40, %v1318_v56 }
 0x1ff   : > { %v9979_v17 = vunpack.i.h.bf16 %v6700_v23  ;;  %v5431_v32 = vunpack.i.l.bf16 %v6700_v23  ;;  %v9983_v44 = vunpack.i.h.bf16 %v6711_v43  ;;  %v5436_v3 = vunpack.i.l.bf16 %v6711_v43 }
 0x200   : > { %4941 = vmatpush1.bf16.msra.mxu0 %v4940_v21  ;;  %5274 = vmatpush1.bf16.msra.mxu1 %v4940_v21  ;;  %v4944_v21 = vpack.c.bf16 %v6440_v57, %v6387_v62  ;;  %v4948_v31 = vpack.c.bf16 %v1322_v25, %v1317_v18 }
 0x201   : > { %4943 = vmatprep.subr.bf16.mxu0 %v4942_v36  ;;  %5269 = vmatprep.subr.bf16.mxu1 %v4942_v36  ;;  %v1328_v14 = vsel %vm1316_vm12, %v5431_v32, %v9979_v17  ;;  %v1333_v49 = vsel %vm1316_vm12, %v5436_v3, %v9983_v44 }
 0x202   : > { %v6724_v34 = vpop.permute.xlu1 %5439  ;;  %v5445_v19 = vpop.permute.xlu0 %5444  ;;  %v4950_v11 = vpack.c.bf16 %v1333_v49, %v1328_v14 }
 0x203   : > { %v9984_v36 = vunpack.i.h.bf16 %v6724_v34  ;;  %v9985_v53 = vunpack.i.l.bf16 %v6724_v34  ;;  %v5447_v2 = vunpack.i.h.bf16 %v5445_v19  ;;  %v5446_v5 = vunpack.i.l.bf16 %v5445_v19 }
 0x204   : > { %4945 = vmatpush1.bf16.msra.mxu0 %v4944_v21  ;;  %5275 = vmatpush1.bf16.msra.mxu1 %v4944_v21 }
 0x205   : > { %4947 = vmatprep.subr.bf16.mxu0 %v4946_v47  ;;  %5270 = vmatprep.subr.bf16.mxu1 %v4946_v47  ;;  %v1327_v40 = vsel %vm1316_vm12, %v9985_v53, %v5431_v32  ;;  %v1332_v56 = vsel %vm1316_vm12, %v9984_v36, %v5436_v3  ;;  %v1224_v47 = vsel %vm1219_vm11, %v5446_v5, %v5401_v22 }
 0x206   : > { %v6742_v17 = vpop.permute.xlu1 %5449  ;;  %v1229_v19 = vsel %vm1219_vm11, %v5447_v2, %v5402_v8  ;;  %v5455_v32 = vpop.permute.xlu0 %5454  ;;  %v4952_v18 = vpack.c.bf16 %v1332_v56, %v1327_v40  ;;  %v10297_v40 = vunpack.i.h.bf16 %v6670_v26 }
 0x207   : > { %v9988_v44 = vunpack.i.h.bf16 %v6742_v17  ;;  %v9989_v21 = vunpack.i.l.bf16 %v6742_v17  ;;  %v5457_v3 = vunpack.i.h.bf16 %v5455_v32  ;;  %v5456_v36 = vunpack.i.l.bf16 %v5455_v32 }
 0x208   : > { %4949 = vmatpush1.bf16.msra.mxu0 %v4948_v31  ;;  %5276 = vmatpush1.bf16.msra.mxu1 %v4948_v31  ;;  %v4978_v14 = vpack.c.bf16 %v1229_v19, %v1224_v47 }
 0x209   : > { %4951 = vmatprep.subr.bf16.mxu0 %v4950_v11  ;;  %5271 = vmatprep.subr.bf16.mxu1 %v4950_v11  ;;  %v1223_v49 = vsel %vm1219_vm11, %v9989_v21, %v5446_v5  ;;  %v1228_v9 = vsel %vm1219_vm11, %v9988_v44, %v5447_v2  ;;  %v6767_v11 = vld [vmem:[%s10296_s18] sm:$0xff]  ;;  %v6772_v5 = vld [vmem:[%s10296_s18 + $0x30] sm:$0xff]  ;;  %v1234_v2 = vsel %vm1219_vm11, %v5456_v36, %v5411_v28  ;;  %v10299_v21 = vunpack.i.l.bf16 %v6694_v61 }
 0x20a   : > { %v6752_v25 = vpop.permute.xlu1 %5459  ;;  %v6762_v22 = vpop.permute.xlu0 %5464  ;;  %v1239_v56 = vsel %vm1219_vm11, %v5457_v3, %v10297_v40  ;;  %v4980_v19 = vpack.c.bf16 %v1228_v9, %v1223_v49  ;;  %v4986_v40 = vpack.c.bf16 %v6428_v46, %v6432_v48  ;;  %v4992_v44 = vpack.c.bf16 %v6552_v10, %v6564_v15 }
 0x20b   : > { %v9986_v8 = vunpack.i.h.bf16 %v6752_v25  ;;  %v9987_v31 = vunpack.i.l.bf16 %v6752_v25  ;;  %v4982_v26 = vpack.c.bf16 %v1239_v56, %v1234_v2  ;;  %v5466_v49 = vunpack.i.l.bf16 %v6762_v22 }
 0x20c   : > { %4953 = vmatpush1.bf16.msra.mxu0 %v4952_v18  ;;  %5277 = vmatpush1.bf16.msra.mxu1 %v4952_v18  ;;  %v5467_v56 = vunpack.i.h.bf16 %v6762_v22  ;;  %v4988_v22 = vpack.c.bf16 %v6533_v55, %v6545_v1  ;;  %v10301_v48 = vunpack.i.h.bf16 %v6638_v27  ;;  %v10306_v10 = vunpack.i.h.bf16 %v6666_v59 }
 0x20d   : > { %4979 = vmatprep.subr.bf16.mxu1 %v4978_v14  ;;  %v1233_v32 = vsel %vm1219_vm11, %v9987_v31, %v5456_v36  ;;  %v1238_v18 = vsel %vm1219_vm11, %v9986_v8, %v5457_v3  ;;  %v10298_v14 = vmov 0.0   ;;  %v6798_v36 = vld [vmem:[%s10296_s18 + $0x8] sm:$0xff]  ;;  %v6803_v3 = vld [vmem:[%s10296_s18 + $0x38] sm:$0xff]  ;;  %v4990_v31 = vpack.c.bf16 %v6465_v12, %v6462_v54 }
 0x20e   : > { %v6780_v47 = vpop.permute.xlu1 %5469  ;;  %v6792_v28 = vpop.permute.xlu0 %5474  ;;  %v4984_v2 = vpack.c.bf16 %v1238_v18, %v1233_v32  ;;  %v6825_v32 = vld [vmem:[%s10296_s18 + $0x40] sm:$0xff]  ;;  %v1365_v46 = vsel %vm1316_vm12, %v5466_v49, %v10299_v21  ;;  %v10302_v21 = vunpack.i.l.bf16 %v6742_v17  ;;  %v10304_v12 = vunpack.i.h.bf16 %v6694_v61 }
 0x20f   : > { %4804 = vmatmul.mubr.msk.f32.vlgmr.msra.gmra.mrb[16].mxu0 %vm1481_vm13, %v6767_v11  ;;  %4810 = vmatmul.mubr.msk.f32.vlgmr.msra.gmra.mrb[8].mxu1 %vm1481_vm13, %v6772_v5  ;;  %v10307_v61 = vunpack.i.l.bf16 %v6752_v25  ;;  %v10308_v7 = vunpack.i.h.bf16 %v6752_v25  ;;  %v10310_v59 = vunpack.i.h.bf16 %v6780_v47 }
 0x210   : > { %4981 = vmatpush1.bf16.msra.mxu1 %v4980_v19  ;;  %1600 = vmatprep.mubr.f32.mxu0 %v10298_v14 }
 0x211   : > { %4983 = vmatprep.subr.bf16.mxu1 %v4982_v26  ;;  %1636 = vmatprep.mubr.f32.mxu1 %v10298_v14  ;;  %v6820_v26 = vld [vmem:[%s10296_s18 + $0x10] sm:$0xff] }
 0x212   : > { %v6807_v9 = vpop.permute.xlu1 %5479  ;;  %v5485_v19 = vpop.permute.xlu0 %5484 }
 0x213   : > { %4805 = vmatmul.mubr.msk.f32.gmra.mrb[18].mxu0 %vm1481_vm13, %v6798_v36  ;;  %4811 = vmatmul.mubr.msk.f32.gmra.mrb[10].mxu1 %vm1481_vm13, %v6803_v3  ;;  %v5487_v18 = vunpack.i.h.bf16 %v5485_v19  ;;  %v5486_v53 = vunpack.i.l.bf16 %v5485_v19  ;;  %v5481_v25 = vunpack.i.l.bf16 %v6807_v9 }
 0x214   : > { %4985 = vmatpush1.bf16.msra.mxu1 %v4984_v2  ;;  %1606 = vmatprep.mubr.f32.mxu0 %v10298_v14 }
 0x215   : > { %4987 = vmatprep.subr.bf16.mxu1 %v4986_v40  ;;  %1642 = vmatprep.mubr.f32.mxu1 %v10298_v14  ;;  %v10300_v40 = vunpack.i.h.bf16 %v6642_v52  ;;  %v1221_v55 = vsel %vm1219_vm11, %v10301_v48, %v5486_v53  ;;  %v1222_v52 = vsel %vm1219_vm11, %v5486_v53, %v10302_v21  ;;  %v6859_v48 = vld [vmem:[%s10296_s18 + $0x18] sm:$0xff]  ;;  %v1366_v53 = vsel %vm1316_vm12, %v5467_v56, %v10304_v12 }
 0x216   : > { %v5490_v8 = vpop.permute.xlu1 %5489 }
 0x217   : > { %v1226_v19 = vsel %vm1219_vm11, %v10300_v40, %v5487_v18  ;;  %v5492_v2 = vunpack.i.h.bf16 %v5490_v8  ;;  %v5491_v1 = vunpack.i.l.bf16 %v5490_v8  ;;  %4806 = vmatmul.mubr.msk.f32.gmra.mrb[20].mxu0 %vm1481_vm13, %v6820_v26  ;;  %4812 = vmatmul.mubr.msk.f32.gmra.mrb[12].mxu1 %vm1481_vm13, %v6825_v32  ;;  %v10303_v40 = vunpack.i.h.bf16 %v6742_v17  ;;  %v6864_v8 = vld [vmem:[%s10296_s18 + $0x48] sm:$0xff] }
 0x218   : > { %4989 = vmatpush1.bf16.msra.mxu1 %v4988_v22  ;;  %1612 = vmatprep.mubr.f32.mxu0 %v10298_v14  ;;  %v5477_v17 = vunpack.i.h.bf16 %v6792_v28  ;;  %v10305_v22 = vunpack.i.h.bf16 %v6652_v6  ;;  %v10309_v6 = vunpack.i.l.bf16 %v6780_v47 }
 0x219   : > { %v1227_v27 = vsel %vm1219_vm11, %v5487_v18, %v10303_v40  ;;  %v5476_v18 = vunpack.i.l.bf16 %v6792_v28  ;;  %v4956_v40 = vpack.c.bf16 %v1226_v19, %v1221_v55  ;;  %4991 = vmatprep.subr.bf16.mxu1 %v4990_v31  ;;  %1648 = vmatprep.mubr.f32.mxu1 %v10298_v14  ;;  %v1236_v54 = vsel %vm1219_vm11, %v10306_v10, %v5492_v2  ;;  %v5495_v19 = vpop.permute.xlu0 %5494 }
 0x21a   : > { %v1231_v21 = vsel %vm1219_vm11, %v10305_v22, %v5491_v1  ;;  %v4954_v15 = vpack.c.bf16 %v1227_v27, %v1222_v52  ;;  %v1232_v12 = vsel %vm1219_vm11, %v5491_v1, %v10307_v61  ;;  %v1237_v28 = vsel %vm1219_vm11, %v5492_v2, %v10308_v7  ;;  %v6926_v22 = vld [vmem:[%s10296_s18 + $0x28] sm:$0xff] }
 0x21b   : > { %v1321_v55 = vsel %vm1316_vm12, %v10309_v6, %v5466_v49  ;;  %4807 = vmatmul.mubr.msk.f32.gmra.mrb[22].mxu0 %vm1481_vm13, %v6859_v48  ;;  %4813 = vmatmul.mubr.msk.f32.gmra.mrb[14].mxu1 %vm1481_vm13, %v6864_v8  ;;  %v4994_v10 = vpack.c.bf16 %v1366_v53, %v1365_v46  ;;  %v1326_v31 = vsel %vm1316_vm12, %v10310_v59, %v5467_v56  ;;  %v5482_v1 = vunpack.i.h.bf16 %v6807_v9  ;;  %v6899_v49 = vld [vmem:[%s10296_s18 + $0x20] sm:$0xff]  ;;  %v6904_v46 = vld [vmem:[%s10296_s18 + $0x50] sm:$0xff] }
 0x21c   : > { %4955 = vmatprep.subr.bf16.mxu0 %v4954_v15  ;;  %v4958_v7 = vpack.c.bf16 %v1237_v28, %v1232_v12  ;;  %4993 = vmatpush1.bf16.msra.mxu1 %v4992_v44  ;;  %v4960_v2 = vpack.c.bf16 %v1236_v54, %v1231_v21  ;;  %v10311_v56 = vunpack.i.l.bf16 %v6724_v34  ;;  %v10312_v15 = vunpack.i.h.bf16 %v6724_v34 }
 0x21d   : > { %4957 = vmatpush1.bf16.msra.mxu0 %v4956_v40  ;;  %4995 = vmatprep.subr.bf16.mxu1 %v4994_v10  ;;  %v4962_v54 = vpack.c.bf16 %v6542_v42, %v6539_v0  ;;  %v4996_v52 = vpack.c.bf16 %v1326_v31, %v1321_v55  ;;  %v1331_v27 = vsel %vm1316_vm12, %v5481_v25, %v5476_v18  ;;  %v5497_v21 = vunpack.i.h.bf16 %v5495_v19 }
 0x21e   : > { %v1367_v9 = vsel %vm1316_vm12, %v5476_v18, %v10311_v56  ;;  %v1368_v44 = vsel %vm1316_vm12, %v5477_v17, %v10312_v15  ;;  %4959 = vmatprep.subr.bf16.mxu0 %v4958_v7  ;;  %1618 = vmatprep.mubr.f32.mxu0 %v10298_v14  ;;  %v1336_v53 = vsel %vm1316_vm12, %v5482_v1, %v5477_v17  ;;  %v5496_v40 = vunpack.i.l.bf16 %v5495_v19  ;;  %v6931_v18 = vld [vmem:[%s10296_s18 + $0x58] sm:$0xff]  ;;  %v5500_v17 = vpop.permute.xlu1 %5499 }
 0x21f   : > { %1654 = vmatprep.mubr.f32.mxu1 %v10298_v14  ;;  %4808 = vmatmul.mubr.msk.f32.gmra.mrb[24].mxu0 %vm1481_vm13, %v6899_v49  ;;  %v4998_v34 = vpack.c.bf16 %v1368_v44, %v1367_v9  ;;  %v4964_v61 = vpack.c.bf16 %v6475_v16, %v6458_v4  ;;  %v5000_v12 = vpack.c.bf16 %v1336_v53, %v1331_v27  ;;  %v5502_v6 = vunpack.i.h.bf16 %v5500_v17 }
 0x220   : > { %4814 = vmatmul.mubr.msk.f32.gmra.mrb[16].mxu1 %vm1481_vm13, %v6904_v46  ;;  %1624 = vmatprep.mubr.f32.mxu0 %v10298_v14  ;;  %v4966_v28 = vpack.c.bf16 %v6561_v13, %v6558_v20  ;;  %v5501_v55 = vunpack.i.l.bf16 %v5500_v17  ;;  %v10313_v10 = vunpack.i.l.bf16 %v6780_v47  ;;  %v10314_v31 = vunpack.i.h.bf16 %v6780_v47 }
 0x221   : > { %4961 = vmatpush1.bf16.msra.mxu0 %v4960_v2  ;;  %4997 = vmatpush1.bf16.msra.mxu1 %v4996_v52  ;;  %v6952_v2 = vld [vmem:[%s10296_s18 + $0x60] sm:$0xff]  ;;  %v4968_v56 = vpack.c.bf16 %v6516_v41, %v6498_v60  ;;  %v10315_v9 = vunpack.i.h.bf16 %v6688_v33  ;;  %v10316_v44 = vunpack.i.h.bf16 %v6680_v37  ;;  %v1335_v52 = vsel %vm1316_vm12, %v5502_v6, %v5482_v1  ;;  %v6971_v33 = vld [vmem:[%s10296_s18 + $0x68] sm:$0xff]  ;;  %v6985_v1 = vld [vmem:[%s10296_s18 + $0x70] sm:$0xff] }
 0x222   : > { %4963 = vmatprep.subr.bf16.mxu0 %v4962_v54  ;;  %4999 = vmatprep.subr.bf16.mxu1 %v4998_v34  ;;  %v1320_v59 = vsel %vm1316_vm12, %v5496_v40, %v10313_v10  ;;  %v1325_v7 = vsel %vm1316_vm12, %v5497_v21, %v10314_v31  ;;  %v1330_v54 = vsel %vm1316_vm12, %v5501_v55, %v5481_v25  ;;  %v10317_v27 = vunpack.i.h.bf16 %v6700_v23 }
 0x223   : > { %1660 = vmatprep.mubr.f32.mxu1 %v10298_v14  ;;  %4809 = vmatmul.mubr.msk.f32.gmra.mrb[26].mxu0 %vm1481_vm13, %v6926_v22  ;;  %v1324_v15 = vsel %vm1316_vm12, %v10315_v9, %v5497_v21  ;;  %v1319_v47 = vsel %vm1316_vm12, %v10316_v44, %v5496_v40  ;;  %v4970_v19 = vpack.c.bf16 %v1325_v7, %v1320_v59  ;;  %v10318_v34 = vunpack.i.h.bf16 %v6711_v43  ;;  %v6993_v43 = vld [vmem:[%s10296_s18 + $0x78] sm:$0xff] }
 0x224   : > { %4815 = vmatmul.mubr.msk.f32.gmra.mrb[18].mxu1 %vm1481_vm13, %v6931_v18  ;;  %1755 = vmatprep.mubr.f32.mxu0 %v10298_v14  ;;  %v4972_v37 = vpack.c.bf16 %v1324_v15, %v1319_v47  ;;  %v1329_v53 = vsel %vm1316_vm12, %v10317_v27, %v5501_v55  ;;  %v4974_v40 = vpack.c.bf16 %v1335_v52, %v1330_v54 }
 0x225   : > { %4965 = vmatpush1.bf16.msra.mxu0 %v4964_v61  ;;  %5001 = vmatpush1.bf16.msra.mxu1 %v5000_v12  ;;  %v1334_v21 = vsel %vm1316_vm12, %v10318_v34, %v5502_v6  ;;  %v7117_v12 = vstv %s4789_s6  ;;  %s10836_s6 = sld [smem:[#allocation10_spill]] (%p10834_p2) }
 0x226   : > { %4967 = vmatprep.subr.bf16.mxu0 %v4966_v28  ;;  %1666 = vmatprep.mubr.f32.mxu1 %v10298_v14  ;;  %v4976_v23 = vpack.c.bf16 %v1334_v21, %v1329_v53 }
 0x227   : > { %v7108_v25 = vpop.permute.xlu0 %1443 }
 0x228   : > { %4816 = vmatmul.mubr.msk.f32.gmra.mrb[20].mxu1 %vm1481_vm13, %v6952_v2 }
 0x229   : > { %4969 = vmatpush1.bf16.msra.mxu0 %v4968_v56  ;;  %1672 = vmatprep.mubr.f32.mxu1 %v10298_v14 }
 0x22a   : > { %4971 = vmatprep.subr.bf16.mxu0 %v4970_v19 }
 0x22b   : > { %v7115_v61 = vpop.permute.xlu1 %1448  ;;  %v7132_v54 = vpop.permute.xlu0 %1453 }
 0x22c   : > { %4817 = vmatmul.mubr.msk.f32.gmra.mrb[22].mxu1 %vm1481_vm13, %v6971_v33 }
 0x22d   : > { %4973 = vmatpush1.bf16.msra.mxu0 %v4972_v37  ;;  %1678 = vmatprep.mubr.f32.mxu1 %v10298_v14 }
 0x22e   : > { %4975 = vmatprep.subr.bf16.mxu0 %v4974_v40 }
 0x230   : > { %4818 = vmatmul.mubr.msk.f32.gmra.mrb[24].mxu1 %vm1481_vm13, %v6985_v1 }
 0x231   : > { %4977 = vmatpush1.bf16.msra.mxu0 %v4976_v23  ;;  %1684 = vmatprep.mubr.f32.mxu1 %v10298_v14 }
 0x234   : > { %4820 = vmatmul.mubr.msk.f32.vlgmr.msra.gmra.mrb[28].mxu0 %vm1481_vm13, %v6767_v11  ;;  %4819 = vmatmul.mubr.msk.f32.gmra.mrb[26].mxu1 %vm1481_vm13, %v6993_v43 }
 0x235   : > { %1761 = vmatprep.mubr.f32.mxu0 %v10298_v14  ;;  %1916 = vmatprep.mubr.f32.mxu1 %v10298_v14 }
 0x238   : > { %4821 = vmatmul.mubr.msk.f32.gmra.mrb[30].mxu0 %vm1481_vm13, %v6798_v36  ;;  %4836 = vmatmul.mubr.msk.f32.vlgmr.msra.gmra.mrb[28].mxu1 %vm1481_vm13, %v6767_v11 }
 0x239   : > { %1767 = vmatprep.mubr.f32.mxu0 %v10298_v14  ;;  %1922 = vmatprep.mubr.f32.mxu1 %v10298_v14 }
 0x23c   : > { %4822 = vmatmul.mubr.msk.f32.gmra.mrb[32].mxu0 %vm1481_vm13, %v6820_v26  ;;  %4837 = vmatmul.mubr.msk.f32.gmra.mrb[30].mxu1 %vm1481_vm13, %v6798_v36 }
 0x23d   : > { %1773 = vmatprep.mubr.f32.mxu0 %v10298_v14  ;;  %1928 = vmatprep.mubr.f32.mxu1 %v10298_v14 }
 0x240   : > { %4823 = vmatmul.mubr.msk.f32.gmra.mrb[34].mxu0 %vm1481_vm13, %v6859_v48  ;;  %4838 = vmatmul.mubr.msk.f32.gmra.mrb[32].mxu1 %vm1481_vm13, %v6820_v26 }
 0x241   : > { %1779 = vmatprep.mubr.f32.mxu0 %v10298_v14  ;;  %1934 = vmatprep.mubr.f32.mxu1 %v10298_v14 }
 0x244   : > { %4824 = vmatmul.mubr.msk.f32.gmra.mrb[36].mxu0 %vm1481_vm13, %v6899_v49  ;;  %4839 = vmatmul.mubr.msk.f32.gmra.mrb[34].mxu1 %vm1481_vm13, %v6859_v48 }
 0x245   : > { %1785 = vmatprep.mubr.f32.mxu0 %v10298_v14  ;;  %1940 = vmatprep.mubr.f32.mxu1 %v10298_v14 }
 0x248   : > { %4825 = vmatmul.mubr.msk.f32.gmra.mrb[38].mxu0 %vm1481_vm13, %v6926_v22  ;;  %4840 = vmatmul.mubr.msk.f32.gmra.mrb[36].mxu1 %vm1481_vm13, %v6899_v49 }
 0x249   : > { %1791 = vmatprep.mubr.f32.mxu0 %v10298_v14  ;;  %1946 = vmatprep.mubr.f32.mxu1 %v10298_v14 }
 0x24c   : > { %4826 = vmatmul.mubr.msk.f32.gmra.mrb[40].mxu0 %vm1481_vm13, %v6772_v5  ;;  %4841 = vmatmul.mubr.msk.f32.gmra.mrb[38].mxu1 %vm1481_vm13, %v6926_v22 }
 0x24d   : > { %1797 = vmatprep.mubr.f32.mxu0 %v10298_v14  ;;  %1952 = vmatprep.mubr.f32.mxu1 %v10298_v14 }
 0x250   : > { %4827 = vmatmul.mubr.msk.f32.gmra.mrb[42].mxu0 %vm1481_vm13, %v6803_v3  ;;  %4842 = vmatmul.mubr.msk.f32.gmra.mrb[40].mxu1 %vm1481_vm13, %v6772_v5 }
 0x251   : > { %1803 = vmatprep.mubr.f32.mxu0 %v10298_v14  ;;  %1958 = vmatprep.mubr.f32.mxu1 %v10298_v14 }
 0x254   : > { %4828 = vmatmul.mubr.msk.f32.gmra.mrb[44].mxu0 %vm1481_vm13, %v6825_v32  ;;  %4843 = vmatmul.mubr.msk.f32.gmra.mrb[42].mxu1 %vm1481_vm13, %v6803_v3 }
 0x255   : > { %1809 = vmatprep.mubr.f32.mxu0 %v10298_v14  ;;  %1964 = vmatprep.mubr.f32.mxu1 %v10298_v14 }
 0x258   : > { %4829 = vmatmul.mubr.msk.f32.gmra.mrb[46].mxu0 %vm1481_vm13, %v6864_v8  ;;  %4844 = vmatmul.mubr.msk.f32.gmra.mrb[44].mxu1 %vm1481_vm13, %v6825_v32 }
 0x259   : > { %1815 = vmatprep.mubr.f32.mxu0 %v10298_v14  ;;  %1970 = vmatprep.mubr.f32.mxu1 %v10298_v14 }
 0x25c   : > { %4830 = vmatmul.mubr.msk.f32.gmra.mrb[48].mxu0 %vm1481_vm13, %v6904_v46  ;;  %4845 = vmatmul.mubr.msk.f32.gmra.mrb[46].mxu1 %vm1481_vm13, %v6864_v8 }
 0x25d   : > { %1821 = vmatprep.mubr.f32.mxu0 %v10298_v14  ;;  %1976 = vmatprep.mubr.f32.mxu1 %v10298_v14 }
 0x260   : > { %4831 = vmatmul.mubr.msk.f32.gmra.mrb[50].mxu0 %vm1481_vm13, %v6931_v18  ;;  %4846 = vmatmul.mubr.msk.f32.gmra.mrb[48].mxu1 %vm1481_vm13, %v6904_v46 }
 0x261   : > { %1827 = vmatprep.mubr.f32.mxu0 %v10298_v14  ;;  %1982 = vmatprep.mubr.f32.mxu1 %v10298_v14 }
 0x264   : > { %4832 = vmatmul.mubr.msk.f32.gmra.mrb[52].mxu0 %vm1481_vm13, %v6952_v2  ;;  %4847 = vmatmul.mubr.msk.f32.gmra.mrb[50].mxu1 %vm1481_vm13, %v6931_v18 }
 0x265   : > { %1833 = vmatprep.mubr.f32.mxu0 %v10298_v14  ;;  %1988 = vmatprep.mubr.f32.mxu1 %v10298_v14 }
 0x268   : > { %4833 = vmatmul.mubr.msk.f32.gmra.mrb[54].mxu0 %vm1481_vm13, %v6971_v33  ;;  %4848 = vmatmul.mubr.msk.f32.gmra.mrb[52].mxu1 %vm1481_vm13, %v6952_v2 }
 0x269   : > { %1839 = vmatprep.mubr.f32.mxu0 %v10298_v14  ;;  %1994 = vmatprep.mubr.f32.mxu1 %v10298_v14 }
 0x26c   : > { %4834 = vmatmul.mubr.msk.f32.gmra.mrb[56].mxu0 %vm1481_vm13, %v6985_v1  ;;  %4849 = vmatmul.mubr.msk.f32.gmra.mrb[54].mxu1 %vm1481_vm13, %v6971_v33 }
 0x26d   : > { %1845 = vmatprep.mubr.f32.mxu0 %v10298_v14  ;;  %2000 = vmatprep.mubr.f32.mxu1 %v10298_v14 }
 0x270   : > { %4835 = vmatmul.mubr.msk.f32.gmra.mrb[58].mxu0 %vm1481_vm13, %v6993_v43  ;;  %4850 = vmatmul.mubr.msk.f32.gmra.mrb[56].mxu1 %vm1481_vm13, %v6985_v1 }
 0x271   : > { %2006 = vmatprep.mubr.f32.mxu1 %v10298_v14 }
 0x274   : > { %4851 = vmatmul.mubr.msk.f32.gmra.mrb[58].mxu1 %vm1481_vm13, %v6993_v43  ;;  %v7148_v43 = vpop.permute.xlu1 %1458 }
 0x2e2   : > { %v7092_v11 = vpop.f32.mrb[16].mxu0  ;;  %v7094_v5 = vpop.f32.mrb[8].mxu1 }
 0x2e3   : > { %v7096_v36 = vpop.f32.mrb[17].mxu0  ;;  %v7098_v3 = vpop.f32.mrb[9].mxu1 }
 0x2e6   : > { %v7100_v26 = vpop.f32.mrb[18].mxu0  ;;  %v7102_v32 = vpop.f32.mrb[10].mxu1 }
 0x2e7   : > { %v7104_v48 = vpop.f32.mrb[19].mxu0  ;;  %v7106_v8 = vpop.f32.mrb[11].mxu1 }
 0x2ea   : > { %v7110_v49 = vpop.f32.mrb[20].mxu0  ;;  %v1644_v46 = vpop.f32.mrb[12].mxu1 }
 0x2eb   : > { %v7112_v22 = vpop.f32.mrb[21].mxu0  ;;  %v1646_v18 = vpop.f32.mrb[13].mxu1  ;;  %v1645_v17 = vadd.f32 %v1644_v46, %v7108_v25 }
 0x2ec   : > { %v1647_v10 = vadd.f32 %v1646_v18, %v7108_v25 }
 0x2ed   : > { %v2158_v55 = vmul.f32 %v7117_v12, %v1645_v17  ;;  %vm2061_vm14 = vcmp.gt.f32.partialorder %v1645_v17, 0.0 }
 0x2ee   : > { %v7119_v28 = vpop.f32.mrb[22].mxu0  ;;  %v1650_v6 = vpop.f32.mrb[14].mxu1  ;;  %vm2062_vm15 = vcmp.gt.f32.partialorder %v1647_v10, 0.0  ;;  %v2159_v2 = vmul.f32 %v7117_v12, %v1647_v10 }
 0x2ef   : > { %v7123_v59 = vpop.f32.mrb[23].mxu0  ;;  %v1652_v31 = vpop.f32.mrb[15].mxu1  ;;  %v1651_v56 = vadd.f32 %v1650_v6, %v7115_v61  ;;  %v2254_v15 = vsel %vm2061_vm14, %v1645_v17, %v2158_v55 }
 0x2f0   : > { %v1653_v7 = vadd.f32 %v1652_v31, %v7115_v61  ;;  %v2255_v44 = vsel %vm2062_vm15, %v1647_v10, %v2159_v2  ;;  %v7142_v21 = vmul.f32 %v6339_v24, %v2254_v15  ;;  %v7154_v10 = vpop.permute.xlu0 %1463 }
 0x2f1   : > { %v7136_v37 = vmul.f32 %v6345_v29, %v2255_v44  ;;  %v2164_v53 = vmul.f32 %v7117_v12, %v1651_v56  ;;  %vm2067_vm1 = vcmp.gt.f32.partialorder %v1651_v56, 0.0  ;;  %10321 = vst [vmem:[#allocation50_spill] sm:$0xff] %v7154_v10 }
 0x2f2   : > { %v7128_v9 = vpop.f32.mrb[24].mxu0  ;;  %v2165_v52 = vmul.f32 %v7117_v12, %v1653_v7  ;;  %vm2068_vm0 = vcmp.gt.f32.partialorder %v1653_v7, 0.0  ;;  %10320 = vst [vmem:[#allocation49_spill] sm:$0xff] %v7142_v21 }
 0x2f3   : > { %v1656_v47 = vpop.f32.mrb[16].mxu1  ;;  %v7130_v19 = vpop.f32.mrb[25].mxu0  ;;  %10319 = vst [vmem:[#allocation48_spill] sm:$0xff] %v7136_v37  ;;  %v5503_v55 = vpack.i.bf16 %v7136_v37, %v7142_v21  ;;  %v2260_v31 = vsel %vm2067_vm1, %v1651_v56, %v2164_v53 }
 0x2f4   : > { %v1658_v33 = vpop.f32.mrb[17].mxu1  ;;  %v1657_v27 = vadd.f32 %v1656_v47, %v7132_v54  ;;  %v2261_v46 = vsel %vm2068_vm0, %v1653_v7, %v2165_v52  ;;  %v7171_v53 = vmul.f32 %v6339_v24, %v2260_v31 }
 0x2f5   : > { %v1659_v34 = vadd.f32 %v1658_v33, %v7132_v54  ;;  %v7158_v15 = vmul.f32 %v6345_v29, %v2261_v46  ;;  %5504 = vrot.lane.b32.xlu0 %v5503_v55, %s5973_s25  ;;  %v7181_v55 = vpop.permute.xlu0 %1473 }
 0x2f6   : > { %v7144_v40 = vpop.f32.mrb[26].mxu0  ;;  %vm2073_vm2 = vcmp.gt.f32.partialorder %v1657_v27, 0.0  ;;  %v2170_v18 = vmul.f32 %v7117_v12, %v1657_v27  ;;  %10324 = vst [vmem:[#allocation53_spill] sm:$0xff] %v7171_v53  ;;  %10327 = vst [vmem:[#allocation56_spill] sm:$0xff] %v7181_v55 }
 0x2f7   : > { %v1662_v1 = vpop.f32.mrb[18].mxu1  ;;  %v7146_v23 = vpop.f32.mrb[27].mxu0  ;;  %vm2074_vm3 = vcmp.gt.f32.partialorder %v1659_v34, 0.0  ;;  %v2171_v6 = vmul.f32 %v7117_v12, %v1659_v34  ;;  %10322 = vst [vmem:[#allocation51_spill] sm:$0xff] %v7158_v15 }
 0x2f8   : > { %v1664_v17 = vpop.f32.mrb[19].mxu1  ;;  %v1663_v2 = vadd.f32 %v1662_v1, %v7148_v43  ;;  %v2266_v44 = vsel %vm2073_vm2, %v1657_v27, %v2170_v18  ;;  %v7173_v1 = vpop.permute.xlu1 %1468  ;;  %v5508_v18 = vpack.i.bf16 %v7158_v15, %v7171_v53 }
 0x2f9   : > { %v2267_v7 = vsel %vm2074_vm3, %v1659_v34, %v2171_v6  ;;  %v1665_v56 = vadd.f32 %v1664_v17, %v7148_v43  ;;  %10325 = vst [vmem:[#allocation54_spill] sm:$0xff] %v7173_v1  ;;  %v7176_v27 = vmul.f32 %v6339_v24, %v2266_v44 }
 0x2fa   : > { %vm2079_vm4 = vcmp.gt.f32.partialorder %v1663_v2, 0.0  ;;  %v2176_v52 = vmul.f32 %v7117_v12, %v1663_v2  ;;  %v7167_v13 = vmul.f32 %v6345_v29, %v2267_v7  ;;  %5509 = vrot.lane.b32.xlu1 %v5508_v18, %s5973_s25 }
 0x2fb   : > { %v7161_v47 = vpop.f32.mrb[20].mxu1  ;;  %10326 = vst [vmem:[#allocation55_spill] sm:$0xff] %v7176_v27  ;;  %vm2080_vm5 = vcmp.gt.f32.partialorder %v1665_v56, 0.0  ;;  %v2177_v46 = vmul.f32 %v7117_v12, %v1665_v56 }
 0x2fc   : > { %v7164_v33 = vpop.f32.mrb[21].mxu1  ;;  %10323 = vst [vmem:[#allocation52_spill] sm:$0xff] %v7167_v13  ;;  %v2272_v34 = vsel %vm2079_vm4, %v1663_v2, %v2176_v52  ;;  %v5513_v31 = vpack.i.bf16 %v7167_v13, %v7176_v27 }
 0x2fd   : > { %v2273_v17 = vsel %vm2080_vm5, %v1665_v56, %v2177_v46  ;;  %v7192_v41 = vmul.f32 %v6339_v24, %v2272_v34  ;;  %v7197_v56 = vpop.permute.xlu1 %1478  ;;  %v7205_v34 = vpop.permute.xlu0 %1403 }
 0x2fe   : > { %v7188_v2 = vmul.f32 %v6345_v29, %v2273_v17  ;;  %5514 = vrot.lane.b32.xlu1 %v5513_v31, %s5973_s25  ;;  %10330 = vst [vmem:[#allocation59_spill] sm:$0xff] %v7205_v34 }
 0x2ff   : > { %v1674_v6 = vpop.f32.mrb[22].mxu1  ;;  %10329 = vst [vmem:[#allocation58_spill] sm:$0xff] %v7192_v41 }
 0x300   : > { %v1676_v7 = vpop.f32.mrb[23].mxu1  ;;  %v1675_v44 = vadd.f32 %v1674_v6, %v7173_v1  ;;  %10328 = vst [vmem:[#allocation57_spill] sm:$0xff] %v7188_v2  ;;  %v5518_v18 = vpack.i.bf16 %v7188_v2, %v7192_v41 }
 0x301   : > { %v1677_v52 = vadd.f32 %v1676_v7, %v7173_v1  ;;  %v7224_v31 = vpop.permute.xlu1 %1408 }
 0x302   : > { %vm2091_vm6 = vcmp.gt.f32.partialorder %v1675_v44, 0.0  ;;  %v2188_v20 = vmul.f32 %v7117_v12, %v1675_v44  ;;  %5519 = vrot.lane.b32.xlu0 %v5518_v18, %s5973_s25  ;;  %10334 = vst [vmem:[#allocation63_spill] sm:$0xff] %v7224_v31 }
 0x303   : > { %v7195_v60 = vpop.f32.mrb[24].mxu1  ;;  %vm2092_vm7 = vcmp.gt.f32.partialorder %v1677_v52, 0.0  ;;  %v2189_v46 = vmul.f32 %v7117_v12, %v1677_v52 }
 0x304   : > { %v7202_v6 = vpop.f32.mrb[25].mxu1  ;;  %v2284_v7 = vsel %vm2091_vm6, %v1675_v44, %v2188_v20 }
 0x305   : > { %v2285_v17 = vsel %vm2092_vm7, %v1677_v52, %v2189_v46  ;;  %v7209_v42 = vmul.f32 %v6339_v24, %v2284_v7  ;;  %v7235_v7 = vpop.permute.xlu0 %1413  ;;  %v7245_v39 = vpop.permute.xlu1 %1418 }
 0x306   : > { %v7212_v16 = vmul.f32 %v6345_v29, %v2285_v17  ;;  %10336 = vst [vmem:[#allocation65_spill] sm:$0xff] %v7235_v7  ;;  %10338 = vst [vmem:[#allocation67_spill] sm:$0xff] %v7245_v39 }
 0x307   : > { %10331 = vst [vmem:[#allocation60_spill] sm:$0xff] %v7209_v42  ;;  %v7214_v0 = vpop.f32.mrb[28].mxu0  ;;  %v7216_v4 = vpop.f32.mrb[26].mxu1 }
 0x308   : > { %10332 = vst [vmem:[#allocation61_spill] sm:$0xff] %v7212_v16  ;;  %v7218_v57 = vpop.f32.mrb[29].mxu0  ;;  %v7220_v63 = vpop.f32.mrb[27].mxu1  ;;  %v5533_v20 = vpack.i.bf16 %v7212_v16, %v7209_v42 }
 0x309   : > { %10333 = vst [vmem:[#allocation62_spill] sm:$0xff] %v7218_v57  ;;  %v7255_v16 = vpop.permute.xlu0 %1423  ;;  %v7265_v53 = vpop.permute.xlu1 %1428 }
 0x30a   : > { %5534 = vrot.lane.b32.xlu1 %v5533_v20, %s5973_s25  ;;  %10342 = vst [vmem:[#allocation71_spill] sm:$0xff] %v7255_v16  ;;  %10346 = vst [vmem:[#allocation75_spill] sm:$0xff] %v7265_v53 }
 0x30b   : > { %v7226_v44 = vpop.f32.mrb[30].mxu0  ;;  %v7229_v52 = vpop.f32.mrb[28].mxu1 }
 0x30c   : > { %v7231_v46 = vpop.f32.mrb[31].mxu0  ;;  %v7233_v18 = vpop.f32.mrb[29].mxu1 }
 0x30d   : > { %10335 = vst [vmem:[#allocation64_spill] sm:$0xff] %v7231_v46  ;;  %v7275_v46 = vpop.permute.xlu0 %1433 }
 0x30e   : > { %10350 = vst [vmem:[#allocation79_spill] sm:$0xff] %v7275_v46 }
 0x30f   : > { %v7237_v17 = vpop.f32.mrb[32].mxu0  ;;  %v7239_v62 = vpop.f32.mrb[30].mxu1 }
 0x310   : > { %v7241_v51 = vpop.f32.mrb[33].mxu0  ;;  %v7243_v50 = vpop.f32.mrb[31].mxu1 }
 0x311   : > { %10337 = vst [vmem:[#allocation66_spill] sm:$0xff] %v7241_v51 }
 0x313   : > { %v7247_v38 = vpop.f32.mrb[34].mxu0  ;;  %v7249_v20 = vpop.f32.mrb[32].mxu1 }
 0x314   : > { %10339 = vst [vmem:[#allocation68_spill] sm:$0xff] %v7249_v20  ;;  %v7251_v14 = vpop.f32.mrb[35].mxu0  ;;  %v7253_v42 = vpop.f32.mrb[33].mxu1  ;;  %v1635_v20 = vadd.f32 %v7098_v3, %v7275_v46 }
 0x315   : > { %10340 = vst [vmem:[#allocation69_spill] sm:$0xff] %v7251_v14  ;;  %10341 = vst [vmem:[#allocation70_spill] sm:$0xff] %v7253_v42 }
 0x316   : > { %v2147_v3 = vmul.f32 %v7117_v12, %v1635_v20  ;;  %vm2050_vm9 = vcmp.gt.f32.partialorder %v1635_v20, 0.0 }
 0x317   : > { %v7257_v41 = vpop.f32.mrb[36].mxu0  ;;  %v7259_v27 = vpop.f32.mrb[34].mxu1 }
 0x318   : > { %10343 = vst [vmem:[#allocation72_spill] sm:$0xff] %v7259_v27  ;;  %v7261_v2 = vpop.f32.mrb[37].mxu0  ;;  %v7263_v13 = vpop.f32.mrb[35].mxu1 }
 0x319   : > { %10344 = vst [vmem:[#allocation73_spill] sm:$0xff] %v7261_v2  ;;  %10345 = vst [vmem:[#allocation74_spill] sm:$0xff] %v7263_v13  ;;  %v1599_v2 = vadd.f32 %v7096_v36, %v7205_v34 }
 0x31b   : > { %v7267_v21 = vpop.f32.mrb[38].mxu0  ;;  %v7269_v15 = vpop.f32.mrb[36].mxu1  ;;  %vm2014_vm8 = vcmp.gt.f32.partialorder %v1599_v2, 0.0  ;;  %v2111_v36 = vmul.f32 %v7117_v12, %v1599_v2 }
 0x31c   : > { %10347 = vst [vmem:[#allocation76_spill] sm:$0xff] %v7269_v15  ;;  %v7271_v37 = vpop.f32.mrb[39].mxu0  ;;  %v7273_v51 = vpop.f32.mrb[37].mxu1 }
 0x31d   : > { %10348 = vst [vmem:[#allocation77_spill] sm:$0xff] %v7271_v37  ;;  %10349 = vst [vmem:[#allocation78_spill] sm:$0xff] %v7273_v51  ;;  %v7289_v15 = vpop.permute.xlu1 %1438  ;;  %v1597_v37 = vadd.f32 %v7092_v11, %v7205_v34  ;;  %v1603_v11 = vadd.f32 %v7100_v26, %v7224_v31  ;;  %v2207_v26 = vsel %vm2014_vm8, %v1599_v2, %v2111_v36 }
 0x31e   : > { %10355 = vst [vmem:[#allocation84_spill] sm:$0xff] %v7289_v15  ;;  %v1617_v2 = vadd.f32 %v7123_v59, %v7245_v39 }
 0x31f   : > { %v7277_v14 = vpop.f32.mrb[40].mxu0  ;;  %v7279_v57 = vpop.f32.mrb[38].mxu1  ;;  %vm2013_vm10 = vcmp.gt.f32.partialorder %v1597_v37, 0.0  ;;  %v2110_v1 = vmul.f32 %v7117_v12, %v1597_v37  ;;  %vm2019_vm15 = vcmp.gt.f32.partialorder %v1603_v11, 0.0 }
 0x320   : > { %10351 = vst [vmem:[#allocation80_spill] sm:$0xff] %v7277_v14  ;;  %10352 = vst [vmem:[#allocation81_spill] sm:$0xff] %v7279_v57  ;;  %v7285_v58 = vpop.f32.mrb[41].mxu0  ;;  %v7287_v45 = vpop.f32.mrb[39].mxu1  ;;  %v1633_v57 = vadd.f32 %v7094_v5, %v7275_v46  ;;  %v1641_v5 = vadd.f32 %v7106_v8, %v7289_v15  ;;  %v2243_v46 = vsel %vm2050_vm9, %v1635_v20, %v2147_v3  ;;  %vm2032_vm4 = vcmp.gt.f32.partialorder %v1617_v2, 0.0 }
 0x321   : > { %10353 = vst [vmem:[#allocation82_spill] sm:$0xff] %v7285_v58  ;;  %10354 = vst [vmem:[#allocation83_spill] sm:$0xff] %v7287_v45  ;;  %v7337_v3 = vsel %vm2013_vm10, %v1597_v37, %v2110_v1  ;;  %v7346_v42 = vmul.f32 %v6345_v29, %v2243_v46  ;;  %v1615_v46 = vadd.f32 %v7119_v28, %v7245_v39 }
 0x322   : > { %vm2049_vm14 = vcmp.gt.f32.partialorder %v1633_v57, 0.0  ;;  %vm2056_vm2 = vcmp.gt.f32.partialorder %v1641_v5, 0.0  ;;  %v1621_v28 = vadd.f32 %v7128_v9, %v7255_v16 }
 0x323   : > { %v7293_v51 = vpop.f32.mrb[42].mxu0  ;;  %v7295_v27 = vpop.f32.mrb[40].mxu1  ;;  %10367 = vst [vmem:[#allocation96_spill] sm:$0xff] %v7346_v42  ;;  %v2129_v42 = vmul.f32 %v7117_v12, %v1617_v2  ;;  %vm2031_vm6 = vcmp.gt.f32.partialorder %v1615_v46, 0.0  ;;  %v2128_v9 = vmul.f32 %v7117_v12, %v1615_v46 }
 0x324   : > { %10356 = vst [vmem:[#allocation85_spill] sm:$0xff] %v7293_v51  ;;  %10357 = vst [vmem:[#allocation86_spill] sm:$0xff] %v7295_v27  ;;  %v7301_v58 = vpop.f32.mrb[43].mxu0  ;;  %v7303_v45 = vpop.f32.mrb[41].mxu1  ;;  %v1639_v51 = vadd.f32 %v7102_v32, %v7289_v15  ;;  %v1605_v27 = vadd.f32 %v7104_v48, %v7224_v31  ;;  %v2116_v48 = vmul.f32 %v7117_v12, %v1603_v11  ;;  %vm2037_vm10 = vcmp.gt.f32.partialorder %v1621_v28, 0.0 }
 0x325   : > { %10358 = vst [vmem:[#allocation87_spill] sm:$0xff] %v7301_v58  ;;  %10359 = vst [vmem:[#allocation88_spill] sm:$0xff] %v7303_v45  ;;  %v2146_v45 = vmul.f32 %v7117_v12, %v1633_v57 }
 0x326   : > { %v2152_v8 = vmul.f32 %v7117_v12, %v1639_v51  ;;  %v2117_v15 = vmul.f32 %v7117_v12, %v1605_v27  ;;  %vm2055_vm0 = vcmp.gt.f32.partialorder %v1639_v51, 0.0  ;;  %vm2020_vm1 = vcmp.gt.f32.partialorder %v1605_v27, 0.0 }
 0x327   : > { %v7314_v14 = vpop.f32.mrb[44].mxu0  ;;  %v7316_v58 = vpop.f32.mrb[42].mxu1  ;;  %v7353_v59 = vsel %vm2019_vm15, %v1603_v11, %v2116_v48  ;;  %v1627_v48 = vadd.f32 %v7144_v40, %v7265_v53 }
 0x328   : > { %10360 = vst [vmem:[#allocation89_spill] sm:$0xff] %v7314_v14  ;;  %10361 = vst [vmem:[#allocation90_spill] sm:$0xff] %v7316_v58  ;;  %v7320_v32 = vpop.f32.mrb[45].mxu0  ;;  %v7322_v13 = vpop.f32.mrb[43].mxu1  ;;  %v2153_v58 = vmul.f32 %v7117_v12, %v1641_v5  ;;  %v1611_v14 = vadd.f32 %v7112_v22, %v7235_v7  ;;  %v2213_v37 = vsel %vm2020_vm1, %v1605_v27, %v2117_v15 }
 0x329   : > { %10362 = vst [vmem:[#allocation91_spill] sm:$0xff] %v7320_v32  ;;  %10363 = vst [vmem:[#allocation92_spill] sm:$0xff] %v7322_v13  ;;  %v7340_v32 = vsel %vm2049_vm14, %v1633_v57, %v2146_v45  ;;  %v7343_v13 = vmul.f32 %v6345_v29, %v2207_v26  ;;  %v1609_v57 = vadd.f32 %v7110_v49, %v7235_v7  ;;  %vm2043_vm15 = vcmp.gt.f32.partialorder %v1627_v48, 0.0 }
 0x32a   : > { %v2249_v45 = vsel %vm2056_vm2, %v1641_v5, %v2153_v58  ;;  %v2123_v1 = vmul.f32 %v7117_v12, %v1611_v14  ;;  %v1623_v26 = vadd.f32 %v7130_v19, %v7255_v16  ;;  %vm2026_vm3 = vcmp.gt.f32.partialorder %v1611_v14, 0.0 }
 0x32b   : > { %v7332_v20 = vpop.f32.mrb[46].mxu0  ;;  %v7334_v36 = vpop.f32.mrb[44].mxu1  ;;  %10366 = vst [vmem:[#allocation95_spill] sm:$0xff] %v7343_v13  ;;  %v1671_v15 = vadd.f32 %v7164_v33, %v7154_v10  ;;  %v7374_v49 = vmul.f32 %v6345_v29, %v2213_v37  ;;  %v1629_v19 = vadd.f32 %v7146_v23, %v7265_v53  ;;  %v7385_v33 = vmul.f32 %v6345_v29, %v2249_v45 }
 0x32c   : > { %10364 = vst [vmem:[#allocation93_spill] sm:$0xff] %v7332_v20  ;;  %10365 = vst [vmem:[#allocation94_spill] sm:$0xff] %v7334_v36  ;;  %v7348_v22 = vpop.f32.mrb[47].mxu0  ;;  %v7350_v30 = vpop.f32.mrb[45].mxu1  ;;  %v7355_v36 = vsel %vm2055_vm0, %v1639_v51, %v2152_v8  ;;  %v1669_v51 = vadd.f32 %v7161_v47, %v7154_v10  ;;  %vm2025_vm5 = vcmp.gt.f32.partialorder %v1609_v57, 0.0  ;;  %v2122_v5 = vmul.f32 %v7117_v12, %v1609_v57 }
 0x32d   : > { %10368 = vst [vmem:[#allocation97_spill] sm:$0xff] %v7348_v22  ;;  %10369 = vst [vmem:[#allocation98_spill] sm:$0xff] %v7355_v36  ;;  %v2219_v8 = vsel %vm2026_vm3, %v1611_v14, %v2123_v1  ;;  %v2135_v23 = vmul.f32 %v7117_v12, %v1623_v26  ;;  %v2225_v37 = vsel %vm2032_vm4, %v1617_v2, %v2129_v42  ;;  %vm2038_vm7 = vcmp.gt.f32.partialorder %v1623_v26, 0.0 }
 0x32e   : > { %10372 = vst [vmem:[#allocation101_spill] sm:$0xff] %v7374_v49  ;;  %10374 = vst [vmem:[#allocation103_spill] sm:$0xff] %v7385_v33  ;;  %v2183_v45 = vmul.f32 %v7117_v12, %v1671_v15  ;;  %v2134_v13 = vmul.f32 %v7117_v12, %v1621_v28  ;;  %v2141_v40 = vmul.f32 %v7117_v12, %v1629_v19  ;;  %vm2085_vm8 = vcmp.gt.f32.partialorder %v1669_v51, 0.0 }
 0x32f   : > { %v7369_v27 = vpop.f32.mrb[48].mxu0  ;;  %v7371_v58 = vpop.f32.mrb[46].mxu1  ;;  %vm2086_vm9 = vcmp.gt.f32.partialorder %v1671_v15, 0.0  ;;  %v2140_v42 = vmul.f32 %v7117_v12, %v1627_v48  ;;  %vm2044_vm14 = vcmp.gt.f32.partialorder %v1629_v19, 0.0  ;;  %v1683_v2 = vadd.f32 %v7202_v6, %v7181_v55 }
 0x330   : > { %10370 = vst [vmem:[#allocation99_spill] sm:$0xff] %v7369_v27  ;;  %10371 = vst [vmem:[#allocation100_spill] sm:$0xff] %v7371_v58  ;;  %v7380_v11 = vpop.f32.mrb[49].mxu0  ;;  %v7382_v47 = vpop.f32.mrb[47].mxu1  ;;  %v2182_v27 = vmul.f32 %v7117_v12, %v1669_v51  ;;  %v1681_v22 = vadd.f32 %v7195_v60, %v7181_v55  ;;  %v1758_v20 = vadd.f32 %v7214_v0, %v7205_v34 }
 0x331   : > { %10373 = vst [vmem:[#allocation102_spill] sm:$0xff] %v7380_v11  ;;  %v2231_v11 = vsel %vm2038_vm7, %v1623_v26, %v2135_v23  ;;  %v7430_v26 = vsel %vm2037_vm10, %v1621_v28, %v2134_v13  ;;  %vm2098_vm0 = vcmp.gt.f32.partialorder %v1683_v2, 0.0  ;;  %v7452_v28 = vmul.f32 %v6339_v24, %v7353_v59 }
 0x332   : > { %v2278_v49 = vsel %vm2085_vm8, %v1669_v51, %v2182_v27  ;;  %v2237_v51 = vsel %vm2044_vm14, %v1629_v19, %v2141_v40  ;;  %v7437_v0 = vmul.f32 %v6345_v29, %v2231_v11  ;;  %v7439_v27 = vsel %vm2043_vm15, %v1627_v48, %v2140_v42 }
 0x333   : > { %v7395_v33 = vpop.f32.mrb[50].mxu0  ;;  %v7397_v58 = vpop.f32.mrb[48].mxu1  ;;  %v7448_v13 = vmul.f32 %v6339_v24, %v2278_v49  ;;  %v7455_v19 = vmul.f32 %v6345_v29, %v2237_v51  ;;  %v2194_v11 = vmul.f32 %v7117_v12, %v1681_v22  ;;  %v2112_v48 = vmul.f32 %v7117_v12, %v1758_v20 }
 0x334   : > { %10375 = vst [vmem:[#allocation104_spill] sm:$0xff] %v7395_v33  ;;  %10376 = vst [vmem:[#allocation105_spill] sm:$0xff] %v7397_v58  ;;  %v7401_v14 = vpop.f32.mrb[51].mxu0  ;;  %v7403_v1 = vpop.f32.mrb[49].mxu1  ;;  %v7409_v33 = vsel %vm2025_vm5, %v1609_v57, %v2122_v5  ;;  %v7412_v58 = vmul.f32 %v6345_v29, %v2219_v8  ;;  %v7424_v57 = vsel %vm2031_vm6, %v1615_v46, %v2128_v9  ;;  %vm2097_vm1 = vcmp.gt.f32.partialorder %v1681_v22, 0.0 }
 0x335   : > { %10377 = vst [vmem:[#allocation106_spill] sm:$0xff] %v7401_v14  ;;  %v2279_v14 = vsel %vm2086_vm9, %v1671_v15, %v2183_v45  ;;  %v7427_v5 = vmul.f32 %v6345_v29, %v2225_v37  ;;  %10383 = vst [vmem:[#allocation112_spill] sm:$0xff] %v7437_v0  ;;  %v2195_v8 = vmul.f32 %v7117_v12, %v1683_v2  ;;  %vm2015_vm2 = vcmp.gt.f32.partialorder %v1758_v20, 0.0 }
 0x336   : > { %10378 = vst [vmem:[#allocation107_spill] sm:$0xff] %v7412_v58  ;;  %v1689_v46 = vadd.f32 %v7220_v63, %v7197_v56  ;;  %v7445_v9 = vmul.f32 %v6345_v29, %v2279_v14  ;;  %10385 = vst [vmem:[#allocation114_spill] sm:$0xff] %v7448_v13  ;;  %v1764_v63 = vadd.f32 %v7226_v44, %v7224_v31 }
 0x337   : > { %v7419_v36 = vpop.f32.mrb[52].mxu0  ;;  %v7421_v6 = vpop.f32.mrb[50].mxu1  ;;  %10381 = vst [vmem:[#allocation110_spill] sm:$0xff] %v7427_v5  ;;  %10386 = vst [vmem:[#allocation115_spill] sm:$0xff] %v7455_v19  ;;  %v1687_v59 = vadd.f32 %v7216_v4, %v7197_v56  ;;  %v7473_v40 = vmul.f32 %v6339_v24, %v7337_v3  ;;  %v2291_v14 = vsel %vm2098_vm0, %v1683_v2, %v2195_v8 }
 0x338   : > { %10379 = vst [vmem:[#allocation108_spill] sm:$0xff] %v7419_v36  ;;  %10380 = vst [vmem:[#allocation109_spill] sm:$0xff] %v7421_v6  ;;  %v7432_v15 = vpop.f32.mrb[53].mxu0  ;;  %v7434_v60 = vpop.f32.mrb[51].mxu1  ;;  %v2201_v44 = vmul.f32 %v7117_v12, %v1689_v46  ;;  %v1969_v42 = vadd.f32 %v7350_v30, %v7108_v25  ;;  %v1975_v51 = vadd.f32 %v7382_v47, %v7115_v61  ;;  %vm2104_vm3 = vcmp.gt.f32.partialorder %v1689_v46, 0.0 }
 0x339   : > { %10382 = vst [vmem:[#allocation111_spill] sm:$0xff] %v7432_v15  ;;  %10384 = vst [vmem:[#allocation113_spill] sm:$0xff] %v7445_v9  ;;  %v1770_v4 = vadd.f32 %v7237_v17, %v7235_v7  ;;  %v2208_v2 = vsel %vm2015_vm2, %v1758_v20, %v2112_v48  ;;  %v2118_v8 = vmul.f32 %v7117_v12, %v1764_v63  ;;  %vm2103_vm4 = vcmp.gt.f32.partialorder %v1687_v59, 0.0 }
 0x33a   : > { %v1776_v30 = vadd.f32 %v7247_v38, %v7245_v39  ;;  %v7496_v17 = vmul.f32 %v6345_v29, %v2291_v14  ;;  %v2200_v36 = vmul.f32 %v7117_v12, %v1687_v59  ;;  %vm2021_vm5 = vcmp.gt.f32.partialorder %v1764_v63, 0.0 }
 0x33b   : > { %v7461_v23 = vpop.f32.mrb[54].mxu0  ;;  %v7463_v37 = vpop.f32.mrb[52].mxu1  ;;  %v2297_v20 = vsel %vm2104_vm3, %v1689_v46, %v2201_v44  ;;  %v2163_v38 = vmul.f32 %v7117_v12, %v1969_v42  ;;  %v2169_v48 = vmul.f32 %v7117_v12, %v1975_v51  ;;  %v2124_v14 = vmul.f32 %v7117_v12, %v1770_v4 }
 0x33c   : > { %10387 = vst [vmem:[#allocation116_spill] sm:$0xff] %v7461_v23  ;;  %10388 = vst [vmem:[#allocation117_spill] sm:$0xff] %v7463_v37  ;;  %v7467_v49 = vpop.f32.mrb[55].mxu0  ;;  %v7469_v45 = vpop.f32.mrb[53].mxu1  ;;  %v7486_v23 = vsel %vm2097_vm1, %v1681_v22, %v2194_v11  ;;  %v1921_v11 = vadd.f32 %v7233_v18, %v7205_v34  ;;  %vm2066_vm6 = vcmp.gt.f32.partialorder %v1969_v42, 0.0  ;;  %vm2072_vm7 = vcmp.gt.f32.partialorder %v1975_v51, 0.0 }
 0x33d   : > { %10389 = vst [vmem:[#allocation118_spill] sm:$0xff] %v7467_v49  ;;  %10392 = vst [vmem:[#allocation121_spill] sm:$0xff] %v7496_v17  ;;  %vm2027_vm8 = vcmp.gt.f32.partialorder %v1770_v4, 0.0  ;;  %v1927_v46 = vadd.f32 %v7243_v50, %v7224_v31  ;;  %v7518_v49 = vsel %vm2103_vm4, %v1687_v59, %v2200_v36  ;;  %v7525_v15 = vadd.f32 %v7229_v52, %v7205_v34 }
 0x33e   : > { %vm2033_vm9 = vcmp.gt.f32.partialorder %v1776_v30, 0.0  ;;  %v2115_v50 = vmul.f32 %v7117_v12, %v1921_v11  ;;  %v2259_v36 = vsel %vm2066_vm6, %v1969_v42, %v2163_v38  ;;  %v2265_v59 = vsel %vm2072_vm7, %v1975_v51, %v2169_v48 }
 0x33f   : > { %v7491_v37 = vpop.f32.mrb[56].mxu0  ;;  %v7493_v47 = vpop.f32.mrb[54].mxu1  ;;  %10398 = vst [vmem:[#allocation127_spill] sm:$0xff] %v7525_v15  ;;  %v2220_v52 = vsel %vm2027_vm8, %v1770_v4, %v2124_v14  ;;  %vm2018_vm10 = vcmp.gt.f32.partialorder %v1921_v11, 0.0  ;;  %vm2024_vm14 = vcmp.gt.f32.partialorder %v1927_v46, 0.0  ;;  %v2121_v15 = vmul.f32 %v7117_v12, %v1927_v46  ;;  %v10403_v4 = vld [vmem:[#allocation26_spill] sm:$0xff] }
 0x340   : > { %10390 = vst [vmem:[#allocation119_spill] sm:$0xff] %v7491_v37  ;;  %10391 = vst [vmem:[#allocation120_spill] sm:$0xff] %v7493_v47  ;;  %v7499_v3 = vpop.f32.mrb[57].mxu0  ;;  %v1998_v22 = vpop.f32.mrb[55].mxu1  ;;  %v7507_v37 = vmul.f32 %v6423_v35, %v2208_v2  ;;  %v2214_v47 = vsel %vm2021_vm5, %v1764_v63, %v2118_v8  ;;  %v7521_v2 = vmul.f32 %v6345_v29, %v2297_v20 }
 0x341   : > { %10393 = vst [vmem:[#allocation122_spill] sm:$0xff] %v7499_v3  ;;  %v2130_v3 = vmul.f32 %v7117_v12, %v1776_v30  ;;  %v7539_v20 = vmul.f32 %v6423_v35, %v2214_v47  ;;  %v1782_v29 = vadd.f32 %v7257_v41, %v7255_v16  ;;  %v1981_v42 = vadd.f32 %v7403_v1, %v7132_v54  ;;  %v10408_v1 = vld [vmem:[#allocation70_spill] sm:$0xff] }
 0x342   : > { %10394 = vst [vmem:[#allocation123_spill] sm:$0xff] %v7507_v37  ;;  %10397 = vst [vmem:[#allocation126_spill] sm:$0xff] %v7521_v2  ;;  %v1987_v51 = vadd.f32 %v7434_v60, %v7148_v43  ;;  %v7554_v47 = vmul.f32 %v10403_v4, %v2259_v36  ;;  %v7557_v41 = vmul.f32 %v10403_v4, %v2265_v59  ;;  %v10410_v36 = vld [vmem:[#allocation74_spill] sm:$0xff] }
 0x343   : > { %v7513_v44 = vpop.f32.mrb[58].mxu0  ;;  %v7515_v18 = vpop.f32.mrb[56].mxu1  ;;  %10401 = vst [vmem:[#allocation130_spill] sm:$0xff] %v7539_v20  ;;  %v2226_v34 = vsel %vm2033_vm9, %v1776_v30, %v2130_v3  ;;  %v7560_v30 = vmul.f32 %v6423_v35, %v2220_v52  ;;  %v7562_v38 = vsel %vm2018_vm10, %v1921_v11, %v2115_v50  ;;  %v1933_v48 = vadd.f32 %v10408_v1, %v7235_v7 }
 0x344   : > { %10395 = vst [vmem:[#allocation124_spill] sm:$0xff] %v7513_v44  ;;  %10396 = vst [vmem:[#allocation125_spill] sm:$0xff] %v7515_v18  ;;  %v7527_v63 = vpop.f32.mrb[59].mxu0  ;;  %v7529_v8 = vpop.f32.mrb[57].mxu1  ;;  %v7534_v44 = vadd.f32 %v7239_v62, %v7224_v31  ;;  %v1788_v62 = vadd.f32 %v7267_v21, %v7265_v53  ;;  %v7571_v60 = vmul.f32 %v6423_v35, %v2226_v34  ;;  %vm2039_vm15 = vcmp.gt.f32.partialorder %v1782_v29, 0.0 }
 0x345   : > { %10399 = vst [vmem:[#allocation128_spill] sm:$0xff] %v7527_v63  ;;  %10404 = vst [vmem:[#allocation132_spill] sm:$0xff] %v7554_v47  ;;  %v2136_v14 = vmul.f32 %v7117_v12, %v1782_v29  ;;  %v1939_v59 = vadd.f32 %v10410_v36, %v7245_v39  ;;  %v5523_v52 = vpack.i.bf16 %v7557_v41, %v7554_v47  ;;  %vm2078_vm1 = vcmp.gt.f32.partialorder %v1981_v42, 0.0 }
 0x346   : > { %10400 = vst [vmem:[#allocation129_spill] sm:$0xff] %v7534_v44  ;;  %10405 = vst [vmem:[#allocation133_spill] sm:$0xff] %v7557_v41  ;;  %v7566_v21 = vmul.f32 %v7117_v12, %v7534_v44  ;;  %v7579_v11 = vsel %vm2024_vm14, %v1927_v46, %v2121_v15  ;;  %v2142_v50 = vmul.f32 %v7117_v12, %v1788_v62  ;;  %v10412_v44 = vld [vmem:[#allocation80_spill] sm:$0xff]  ;;  %vm2045_vm0 = vcmp.gt.f32.partialorder %v1788_v62, 0.0  ;;  %v10413_v15 = vld [vmem:[#allocation54_spill] sm:$0xff] }
 0x347   : > { %v7547_v31 = vpop.f32.mrb[58].mxu1  ;;  %10406 = vst [vmem:[#allocation134_spill] sm:$0xff] %v7560_v30  ;;  %10409 = vst [vmem:[#allocation70_spill] sm:$0xff] %v7571_v60  ;;  %v2175_v34 = vmul.f32 %v7117_v12, %v1981_v42  ;;  %v2181_v7 = vmul.f32 %v7117_v12, %v1987_v51  ;;  %5524 = vrot.lane.b32.xlu0 %v5523_v52, %s5973_s25  ;;  %v1993_v36 = vadd.f32 %v7469_v45, %v7154_v10  ;;  %v10416_v45 = vld [vmem:[#allocation78_spill] sm:$0xff] }
 0x348   : > { %10402 = vst [vmem:[#allocation131_spill] sm:$0xff] %v7547_v31  ;;  %v2010_v3 = vpop.f32.mrb[59].mxu1  ;;  %10407 = vst [vmem:[#allocation135_spill] sm:$0xff] %v7566_v21  ;;  %v10411_v21 = vld [vmem:[#allocation79_spill] sm:$0xff]  ;;  %v2127_v18 = vmul.f32 %v7117_v12, %v1933_v48  ;;  %vm2084_vm2 = vcmp.gt.f32.partialorder %v1987_v51, 0.0  ;;  %v1999_v46 = vadd.f32 %v1998_v22, %v10413_v15  ;;  %v2232_v31 = vsel %vm2039_vm15, %v1782_v29, %v2136_v14 }
 0x349   : > { %v1794_v1 = vadd.f32 %v10412_v44, %v10411_v21  ;;  %vm2030_vm3 = vcmp.gt.f32.partialorder %v1933_v48, 0.0  ;;  %v10414_v44 = vld [vmem:[#allocation72_spill] sm:$0xff]  ;;  %v2133_v41 = vmul.f32 %v7117_v12, %v1939_v59  ;;  %v2238_v47 = vsel %vm2045_vm0, %v1788_v62, %v2142_v50 }
 0x34a   : > { %v7593_v63 = vadd.f32 %v10414_v44, %v7245_v39  ;;  %vm2036_vm4 = vcmp.gt.f32.partialorder %v1939_v59, 0.0  ;;  %v1945_v10 = vadd.f32 %v10416_v45, %v7255_v16  ;;  %v2271_v0 = vsel %vm2078_vm1, %v1981_v42, %v2175_v34 }
 0x34b   : > { %v2148_v52 = vmul.f32 %v7117_v12, %v1794_v1  ;;  %vm2051_vm5 = vcmp.gt.f32.partialorder %v1794_v1, 0.0  ;;  %v2277_v6 = vsel %vm2084_vm2, %v1987_v51, %v2181_v7  ;;  %v2187_v22 = vmul.f32 %v7117_v12, %v1993_v36  ;;  %v10420_v7 = vld [vmem:[#allocation84_spill] sm:$0xff]  ;;  %v10421_v51 = vld [vmem:[#allocation85_spill] sm:$0xff] }
 0x34c   : > { %10415 = vst [vmem:[#allocation74_spill] sm:$0xff] %v7593_v63  ;;  %v10417_v29 = vpack.i.bf16 %v7445_v9, %v7448_v13  ;;  %v7605_v14 = vmul.f32 %v6423_v35, %v2232_v31  ;;  %v7607_v62 = vsel %vm2030_vm3, %v1933_v48, %v2127_v18  ;;  %vm2090_vm6 = vcmp.gt.f32.partialorder %v1993_v36, 0.0  ;;  %v10446_v63 = vld [vmem:[#allocation95_spill] sm:$0xff] }
 0x34d   : > { %v2193_v50 = vmul.f32 %v7117_v12, %v1999_v46  ;;  %v7611_v44 = vmul.f32 %v6423_v35, %v2238_v47  ;;  %v7613_v42 = vsel %vm2036_vm4, %v1939_v59, %v2133_v41  ;;  %v1800_v34 = vadd.f32 %v10421_v51, %v10420_v7 }
 0x34e   : > { %5529 = vrot.lane.b32.xlu0 %v10417_v29, %s5973_s25  ;;  %10418 = vst [vmem:[#allocation80_spill] sm:$0xff] %v7605_v14  ;;  %vm2096_vm7 = vcmp.gt.f32.partialorder %v1999_v46, 0.0  ;;  %v2244_v45 = vsel %vm2051_vm5, %v1794_v1, %v2148_v52  ;;  %v10422_v29 = vld [vmem:[#allocation83_spill] sm:$0xff]  ;;  %v7620_v31 = vmul.f32 %v10403_v4, %v2271_v0  ;;  %v7623_v18 = vmul.f32 %v10403_v4, %v2277_v6 }
 0x34f   : > { %10419 = vst [vmem:[#allocation54_spill] sm:$0xff] %v7611_v44  ;;  %v1951_v13 = vadd.f32 %v10422_v29, %v7265_v53  ;;  %vm2042_vm8 = vcmp.gt.f32.partialorder %v1945_v10, 0.0  ;;  %v2139_v47 = vmul.f32 %v7117_v12, %v1945_v10  ;;  %v2283_v48 = vsel %vm2090_vm6, %v1993_v36, %v2187_v22  ;;  %v10427_v36 = vld [vmem:[#allocation88_spill] sm:$0xff]  ;;  %v10445_v53 = vld [vmem:[#allocation102_spill] sm:$0xff] }
 0x350   : > { %10423 = vst [vmem:[#allocation72_spill] sm:$0xff] %v7620_v31  ;;  %10424 = vst [vmem:[#allocation78_spill] sm:$0xff] %v7623_v18  ;;  %v2005_v41 = vadd.f32 %v7529_v8, %v7181_v55  ;;  %v2289_v59 = vsel %vm2096_vm7, %v1999_v46, %v2193_v50  ;;  %v5538_v1 = vpack.i.bf16 %v7623_v18, %v7620_v31  ;;  %vm2057_vm9 = vcmp.gt.f32.partialorder %v1800_v34, 0.0  ;;  %v10430_v29 = vld [vmem:[#allocation92_spill] sm:$0xff] }
 0x351   : > { %v7632_v52 = vmul.f32 %v6339_v24, %v7486_v23  ;;  %v2011_v0 = vadd.f32 %v2010_v3, %v7197_v56  ;;  %v7636_v6 = vmul.f32 %v6423_v35, %v2244_v45  ;;  %v2154_v51 = vmul.f32 %v7117_v12, %v1800_v34 }
 0x352   : > { %vm2102_vm10 = vcmp.gt.f32.partialorder %v2005_v41, 0.0  ;;  %vm2048_vm14 = vcmp.gt.f32.partialorder %v1951_v13, 0.0  ;;  %v2145_v8 = vmul.f32 %v7117_v12, %v1951_v13  ;;  %v1957_v46 = vadd.f32 %v10427_v36, %v10411_v21  ;;  %5539 = vrot.lane.b32.xlu1 %v5538_v1, %s5973_s25 }
 0x353   : > { %10425 = vst [vmem:[#allocation85_spill] sm:$0xff] %v7632_v52  ;;  %10426 = vst [vmem:[#allocation83_spill] sm:$0xff] %v7636_v6  ;;  %v2199_v23 = vmul.f32 %v7117_v12, %v2005_v41  ;;  %vm2108_vm15 = vcmp.gt.f32.partialorder %v2011_v0, 0.0  ;;  %v2205_v3 = vmul.f32 %v7117_v12, %v2011_v0  ;;  %v7646_v22 = vmul.f32 %v10403_v4, %v2283_v48 }
 0x354   : > { %v7649_v50 = vmul.f32 %v10403_v4, %v2289_v59  ;;  %v2235_v45 = vsel %vm2042_vm8, %v1945_v10, %v2139_v47  ;;  %v1963_v9 = vadd.f32 %v10430_v29, %v10420_v7  ;;  %v5543_v1 = vpack.i.bf16 %v7496_v17, %v7632_v52  ;;  %v10432_v10 = vld [vmem:[#allocation89_spill] sm:$0xff] }
 0x355   : > { %10428 = vst [vmem:[#allocation88_spill] sm:$0xff] %v7646_v22  ;;  %v2295_v39 = vsel %vm2102_vm10, %v2005_v41, %v2199_v23  ;;  %v2250_v36 = vsel %vm2057_vm9, %v1800_v34, %v2154_v51  ;;  %v2301_v21 = vsel %vm2108_vm15, %v2011_v0, %v2205_v3  ;;  %v7661_v48 = vmul.f32 %v6339_v24, %v7518_v49  ;;  %v10435_v51 = vld [vmem:[#allocation91_spill] sm:$0xff]  ;;  %v10443_v7 = vld [vmem:[#allocation101_spill] sm:$0xff] }
 0x356   : > { %10429 = vst [vmem:[#allocation136_spill] sm:$0xff] %v7649_v50  ;;  %v5548_v16 = vpack.i.bf16 %v7649_v50, %v7646_v22  ;;  %v2241_v59 = vsel %vm2048_vm14, %v1951_v13, %v2145_v8  ;;  %v7666_v47 = vadd.f32 %v10432_v10, %v7108_v25  ;;  %5544 = vrot.lane.b32.xlu1 %v5543_v1, %s5973_s25  ;;  %vm2054_vm0 = vcmp.gt.f32.partialorder %v1957_v46, 0.0  ;;  %v10478_v50 = vld [vmem:[#allocation103_spill] sm:$0xff] }
 0x357   : > { %10431 = vst [vmem:[#allocation92_spill] sm:$0xff] %v7661_v48  ;;  %v7670_v41 = vmul.f32 %v10403_v4, %v2295_v39  ;;  %v7673_v34 = vmul.f32 %v10403_v4, %v2301_v21  ;;  %v2151_v0 = vmul.f32 %v7117_v12, %v1957_v46  ;;  %v1808_v49 = vadd.f32 %v10435_v51, %v7108_v25 }
 0x358   : > { %5549 = vrot.lane.b32.xlu0 %v5548_v16, %s5973_s25  ;;  %v7681_v13 = vmul.f32 %v6339_v24, %v7409_v33  ;;  %v7685_v8 = vmul.f32 %v6339_v24, %v7424_v57  ;;  %v7688_v39 = vmul.f32 %v6423_v35, %v2250_v36  ;;  %v2157_v21 = vmul.f32 %v7117_v12, %v1963_v9  ;;  %v10440_v36 = vld [vmem:[#allocation98_spill] sm:$0xff]  ;;  %v10447_v35 = vld [vmem:[#allocation100_spill] sm:$0xff] }
 0x359   : > { %10433 = vst [vmem:[#allocation89_spill] sm:$0xff] %v7670_v41  ;;  %10434 = vst [vmem:[#allocation137_spill] sm:$0xff] %v7673_v34  ;;  %v5558_v23 = vpack.i.bf16 %v7673_v34, %v7670_v41  ;;  %v5553_v16 = vpack.i.bf16 %v7521_v2, %v7661_v48  ;;  %v7699_v3 = vmul.f32 %v6339_v24, %v7430_v26  ;;  %vm2063_vm1 = vcmp.gt.f32.partialorder %v7666_v47, 0.0  ;;  %v10441_v2 = vld [vmem:[#allocation93_spill] sm:$0xff]  ;;  %v10474_v48 = vld [vmem:[#allocation120_spill] sm:$0xff] }
 0x35a   : > { %10436 = vst [vmem:[#allocation91_spill] sm:$0xff] %v7681_v13  ;;  %10437 = vst [vmem:[#allocation138_spill] sm:$0xff] %v7688_v39  ;;  %v5588_v33 = vpack.i.bf16 %v7685_v8, %v7681_v13  ;;  %v7703_v57 = vmul.f32 %v6339_v24, %v7439_v27  ;;  %v2160_v29 = vmul.f32 %v7117_v12, %v7666_v47  ;;  %vm2060_vm2 = vcmp.gt.f32.partialorder %v1963_v9, 0.0 }
 0x35b   : > { %10438 = vst [vmem:[#allocation139_spill] sm:$0xff] %v7699_v3  ;;  %5559 = vrot.lane.b32.xlu1 %v5558_v23, %s5973_s25  ;;  %v7711_v1 = vmul.f32 %v6339_v24, %v7340_v32  ;;  %v7715_v26 = vmul.f32 %v6339_v24, %v10440_v36  ;;  %v2247_v10 = vsel %vm2054_vm0, %v1957_v46, %v2151_v0  ;;  %vm2064_vm3 = vcmp.gt.f32.partialorder %v1808_v49, 0.0  ;;  %v10442_v32 = vld [vmem:[#allocation97_spill] sm:$0xff]  ;;  %v10444_v24 = vld [vmem:[#allocation94_spill] sm:$0xff] }
 0x35c   : > { %10439 = vst [vmem:[#allocation140_spill] sm:$0xff] %v7703_v57  ;;  %v2161_v27 = vmul.f32 %v7117_v12, %v1808_v49  ;;  %5554 = vrot.lane.b32.xlu0 %v5553_v16, %s5973_s25  ;;  %v7723_v23 = vadd.f32 %v10441_v2, %v7115_v61  ;;  %v1814_v17 = vadd.f32 %v10442_v32, %v7115_v61  ;;  %v10448_v32 = vld [vmem:[#allocation106_spill] sm:$0xff] }
 0x35d   : > { %v5568_v36 = vpack.i.bf16 %v7539_v20, %v10443_v7  ;;  %v2253_v0 = vsel %vm2060_vm2, %v1963_v9, %v2157_v21  ;;  %v1967_v16 = vadd.f32 %v10444_v24, %v7108_v25  ;;  %v1820_v51 = vadd.f32 %v10445_v53, %v7132_v54 }
 0x35e   : > { %v5563_v2 = vpack.i.bf16 %v7507_v37, %v10446_v63  ;;  %v1973_v55 = vadd.f32 %v10447_v35, %v7115_v61  ;;  %v1826_v39 = vadd.f32 %v10448_v32, %v7148_v43  ;;  %v7744_v9 = vmul.f32 %v10403_v4, %v7562_v38 }
 0x35f   : > { %5569 = vrot.lane.b32.xlu1 %v5568_v36, %s5974_s16  ;;  %v7748_v24 = vmul.f32 %v10403_v4, %v7579_v11  ;;  %v7753_v25 = vmul.f32 %v10403_v4, %v7607_v62  ;;  %v7757_v35 = vmul.f32 %v10403_v4, %v7613_v42  ;;  %v7760_v61 = vmul.f32 %v10403_v4, %v2235_v45  ;;  %v10455_v11 = vld [vmem:[#allocation99_spill] sm:$0xff] }
 0x360   : > { %5564 = vrot.lane.b32.xlu0 %v5563_v2, %s5974_s16  ;;  %v7763_v53 = vmul.f32 %v10403_v4, %v2241_v59  ;;  %v5578_v38 = vpack.i.bf16 %v7560_v30, %v7412_v58  ;;  %v7770_v21 = vmul.f32 %v10403_v4, %v2247_v10  ;;  %v7773_v62 = vmul.f32 %v10403_v4, %v2253_v0  ;;  %v10456_v4 = vld [vmem:[#allocation104_spill] sm:$0xff] }
 0x361   : > { %10449 = vst [vmem:[#allocation98_spill] sm:$0xff] %v7753_v25  ;;  %10450 = vst [vmem:[#allocation93_spill] sm:$0xff] %v7760_v61  ;;  %v2257_v42 = vsel %vm2064_vm3, %v1808_v49, %v2161_v27  ;;  %vm2070_vm4 = vcmp.gt.f32.partialorder %v1814_v17, 0.0  ;;  %v2167_v36 = vmul.f32 %v7117_v12, %v1814_v17  ;;  %vm2065_vm5 = vcmp.gt.f32.partialorder %v1967_v16, 0.0  ;;  %v10479_v18 = vld [vmem:[#allocation138_spill] sm:$0xff] }
 0x362   : > { %10451 = vst [vmem:[#allocation97_spill] sm:$0xff] %v7763_v53  ;;  %10452 = vst [vmem:[#allocation94_spill] sm:$0xff] %v7770_v21  ;;  %v2162_v2 = vmul.f32 %v7117_v12, %v1967_v16  ;;  %vm2076_vm6 = vcmp.gt.f32.partialorder %v1820_v51, 0.0  ;;  %v2173_v49 = vmul.f32 %v7117_v12, %v1820_v51  ;;  %v2168_v27 = vmul.f32 %v7117_v12, %v1973_v55 }
 0x363   : > { %10453 = vst [vmem:[#allocation102_spill] sm:$0xff] %v7773_v62  ;;  %5579 = vrot.lane.b32.xlu1 %v5578_v38, %s5974_s16  ;;  %v10454_v0 = vpack.i.bf16 %v7452_v28, %v7473_v40  ;;  %vm2071_vm7 = vcmp.gt.f32.partialorder %v1973_v55, 0.0  ;;  %v2179_v59 = vmul.f32 %v7117_v12, %v1826_v39  ;;  %v7801_v45 = vsel %vm2063_vm1, %v7666_v47, %v2160_v29  ;;  %v10457_v29 = vld [vmem:[#allocation37_spill] sm:$0xff] }
 0x364   : > { %vm2082_vm8 = vcmp.gt.f32.partialorder %v1826_v39, 0.0  ;;  %v5583_v32 = vpack.i.bf16 %v7571_v60, %v7427_v5  ;;  %v2263_v46 = vsel %vm2070_vm4, %v1814_v17, %v2167_v36  ;;  %v2258_v38 = vsel %vm2065_vm5, %v1967_v16, %v2162_v2  ;;  %v10459_v60 = vld [vmem:[#allocation105_spill] sm:$0xff]  ;;  %v10464_v2 = vld [vmem:[#allocation112_spill] sm:$0xff] }
 0x365   : > { %5574 = vrot.lane.b32.xlu0 %v10454_v0, %s5974_s16  ;;  %v7805_v0 = vadd.f32 %v10455_v11, %v7132_v54  ;;  %v7813_v10 = vadd.f32 %v10456_v4, %v7148_v43  ;;  %v7819_v11 = vmul.f32 %v10457_v29, %v2257_v42  ;;  %v2269_v30 = vsel %vm2076_vm6, %v1820_v51, %v2173_v49 }
 0x366   : > { %v2264_v20 = vsel %vm2071_vm7, %v1973_v55, %v2168_v27  ;;  %v1979_v17 = vadd.f32 %v10459_v60, %v7132_v54  ;;  %v7827_v4 = vmul.f32 %v7117_v12, %v7723_v23  ;;  %v2275_v16 = vsel %vm2082_vm8, %v1826_v39, %v2179_v59  ;;  %v10461_v55 = vld [vmem:[#allocation39_spill] sm:$0xff]  ;;  %v10463_v54 = vld [vmem:[#allocation109_spill] sm:$0xff] }
 0x367   : > { %5589 = vrot.lane.b32.xlu1 %v5588_v33, %s5974_s16  ;;  %10458 = vst [vmem:[#allocation100_spill] sm:$0xff] %v7819_v11  ;;  %v5598_v33 = vpack.i.bf16 %v7611_v44, %v7455_v19  ;;  %v7834_v36 = vmul.f32 %v10457_v29, %v2263_v46  ;;  %v7837_v51 = vmul.f32 %v10461_v55, %v2258_v38  ;;  %v7854_v46 = vpop.permute.xlu0 %5504  ;;  %v10469_v38 = vld [vmem:[#allocation111_spill] sm:$0xff]  ;;  %v10471_v44 = vld [vmem:[#allocation96_spill] sm:$0xff]  ;;  %vm2069_vm15 = vcmp.gt.f32.partialorder %v7723_v23, 0.0 }
 0x368   : > { %v1985_v60 = vadd.f32 %v10463_v54, %v7148_v43  ;;  %v5593_v49 = vpack.i.bf16 %v7605_v14, %v10464_v2  ;;  %v7844_v39 = vmul.f32 %v10457_v29, %v2269_v30  ;;  %v7847_v59 = vmul.f32 %v10461_v55, %v2264_v20  ;;  %v10468_v30 = vld [vmem:[#allocation50_spill] sm:$0xff] }
 0x369   : > { %5584 = vrot.lane.b32.xlu0 %v5583_v32, %s5974_s16  ;;  %10460 = vst [vmem:[#allocation106_spill] sm:$0xff] %v7834_v36  ;;  %10462 = vst [vmem:[#allocation99_spill] sm:$0xff] %v7837_v51  ;;  %v7851_v27 = vmul.f32 %v7117_v12, %v7813_v10  ;;  %v7859_v32 = vmul.f32 %v10457_v29, %v2275_v16  ;;  %vm2077_vm9 = vcmp.gt.f32.partialorder %v1979_v17, 0.0  ;;  %vm2075_vm2 = vcmp.gt.f32.partialorder %v7805_v0, 0.0 }
 0x36a   : > { %10465 = vst [vmem:[#allocation104_spill] sm:$0xff] %v7844_v39  ;;  %10466 = vst [vmem:[#allocation105_spill] sm:$0xff] %v7847_v59  ;;  %v1832_v54 = vadd.f32 %v10469_v38, %v10468_v30  ;;  %v2174_v42 = vmul.f32 %v7117_v12, %v1979_v17  ;;  %v5608_v43 = vpack.i.bf16 %v7636_v6, %v10471_v44  ;;  %vm2083_vm10 = vcmp.gt.f32.partialorder %v1985_v60, 0.0  ;;  %v10475_v38 = vld [vmem:[#allocation117_spill] sm:$0xff] }
 0x36b   : > { %5599 = vrot.lane.b32.xlu1 %v5598_v33, %s5974_s16  ;;  %10467 = vst [vmem:[#allocation109_spill] sm:$0xff] %v7859_v32  ;;  %v10470_v33 = vld [vmem:[#allocation118_spill] sm:$0xff]  ;;  %v2180_v20 = vmul.f32 %v7117_v12, %v1985_v60  ;;  %v1997_v13 = vadd.f32 %v10474_v48, %v10413_v15  ;;  %v1991_v6 = vadd.f32 %v10475_v38, %v10468_v30  ;;  %v10477_v38 = vld [vmem:[#allocation128_spill] sm:$0xff]  ;;  %v10480_v48 = vunpack.i.h.bf16 %v7854_v46 }
 0x36c   : > { %v1838_v47 = vadd.f32 %v10470_v33, %v10413_v15  ;;  %v7881_v33 = vpop.permute.xlu1 %5509  ;;  %v10476_v52 = vpack.i.bf16 %v7703_v57, %v7699_v3  ;;  %v2270_v16 = vsel %vm2077_vm9, %v1979_v17, %v2174_v42  ;;  %v2185_v31 = vmul.f32 %v7117_v12, %v1832_v54 }
 0x36d   : > { %5594 = vrot.lane.b32.xlu0 %v5593_v49, %s5974_s16  ;;  %v1850_v22 = vadd.f32 %v10477_v38, %v7197_v56  ;;  %v10482_v49 = vunpack.i.h.bf16 %v7881_v33  ;;  %v10483_v17 = vunpack.i.l.bf16 %v7881_v33  ;;  %v2276_v41 = vsel %vm2083_vm10, %v1985_v60, %v2180_v20  ;;  %v10484_v38 = vld [vmem:[#allocation131_spill] sm:$0xff]  ;;  %v10488_v20 = vld [vmem:[#allocation125_spill] sm:$0xff] }
 0x36e   : > { %vm2094_vm14 = vcmp.gt.f32.partialorder %v1838_v47, 0.0  ;;  %v2191_v14 = vmul.f32 %v7117_v12, %v1838_v47  ;;  %v2192_v34 = vmul.f32 %v7117_v12, %v1997_v13  ;;  %v2009_v3 = vadd.f32 %v10484_v38, %v7197_v56 }
 0x36f   : > { %5609 = vrot.lane.b32.xlu1 %v5608_v43, %s5974_s16  ;;  %v10481_v43 = vunpack.i.l.bf16 %v7854_v46  ;;  %v2555_v42 = vsel %vm1219_vm11, %v10483_v17, %v10482_v49  ;;  %vm2088_vm0 = vcmp.gt.f32.partialorder %v1832_v54, 0.0  ;;  %v10487_v49 = vld [vmem:[#allocation122_spill] sm:$0xff]  ;;  %vm2095_vm1 = vcmp.gt.f32.partialorder %v1997_v13, 0.0 }
 0x370   : > { %v2287_v60 = vsel %vm2094_vm14, %v1838_v47, %v2191_v14  ;;  %vm2089_vm3 = vcmp.gt.f32.partialorder %v1991_v6, 0.0  ;;  %v7937_v38 = vmul.f32 %v10461_v55, %v2276_v41  ;;  %v2281_v14 = vsel %vm2088_vm0, %v1832_v54, %v2185_v31  ;;  %v10492_v41 = vld [vmem:[#allocation124_spill] sm:$0xff] }
 0x371   : > { %5604 = vrot.lane.b32.xlu0 %v10476_v52, %s5974_s16  ;;  %v5613_v52 = vpack.i.bf16 %v10479_v18, %v10478_v50  ;;  %v2550_v37 = vsel %vm1219_vm11, %v10481_v43, %v10480_v48  ;;  %v10485_v18 = vpack.i.bf16 %v7715_v26, %v7711_v1  ;;  %v2186_v48 = vmul.f32 %v7117_v12, %v1991_v6  ;;  %v10486_v43 = vld [vmem:[#allocation56_spill] sm:$0xff] }
 0x372   : > { %v5002_v57 = vpack.c.bf16 %v2555_v42, %v2550_v37  ;;  %v1844_v17 = vadd.f32 %v10487_v49, %v10486_v43  ;;  %v5628_v37 = vpack.i.bf16 %v7834_v36, %v7819_v11  ;;  %v7934_v42 = vmul.f32 %v10461_v55, %v2270_v16  ;;  %10490 = vst [vmem:[#allocation111_spill] sm:$0xff] %v7937_v38 }
 0x373   : > { %5619 = vrot.lane.b32.xlu1 %v10485_v18, %s5974_s16  ;;  %v2003_v18 = vadd.f32 %v10488_v20, %v10486_v43  ;;  %v5623_v49 = vpack.i.bf16 %v7847_v59, %v7837_v51  ;;  %v2288_v47 = vsel %vm2095_vm1, %v1997_v13, %v2192_v34  ;;  %vm2106_vm4 = vcmp.gt.f32.partialorder %v1850_v22, 0.0  ;;  %v10493_v13 = vld [vmem:[#allocation129_spill] sm:$0xff] }
 0x374   : > { %5003 = vmatprep.subr.bf16.mxu0 %v5002_v57  ;;  %10489 = vst [vmem:[#allocation50_spill] sm:$0xff] %v7934_v42  ;;  %v2204_v20 = vmul.f32 %v7117_v12, %v2009_v3  ;;  %v7945_v57 = vmul.f32 %v10457_v29, %v2287_v60  ;;  %v2282_v16 = vsel %vm2089_vm3, %v1991_v6, %v2186_v48  ;;  %vm2107_vm5 = vcmp.gt.f32.partialorder %v2009_v3, 0.0 }
 0x375   : > { %5614 = vrot.lane.b32.xlu0 %v5613_v52, %s5974_s16  ;;  %v2203_v52 = vmul.f32 %v7117_v12, %v1850_v22  ;;  %v2197_v36 = vmul.f32 %v7117_v12, %v1844_v17  ;;  %vm2100_vm6 = vcmp.gt.f32.partialorder %v1844_v17, 0.0  ;;  %v1848_v59 = vadd.f32 %v10492_v41, %v7197_v56  ;;  %v10496_v56 = vld [vmem:[#allocation116_spill] sm:$0xff] }
 0x376   : > { %10491 = vst [vmem:[#allocation118_spill] sm:$0xff] %v7945_v57  ;;  %v2198_v31 = vmul.f32 %v7117_v12, %v2003_v18  ;;  %v5638_v34 = vpack.i.bf16 %v7859_v32, %v7844_v39  ;;  %vm2023_vm7 = vcmp.gt.f32.partialorder %v10493_v13, 0.0  ;;  %v7956_v54 = vmul.f32 %v10461_v55, %v2288_v47 }
 0x377   : > { %5629 = vrot.lane.b32.xlu1 %v5628_v37, %s5973_s25  ;;  %v2299_v6 = vsel %vm2106_vm4, %v1850_v22, %v2203_v52  ;;  %vm2101_vm8 = vcmp.gt.f32.partialorder %v2003_v18, 0.0  ;;  %v5633_v48 = vpack.i.bf16 %v7937_v38, %v7934_v42  ;;  %vm2081_vm9 = vcmp.gt.f32.partialorder %v7813_v10, 0.0  ;;  %v10498_v52 = vld [vmem:[#allocation119_spill] sm:$0xff] }
 0x378   : > { %10494 = vst [vmem:[#allocation120_spill] sm:$0xff] %v7956_v54  ;;  %v7962_v60 = vmul.f32 %v10457_v29, %v2281_v14  ;;  %v1836_v37 = vadd.f32 %v10496_v56, %v10413_v15  ;;  %v2172_v47 = vmul.f32 %v7117_v12, %v7805_v0  ;;  %v7970_v22 = vmul.f32 %v10461_v55, %v2282_v16  ;;  %v10499_v14 = vld [vmem:[#allocation108_spill] sm:$0xff] }
 0x379   : > { %5624 = vrot.lane.b32.xlu0 %v5623_v49, %s5973_s25  ;;  %v2300_v49 = vsel %vm2107_vm5, %v2009_v3, %v2204_v20  ;;  %v1842_v41 = vadd.f32 %v10498_v52, %v10486_v43  ;;  %v2293_v38 = vsel %vm2100_vm6, %v1844_v17, %v2197_v36  ;;  %v1830_v42 = vadd.f32 %v10499_v14, %v10468_v30 }
 0x37a   : > { %10495 = vst [vmem:[#allocation117_spill] sm:$0xff] %v7962_v60  ;;  %10497 = vst [vmem:[#allocation128_spill] sm:$0xff] %v7970_v22  ;;  %v7979_v15 = vmul.f32 %v10457_v29, %v2299_v6  ;;  %v2294_v3 = vsel %vm2101_vm8, %v2003_v18, %v2198_v31  ;;  %v5648_v20 = vpack.i.bf16 %v7945_v57, %v7962_v60  ;;  %vm2105_vm10 = vcmp.gt.f32.partialorder %v1848_v59, 0.0 }
 0x37b   : > { %5639 = vrot.lane.b32.xlu1 %v5638_v34, %s5973_s25  ;;  %v2274_v16 = vsel %vm2081_vm9, %v7813_v10, %v7851_v27  ;;  %v2202_v34 = vmul.f32 %v7117_v12, %v1848_v59  ;;  %v7987_v43 = vmul.f32 %v10461_v55, %v2300_v49  ;;  %v5643_v36 = vpack.i.bf16 %v7956_v54, %v7970_v22  ;;  %v10507_v49 = vld [vmem:[#allocation127_spill] sm:$0xff]  ;;  %v10524_v54 = vld [vmem:[#allocation90_spill] sm:$0xff] }
 0x37c   : > { %10500 = vst [vmem:[#allocation131_spill] sm:$0xff] %v7979_v15  ;;  %v2262_v30 = vsel %vm2069_vm15, %v7723_v23, %v7827_v4  ;;  %v2190_v17 = vmul.f32 %v7117_v12, %v1836_v37  ;;  %v7997_v18 = vmul.f32 %v10457_v29, %v2293_v38  ;;  %v2268_v10 = vsel %vm2075_vm2, %v7805_v0, %v2172_v47  ;;  %v10504_v23 = vld [vmem:[#allocation27_spill] sm:$0xff] }
 0x37d   : > { %5634 = vrot.lane.b32.xlu0 %v5633_v48, %s5973_s25  ;;  %10501 = vst [vmem:[#allocation56_spill] sm:$0xff] %v7987_v43  ;;  %vm2093_vm14 = vcmp.gt.f32.partialorder %v1836_v37, 0.0  ;;  %v2196_v27 = vmul.f32 %v7117_v12, %v1842_v41  ;;  %v8005_v31 = vmul.f32 %v10461_v55, %v2294_v3  ;;  %v8009_v4 = vmul.f32 %v10504_v23, %v2274_v16  ;;  %v10509_v3 = vld [vmem:[#allocation65_spill] sm:$0xff] }
 0x37e   : > { %10502 = vst [vmem:[#allocation122_spill] sm:$0xff] %v7997_v18  ;;  %v2184_v38 = vmul.f32 %v7117_v12, %v1830_v42  ;;  %vm2099_vm15 = vcmp.gt.f32.partialorder %v1842_v41, 0.0  ;;  %v5658_v6 = vpack.i.bf16 %v7979_v15, %v7997_v18  ;;  %v8015_v48 = vmul.f32 %v10504_v23, %v2262_v30 }
 0x37f   : > { %5649 = vrot.lane.b32.xlu1 %v5648_v20, %s5973_s25  ;;  %10503 = vst [vmem:[#allocation125_spill] sm:$0xff] %v8005_v31  ;;  %10505 = vst [vmem:[#allocation124_spill] sm:$0xff] %v8009_v4  ;;  %vm2087_vm0 = vcmp.gt.f32.partialorder %v1830_v42, 0.0  ;;  %v2298_v0 = vsel %vm2105_vm10, %v1848_v59, %v2202_v34  ;;  %v5653_v56 = vpack.i.bf16 %v7987_v43, %v8005_v31  ;;  %vm2017_vm1 = vcmp.gt.f32.partialorder %v10507_v49, 0.0  ;;  %v10510_v20 = vld [vmem:[#allocation68_spill] sm:$0xff]  ;;  %v10516_v43 = vld [vmem:[#allocation81_spill] sm:$0xff] }
 0x380   : > { %10506 = vst [vmem:[#allocation129_spill] sm:$0xff] %v8015_v48  ;;  %v8021_v47 = vmul.f32 %v10504_v23, %v2268_v10  ;;  %v2286_v52 = vsel %vm2093_vm14, %v1836_v37, %v2190_v17  ;;  %v2114_v14 = vmul.f32 %v7117_v12, %v10507_v49  ;;  %v1931_v16 = vadd.f32 %v10510_v20, %v10509_v3 }
 0x381   : > { %5644 = vrot.lane.b32.xlu0 %v5643_v36, %s5973_s25  ;;  %v8030_v59 = vmul.f32 %v10504_v23, %v7801_v45  ;;  %v2292_v34 = vsel %vm2099_vm15, %v1842_v41, %v2196_v27  ;;  %v10512_v36 = vld [vmem:[#allocation135_spill] sm:$0xff]  ;;  %v2280_v30 = vsel %vm2087_vm0, %v1830_v42, %v2184_v38  ;;  %v8038_v17 = vmul.f32 %v10504_v23, %v2298_v0  ;;  %v10520_v0 = vld [vmem:[#allocation76_spill] sm:$0xff] }
 0x382   : > { %10508 = vst [vmem:[#allocation116_spill] sm:$0xff] %v8021_v47  ;;  %v2216_v37 = vsel %vm2023_vm7, %v10493_v13, %v10512_v36  ;;  %v5668_v10 = vpack.i.bf16 %v8009_v4, %v8021_v47  ;;  %v10515_v45 = vld [vmem:[#allocation75_spill] sm:$0xff]  ;;  %v8047_v27 = vmul.f32 %v10504_v23, %v2286_v52  ;;  %v8053_v42 = vmul.f32 %v10504_v23, %v2292_v34 }
 0x383   : > { %5659 = vrot.lane.b32.xlu1 %v5658_v6, %s5973_s25  ;;  %10511 = vst [vmem:[#allocation119_spill] sm:$0xff] %v8030_v59  ;;  %10513 = vst [vmem:[#allocation108_spill] sm:$0xff] %v8038_v17  ;;  %v10514_v6 = vld [vmem:[#allocation74_spill] sm:$0xff]  ;;  %v1949_v41 = vadd.f32 %v10516_v43, %v10515_v45  ;;  %v2210_v13 = vsel %vm2017_vm1, %v10507_v49, %v2114_v14  ;;  %v2126_v38 = vmul.f32 %v7117_v12, %v1931_v16  ;;  %v10519_v43 = vld [vmem:[#allocation71_spill] sm:$0xff] }
 0x384   : > { %v2132_v20 = vmul.f32 %v7117_v12, %v10514_v6  ;;  %10517 = vst [vmem:[#allocation127_spill] sm:$0xff] %v8047_v27  ;;  %vm2035_vm2 = vcmp.gt.f32.partialorder %v10514_v6, 0.0  ;;  %10518 = vst [vmem:[#allocation65_spill] sm:$0xff] %v8053_v42  ;;  %v1943_v52 = vadd.f32 %v10520_v0, %v10519_v43  ;;  %v8063_v36 = vmul.f32 %v10504_v23, %v2280_v30  ;;  %v10523_v14 = vld [vmem:[#allocation84_spill] sm:$0xff]  ;;  %v10528_v0 = vld [vmem:[#allocation86_spill] sm:$0xff] }
 0x385   : > { %5654 = vrot.lane.b32.xlu0 %v5653_v56, %s5973_s25  ;;  %v5663_v56 = vpack.i.bf16 %v8015_v48, %v8030_v59  ;;  %v8067_v31 = vmul.f32 %v10461_v55, %v2216_v37  ;;  %vm2029_vm3 = vcmp.gt.f32.partialorder %v1931_v16, 0.0  ;;  %v5678_v34 = vpack.i.bf16 %v8038_v17, %v8053_v42  ;;  %v10529_v17 = vld [vmem:[#allocation59_spill] sm:$0xff]  ;;  %v10530_v42 = vld [vmem:[#allocation62_spill] sm:$0xff]  ;;  %v10584_v48 = vld [vmem:[#allocation121_spill] sm:$0xff] }
 0x386   : > { %10521 = vst [vmem:[#allocation68_spill] sm:$0xff] %v8063_v36  ;;  %v2144_v49 = vmul.f32 %v7117_v12, %v1949_v41  ;;  %v1961_v22 = vadd.f32 %v10524_v54, %v10523_v14  ;;  %v5673_v30 = vpack.i.bf16 %v8047_v27, %v8063_v36  ;;  %v8083_v37 = vmul.f32 %v10461_v55, %v2210_v13  ;;  %v10527_v54 = vld [vmem:[#allocation79_spill] sm:$0xff] }
 0x387   : > { %5669 = vrot.lane.b32.xlu1 %v5668_v10, %s5973_s25  ;;  %10522 = vst [vmem:[#allocation135_spill] sm:$0xff] %v8067_v31  ;;  %v2228_v10 = vsel %vm2035_vm2, %v10514_v6, %v2132_v20  ;;  %vm2047_vm4 = vcmp.gt.f32.partialorder %v1949_v41, 0.0  ;;  %v2222_v6 = vsel %vm2029_vm3, %v1931_v16, %v2126_v38  ;;  %v2138_v20 = vmul.f32 %v7117_v12, %v1943_v52  ;;  %v10532_v16 = vld [vmem:[#allocation67_spill] sm:$0xff]  ;;  %v10533_v38 = vld [vmem:[#allocation69_spill] sm:$0xff] }
 0x388   : > { %10526 = vst [vmem:[#allocation74_spill] sm:$0xff] %v8083_v37  ;;  %v1955_v23 = vadd.f32 %v10528_v0, %v10527_v54  ;;  %v1760_v15 = vadd.f32 %v10530_v42, %v10529_v17  ;;  %v8095_v13 = vmul.f32 %v10461_v55, %v2228_v10  ;;  %vm2041_vm5 = vcmp.gt.f32.partialorder %v1943_v52, 0.0  ;;  %v10534_v36 = vld [vmem:[#allocation63_spill] sm:$0xff]  ;;  %v10537_v17 = vld [vmem:[#allocation66_spill] sm:$0xff] }
 0x389   : > { %5664 = vrot.lane.b32.xlu0 %v5663_v56, %s5973_s25  ;;  %v8080_v56 = vld [vmem:[%s10525_s19 + $0x8] sm:$0xff]  ;;  %v1778_v18 = vadd.f32 %v10533_v38, %v10532_v16  ;;  %v2240_v27 = vsel %vm2047_vm4, %v1949_v41, %v2144_v49  ;;  %v2156_v0 = vmul.f32 %v7117_v12, %v1961_v22  ;;  %v8105_v57 = vmul.f32 %v10461_v55, %v2222_v6  ;;  %v10541_v38 = vld [vmem:[#allocation77_spill] sm:$0xff] }
 0x38a   : > { %2990 = vmatprep.mubr.f32.mxu0 %v8080_v56  ;;  %3079 = vmatprep.mubr.f32.mxu1 %v8080_v56  ;;  %10531 = vst [vmem:[#allocation75_spill] sm:$0xff] %v8095_v13  ;;  %vm2059_vm6 = vcmp.gt.f32.partialorder %v1961_v22, 0.0  ;;  %v1772_v42 = vadd.f32 %v10537_v17, %v10509_v3  ;;  %v2234_v10 = vsel %vm2041_vm5, %v1943_v52, %v2138_v20  ;;  %vm2016_vm7 = vcmp.gt.f32.partialorder %v1760_v15, 0.0  ;;  %v10540_v52 = vld [vmem:[#allocation87_spill] sm:$0xff] }
 0x38b   : > { %5679 = vrot.lane.b32.xlu1 %v5678_v34, %s5973_s25  ;;  %v5688_v34 = vpack.i.bf16 %v8067_v31, %v8083_v37  ;;  %10536 = vst [vmem:[#allocation81_spill] sm:$0xff] %v8105_v57  ;;  %v2150_v60 = vmul.f32 %v7117_v12, %v1955_v23  ;;  %v10538_v41 = vpack.i.bf16 %v7748_v24, %v7744_v9  ;;  %vm2053_vm8 = vcmp.gt.f32.partialorder %v1955_v23, 0.0 }
 0x38c   : > { %v5698_v49 = vpack.i.bf16 %v8095_v13, %v8105_v57  ;;  %v2113_v6 = vmul.f32 %v7117_v12, %v1760_v15  ;;  %v2131_v3 = vmul.f32 %v7117_v12, %v1778_v18  ;;  %v1802_v20 = vadd.f32 %v10540_v52, %v10523_v14  ;;  %v10601_v57 = vld [vmem:[#allocation85_spill] sm:$0xff] }
 0x38d   : > { %5674 = vrot.lane.b32.xlu0 %v5673_v30, %s5973_s25  ;;  %v10535_v30 = vld [vmem:[#allocation64_spill] sm:$0xff]  ;;  %vm2034_vm9 = vcmp.gt.f32.partialorder %v1778_v18, 0.0  ;;  %v2125_v17 = vmul.f32 %v7117_v12, %v1772_v42  ;;  %v2246_v47 = vsel %vm2053_vm8, %v1955_v23, %v2150_v60  ;;  %vm2028_vm14 = vcmp.gt.f32.partialorder %v1772_v42, 0.0 }
 0x38e   : > { %v1766_v51 = vadd.f32 %v10535_v30, %v10534_v36  ;;  %v8116_v36 = vmul.f32 %v10461_v55, %v2240_v27  ;;  %v1790_v30 = vadd.f32 %v10541_v38, %v10515_v45  ;;  %v8128_v27 = vmul.f32 %v10461_v55, %v2234_v10  ;;  %v10545_v45 = vld [vmem:[#allocation73_spill] sm:$0xff] }
 0x38f   : > { %5689 = vrot.lane.b32.xlu1 %v5688_v34, %s5974_s16  ;;  %v2252_v34 = vsel %vm2059_vm6, %v1961_v22, %v2156_v0  ;;  %v10544_v22 = vpack.i.bf16 %v7757_v35, %v7753_v25  ;;  %v1784_v14 = vadd.f32 %v10545_v45, %v10519_v43  ;;  %v2155_v52 = vmul.f32 %v7117_v12, %v1802_v20 }
 0x390   : > { %10539 = vst [vmem:[#allocation71_spill] sm:$0xff] %v8116_v36  ;;  %v2119_v16 = vmul.f32 %v7117_v12, %v1766_v51  ;;  %10542 = vst [vmem:[#allocation76_spill] sm:$0xff] %v8128_v27  ;;  %vm2022_vm10 = vcmp.gt.f32.partialorder %v1766_v51, 0.0  ;;  %v8141_v0 = vmul.f32 %v10461_v55, %v2252_v34  ;;  %v5708_v10 = vpack.i.bf16 %v8116_v36, %v8128_v27 }
 0x391   : > { %5684 = vrot.lane.b32.xlu0 %v10538_v41, %s5974_s16  ;;  %v10543_v41 = vld [vmem:[#allocation82_spill] sm:$0xff]  ;;  %v2143_v60 = vmul.f32 %v7117_v12, %v1790_v30  ;;  %vm2058_vm15 = vcmp.gt.f32.partialorder %v1802_v20, 0.0  ;;  %v8148_v23 = vmul.f32 %v10461_v55, %v2246_v47  ;;  %v2209_v43 = vsel %vm2016_vm7, %v1760_v15, %v2113_v6 }
 0x392   : > { %v1796_v4 = vadd.f32 %v10543_v41, %v10527_v54  ;;  %10546 = vst [vmem:[#allocation84_spill] sm:$0xff] %v8141_v0  ;;  %v2215_v54 = vsel %vm2022_vm10, %v1766_v51, %v2119_v16  ;;  %v2221_v38 = vsel %vm2028_vm14, %v1772_v42, %v2125_v17  ;;  %vm2046_vm0 = vcmp.gt.f32.partialorder %v1790_v30, 0.0 }
 0x393   : > { %5699 = vrot.lane.b32.xlu1 %v5698_v49, %s5974_s16  ;;  %v2227_v49 = vsel %vm2034_vm9, %v1778_v18, %v2131_v3  ;;  %10547 = vst [vmem:[#allocation90_spill] sm:$0xff] %v8148_v23  ;;  %v10548_v18 = vpack.i.bf16 %v7763_v53, %v7760_v61  ;;  %v2137_v3 = vmul.f32 %v7117_v12, %v1784_v14  ;;  %vm2040_vm2 = vcmp.gt.f32.partialorder %v1784_v14, 0.0 }
 0x394   : > { %v2149_v34 = vmul.f32 %v7117_v12, %v1796_v4  ;;  %v8158_v51 = vmul.f32 %v10457_v29, %v2227_v49  ;;  %vm2052_vm1 = vcmp.gt.f32.partialorder %v1796_v4, 0.0  ;;  %v5718_v47 = vpack.i.bf16 %v8141_v0, %v8148_v23 }
 0x395   : > { %5694 = vrot.lane.b32.xlu0 %v10544_v22, %s5974_s16  ;;  %v8164_v15 = vmul.f32 %v10457_v29, %v2215_v54  ;;  %v2251_v42 = vsel %vm2058_vm15, %v1802_v20, %v2155_v52  ;;  %v8167_v6 = vmul.f32 %v10457_v29, %v2221_v38  ;;  %v2239_v16 = vsel %vm2046_vm0, %v1790_v30, %v2143_v60  ;;  %v2903_v54 = vld [vmem:[%s10553_s9 + $0x8] sm:$0xff]  ;;  %v2902_v60 = vld [vmem:[%s10553_s9] sm:$0xff]  ;;  %v2904_v38 = vld [vmem:[%s10553_s9 + $0x10] sm:$0xff] }
 0x396   : > { %v8171_v17 = vmul.f32 %v10457_v29, %v2209_v43  ;;  %v2245_v41 = vsel %vm2052_vm1, %v1796_v4, %v2149_v34  ;;  %v10549_v12 = vpack.i.bf16 %v7773_v62, %v7770_v21  ;;  %v2233_v22 = vsel %vm2040_vm2, %v1784_v14, %v2137_v3  ;;  %v2905_v43 = vld [vmem:[%s10553_s9 + $0x18] sm:$0xff]  ;;  %v8213_v34 = vpop.permute.xlu0 %5519 }
 0x397   : > { %5709 = vrot.lane.b32.xlu1 %v5708_v10, %s5974_s16  ;;  %v8178_v45 = vmul.f32 %v10457_v29, %v2251_v42  ;;  %v5728_v20 = vpack.i.bf16 %v8158_v51, %v8167_v6  ;;  %v8183_v30 = vmul.f32 %v10457_v29, %v2239_v16  ;;  %v8188_v4 = vmul.f32 %v10457_v29, %v2245_v41 }
 0x398   : > { %v5723_v10 = vpack.i.bf16 %v8164_v15, %v8171_v17  ;;  %v8192_v49 = vmul.f32 %v10457_v29, %v2233_v22  ;;  %v10150_v3 = vunpack.i.h.bf16 %v8213_v34 }
 0x399   : > { %5704 = vrot.lane.b32.xlu0 %v10548_v18, %s5974_s16  ;;  %10550 = vst [vmem:[#allocation79_spill] sm:$0xff] %v8178_v45  ;;  %10551 = vst [vmem:[#allocation86_spill] sm:$0xff] %v8183_v30  ;;  %v5738_v14 = vpack.i.bf16 %v8178_v45, %v8188_v4  ;;  %v8215_v18 = vpop.permute.xlu1 %5514 }
 0x39a   : > { %10552 = vst [vmem:[#allocation59_spill] sm:$0xff] %v8188_v4  ;;  %v5733_v52 = vpack.i.bf16 %v8183_v30, %v8192_v49  ;;  %v10153_v42 = vunpack.i.h.bf16 %v8215_v18  ;;  %v5516_v16 = vunpack.i.l.bf16 %v8215_v18 }
 0x39b   : > { %5719 = vrot.lane.b32.xlu1 %v5718_v47, %s5974_s16  ;;  %v5521_v47 = vunpack.i.l.bf16 %v8213_v34 }
 0x39d   : > { %5714 = vrot.lane.b32.xlu0 %v10549_v12, %s5974_s16 }
 0x39f   : > { %5729 = vrot.lane.b32.xlu1 %v5728_v20, %s5974_s16  ;;  %v2565_v20 = vsel %vm1219_vm11, %v5521_v47, %v10150_v3  ;;  %v8243_v3 = vpop.permute.xlu1 %5534 }
 0x3a0   : > { %v10162_v29 = vunpack.i.h.bf16 %v8243_v3 }
 0x3a1   : > { %5724 = vrot.lane.b32.xlu0 %v5723_v10, %s5974_s16  ;;  %v10554_v10 = vunpack.i.l.bf16 %v7881_v33 }
 0x3a3   : > { %5739 = vrot.lane.b32.xlu1 %v5738_v14, %s5974_s16 }
 0x3a5   : > { %5734 = vrot.lane.b32.xlu0 %v5733_v52, %s5974_s16  ;;  %v10555_v52 = vunpack.i.l.bf16 %v7854_v46 }
 0x3a7   : > { %2913 = vperm.xlu1 %5382, %v2903_v54  }
 0x3a9   : > { %2908 = vperm.xlu0 %5381, %v2902_v60  }
 0x3ab   : > { %2923 = vperm.xlu1 %5382, %v2905_v43   ;;  %v2560_v43 = vsel %vm1219_vm11, %v5516_v16, %v10153_v42 }
 0x3ad   : > { %2918 = vperm.xlu0 %5381, %v2904_v38   ;;  %v5006_v38 = vpack.c.bf16 %v2565_v20, %v2560_v43 }
 0x3b9   : > { %v8221_v41 = vpop.permute.xlu0 %5524 }
 0x3ba   : > { %v10151_v12 = vunpack.i.h.bf16 %v8221_v41  ;;  %v10154_v22 = vunpack.i.l.bf16 %v8221_v41 }
 0x3bc   : > { %v2639_v14 = vsel %vm1219_vm11, %v10151_v12, %v10554_v10  ;;  %v2638_v54 = vsel %vm1219_vm11, %v10154_v22, %v10555_v52  ;;  %v5536_v52 = vunpack.i.l.bf16 %v8243_v3 }
 0x3bd   : > { %v5004_v60 = vpack.c.bf16 %v2639_v14, %v2638_v54 }
 0x3be   : > { %v2575_v0 = vsel %vm1219_vm11, %v5536_v52, %v10162_v29 }
 0x3bf   : > { %5005 = vmatpush1.bf16.msra.mxu0 %v5004_v60 }
 0x3c0   : > { %v8241_v55 = vpop.permute.xlu0 %5529  ;;  %5007 = vmatprep.subr.bf16.mxu0 %v5006_v38 }
 0x3c1   : > { %v10160_v10 = vunpack.i.h.bf16 %v8241_v55  ;;  %v5531_v12 = vunpack.i.l.bf16 %v8241_v55 }
 0x3c3   : > { %v2570_v60 = vsel %vm1219_vm11, %v5531_v12, %v10160_v10 }
 0x3c4   : > { %v8249_v14 = vpop.permute.xlu1 %5539  ;;  %v5010_v23 = vpack.c.bf16 %v2575_v0, %v2570_v60 }
 0x3c5   : > { %v10163_v54 = vunpack.i.h.bf16 %v8249_v14  ;;  %v10164_v20 = vunpack.i.l.bf16 %v8249_v14  ;;  %v10592_v36 = vunpack.i.h.bf16 %v8249_v14 }
 0x3c7   : > { %v2640_v43 = vsel %vm1219_vm11, %v10164_v20, %v5516_v16  ;;  %v2641_v38 = vsel %vm1219_vm11, %v10163_v54, %v5521_v47 }
 0x3c8   : > { %v5008_v42 = vpack.c.bf16 %v2641_v38, %v2640_v43  ;;  %v8262_v22 = vpop.permute.xlu1 %5544 }
 0x3c9   : > { %v10173_v16 = vunpack.i.h.bf16 %v8262_v22  ;;  %v5546_v47 = vunpack.i.l.bf16 %v8262_v22 }
 0x3ca   : > { %v8267_v21 = vpop.permute.xlu0 %5549  ;;  %5009 = vmatpush1.bf16.msra.mxu0 %v5008_v42 }
 0x3cb   : > { %v10165_v10 = vunpack.i.h.bf16 %v8267_v21  ;;  %v10166_v62 = vunpack.i.l.bf16 %v8267_v21  ;;  %5011 = vmatprep.subr.bf16.mxu0 %v5010_v23 }
 0x3cd   : > { %v2643_v43 = vsel %vm1219_vm11, %v10165_v10, %v5536_v52  ;;  %v2642_v0 = vsel %vm1219_vm11, %v10166_v62, %v5531_v12  ;;  %v8279_v60 = vpop.permute.xlu1 %5559 }
 0x3ce   : > { %v5012_v42 = vpack.c.bf16 %v2643_v43, %v2642_v0  ;;  %v8281_v38 = vpop.permute.xlu0 %5554  ;;  %v10170_v29 = vunpack.i.h.bf16 %v8279_v60  ;;  %v10169_v23 = vunpack.i.l.bf16 %v8279_v60  ;;  %v2580_v43 = vsel %vm1219_vm11, %v5546_v47, %v10173_v16 }
 0x3cf   : > { %v10174_v54 = vunpack.i.h.bf16 %v8281_v38  ;;  %v5556_v20 = vunpack.i.l.bf16 %v8281_v38 }
 0x3d0   : > { %5013 = vmatpush1.bf16.msra.mxu0 %v5012_v42  ;;  %v2644_v52 = vsel %vm1219_vm11, %v10169_v23, %v5546_v47  ;;  %v5018_v23 = vpack.c.bf16 %v10443_v7, %v10446_v63  ;;  %v5020_v47 = vpack.c.bf16 %v7452_v28, %v7473_v40  ;;  %v5030_v28 = vpack.c.bf16 %v10478_v50, %v10471_v44  ;;  %v10565_v40 = vld [vmem:[#allocation140_spill] sm:$0xff]  ;;  %v10574_v50 = vld [vmem:[#allocation49_spill] sm:$0xff] }
 0x3d1   : > { %v2645_v12 = vsel %vm1219_vm11, %v10170_v29, %v5556_v20  ;;  %v2585_v0 = vsel %vm1219_vm11, %v5556_v20, %v10174_v54  ;;  %v8299_v10 = vpop.permute.xlu1 %5569  ;;  %v5022_v20 = vpack.c.bf16 %v7427_v5, %v7412_v58  ;;  %v10577_v44 = vld [vmem:[#allocation57_spill] sm:$0xff]  ;;  %v10579_v58 = vld [vmem:[#allocation58_spill] sm:$0xff] }
 0x3d2   : > { %10556 = vst [vmem:[#allocation62_spill] sm:$0xff] %v8299_v10  ;;  %v5016_v62 = vpack.c.bf16 %v2645_v12, %v2644_v52  ;;  %v8301_v42 = vpop.permute.xlu0 %5564  ;;  %v5014_v32 = vpack.c.bf16 %v2585_v0, %v2580_v43  ;;  %v10581_v7 = vld [vmem:[#allocation61_spill] sm:$0xff] }
 0x3d3   : > { %10557 = vst [vmem:[#allocation67_spill] sm:$0xff] %v8301_v42  ;;  %v10594_v53 = vunpack.i.h.bf16 %v8301_v42 }
 0x3d4   : > { %5015 = vmatprep.subr.bf16.mxu0 %v5014_v32  ;;  %v10562_v32 = vld [vmem:[#allocation91_spill] sm:$0xff] }
 0x3d5   : > { %5017 = vmatpush1.bf16.msra.mxu0 %v5016_v62  ;;  %v8305_v29 = vpop.permute.xlu1 %5579  ;;  %v5026_v62 = vpack.c.bf16 %v7455_v19, %v10464_v2  ;;  %v10563_v43 = vpack.c.bf16 %v7685_v8, %v10562_v32  ;;  %v10570_v19 = vld [vmem:[#allocation48_spill] sm:$0xff]  ;;  %v10571_v8 = vld [vmem:[#allocation51_spill] sm:$0xff] }
 0x3d6   : > { %10558 = vst [vmem:[#allocation69_spill] sm:$0xff] %v8305_v29  ;;  %5019 = vmatprep.subr.bf16.mxu0 %v5018_v23  ;;  %v5034_v32 = vpack.c.bf16 %v10571_v8, %v10570_v19  ;;  %v5571_v19 = vunpack.i.l.bf16 %v8299_v10  ;;  %v10585_v8 = vld [vmem:[#allocation126_spill] sm:$0xff] }
 0x3d7   : > { %v8307_v39 = vpop.permute.xlu0 %5574  ;;  %v5046_v59 = vpack.c.bf16 %v10585_v8, %v10584_v48  ;;  %v10590_v48 = vunpack.i.h.bf16 %v8299_v10 }
 0x3d8   : > { %10559 = vst [vmem:[#allocation63_spill] sm:$0xff] %v8307_v39 }
 0x3d9   : > { %5021 = vmatpush1.bf16.msra.mxu0 %v5020_v47  ;;  %v8313_v52 = vpop.permute.xlu1 %5589  ;;  %v10566_v47 = vld [vmem:[#allocation139_spill] sm:$0xff] }
 0x3da   : > { %10560 = vst [vmem:[#allocation64_spill] sm:$0xff] %v8313_v52  ;;  %5023 = vmatprep.subr.bf16.mxu0 %v5022_v20  ;;  %v10567_v16 = vpack.c.bf16 %v10565_v40, %v10566_v47  ;;  %v10575_v40 = vld [vmem:[#allocation53_spill] sm:$0xff]  ;;  %v10576_v47 = vld [vmem:[#allocation52_spill] sm:$0xff]  ;;  %v10598_v13 = vunpack.i.l.bf16 %v8313_v52 }
 0x3db   : > { %v8315_v12 = vpop.permute.xlu0 %5584  ;;  %v5038_v5 = vpack.c.bf16 %v10577_v44, %v10576_v47  ;;  %v10583_v47 = vld [vmem:[#allocation60_spill] sm:$0xff] }
 0x3dc   : > { %10561 = vst [vmem:[#allocation66_spill] sm:$0xff] %v8315_v12  ;;  %v5586_v27 = vunpack.i.l.bf16 %v8315_v12 }
 0x3dd   : > { %5025 = vmatpush1.bf16.msra.mxu0 %v10563_v43  ;;  %v8322_v23 = vpop.permute.xlu1 %5599  ;;  %v10572_v43 = vpack.c.bf16 %v7715_v26, %v7711_v1 }
 0x3de   : > { %10564 = vst [vmem:[#allocation87_spill] sm:$0xff] %v8322_v23  ;;  %5027 = vmatprep.subr.bf16.mxu0 %v5026_v62 }
 0x3df   : > { %v8324_v0 = vpop.permute.xlu0 %5594 }
 0x3e1   : > { %5029 = vmatpush1.bf16.msra.mxu0 %v10567_v16  ;;  %v8331_v20 = vpop.permute.xlu1 %5609  ;;  %v5036_v16 = vpack.c.bf16 %v10575_v40, %v10574_v50  ;;  %v10580_v40 = vld [vmem:[#allocation113_spill] sm:$0xff] }
 0x3e2   : > { %10568 = vst [vmem:[#allocation77_spill] sm:$0xff] %v8331_v20  ;;  %5031 = vmatprep.subr.bf16.mxu0 %v5030_v28  ;;  %v5042_v44 = vpack.c.bf16 %v10581_v7, %v10580_v40  ;;  %v10588_v7 = vunpack.i.h.bf16 %v8221_v41  ;;  %v2796_v40 = vsel %vm1316_vm12, %v5571_v19, %v10590_v48 }
 0x3e3   : > { %v8333_v54 = vpop.permute.xlu0 %5604 }
 0x3e4   : > { %10569 = vst [vmem:[#allocation82_spill] sm:$0xff] %v8333_v54 }
 0x3e5   : > { %5033 = vmatpush1.bf16.msra.mxu0 %v10572_v43  ;;  %v8340_v62 = vpop.permute.xlu1 %5619  ;;  %v10578_v43 = vld [vmem:[#allocation55_spill] sm:$0xff] }
 0x3e6   : > { %5035 = vmatprep.subr.bf16.mxu0 %v5034_v32  ;;  %v5040_v50 = vpack.c.bf16 %v10579_v58, %v10578_v43  ;;  %v10586_v32 = vunpack.i.l.bf16 %v8221_v41 }
 0x3e7   : > { %v8342_v2 = vpop.permute.xlu0 %5614 }
 0x3e8   : > { %10573 = vst [vmem:[#allocation73_spill] sm:$0xff] %v8342_v2 }
 0x3e9   : > { %5037 = vmatpush1.bf16.msra.mxu0 %v5036_v16  ;;  %v8348_v28 = vpop.permute.xlu1 %5629  ;;  %v10582_v16 = vld [vmem:[#allocation114_spill] sm:$0xff] }
 0x3ea   : > { %5039 = vmatprep.subr.bf16.mxu0 %v5038_v5  ;;  %v5044_v63 = vpack.c.bf16 %v10583_v47, %v10582_v16  ;;  %v5566_v5 = vunpack.i.l.bf16 %v8301_v42  ;;  %v10597_v42 = vunpack.i.l.bf16 %v8307_v39 }
 0x3eb   : > { %v8352_v1 = vpop.permute.xlu0 %5624 }
 0x3ec   : > { %v10587_v58 = vunpack.i.l.bf16 %v8352_v1  ;;  %v10589_v47 = vunpack.i.h.bf16 %v8352_v1  ;;  %v2791_v11 = vsel %vm1316_vm12, %v5566_v5, %v10594_v53  ;;  %v2790_v53 = vsel %vm1316_vm12, %v10597_v42, %v5566_v5 }
 0x3ed   : > { %5041 = vmatpush1.bf16.msra.mxu0 %v5040_v50  ;;  %v8366_v26 = vpop.permute.xlu1 %5639  ;;  %v5581_v50 = vunpack.i.l.bf16 %v8305_v29  ;;  %v10603_v42 = vunpack.i.h.bf16 %v8315_v12 }
 0x3ee   : > { %v8373_v43 = vsel %vm1219_vm11, %v10587_v58, %v10586_v32  ;;  %v8380_v16 = vsel %vm1219_vm11, %v10589_v47, %v10588_v7  ;;  %5043 = vmatprep.subr.bf16.mxu0 %v5042_v44  ;;  %v5601_v32 = vunpack.i.l.bf16 %v8322_v23  ;;  %v10591_v58 = vunpack.i.l.bf16 %v8249_v14 }
 0x3ef   : > { %v8384_v8 = vpop.permute.xlu0 %5634  ;;  %v10599_v14 = vunpack.i.h.bf16 %v8313_v52  ;;  %v2806_v5 = vsel %vm1316_vm12, %v5586_v27, %v10603_v42 }
 0x3f0   : > { %v10196_v47 = vunpack.i.l.bf16 %v8384_v8  ;;  %v10593_v44 = vunpack.i.h.bf16 %v8384_v8 }
 0x3f1   : > { %5045 = vmatpush1.bf16.msra.mxu0 %v5044_v63  ;;  %v8401_v41 = vpop.permute.xlu1 %5649  ;;  %v10596_v63 = vunpack.i.h.bf16 %v8307_v39  ;;  %v10216_v39 = vunpack.i.h.bf16 %v8342_v2 }
 0x3f2   : > { %v8408_v7 = vsel %vm1219_vm11, %v10196_v47, %v10591_v58  ;;  %v8415_v10 = vsel %vm1219_vm11, %v10593_v44, %v10592_v36  ;;  %5047 = vmatprep.subr.bf16.mxu0 %v5046_v59  ;;  %v5596_v47 = vunpack.i.l.bf16 %v8324_v0  ;;  %v5050_v36 = vpack.c.bf16 %v2796_v40, %v2791_v11 }
 0x3f3   : > { %v8419_v61 = vpop.permute.xlu0 %5644  ;;  %v10595_v44 = vunpack.i.h.bf16 %v8305_v29  ;;  %v2795_v59 = vsel %vm1316_vm12, %v10596_v63, %v5571_v19  ;;  %v2800_v58 = vsel %vm1316_vm12, %v10598_v13, %v5581_v50  ;;  %v2805_v11 = vsel %vm1316_vm12, %v10599_v14, %v5586_v27  ;;  %v10600_v29 = vld [vmem:[#allocation92_spill] sm:$0xff] }
 0x3f4   : > { %v10602_v25 = vpack.c.bf16 %v10600_v29, %v10601_v57  ;;  %v10604_v13 = vunpack.i.h.bf16 %v8322_v23  ;;  %v10605_v63 = vunpack.i.h.bf16 %v8333_v54  ;;  %v10606_v40 = vunpack.i.l.bf16 %v8333_v54 }
 0x3f5   : > { %v2801_v48 = vsel %vm1316_vm12, %v5581_v50, %v10595_v44  ;;  %v5611_v44 = vunpack.i.l.bf16 %v8331_v20  ;;  %v8448_v19 = vpop.permute.xlu1 %5659  ;;  %v10607_v57 = vunpack.i.h.bf16 %v8324_v0  ;;  %v5056_v42 = vpack.c.bf16 %v2805_v11, %v2800_v58 }
 0x3f6   : > { %5049 = vmatpush1.bf16.msra.mxu0 %v10602_v25  ;;  %v2816_v50 = vsel %vm1316_vm12, %v5601_v32, %v10604_v13  ;;  %v2815_v14 = vsel %vm1316_vm12, %v10605_v63, %v5601_v32  ;;  %v2810_v52 = vsel %vm1316_vm12, %v10606_v40, %v5596_v47  ;;  %v5052_v25 = vpack.c.bf16 %v2795_v59, %v2790_v53 }
 0x3f7   : > { %v8462_v29 = vpop.permute.xlu0 %5654  ;;  %5051 = vmatprep.subr.bf16.mxu0 %v5050_v36  ;;  %v2811_v27 = vsel %vm1316_vm12, %v5596_v47, %v10607_v57  ;;  %v5054_v23 = vpack.c.bf16 %v2806_v5, %v2801_v48  ;;  %v5060_v13 = vpack.c.bf16 %v2815_v14, %v2810_v52  ;;  %v5616_v32 = vunpack.i.l.bf16 %v8342_v2 }
 0x3f8   : > { %v5058_v12 = vpack.c.bf16 %v2816_v50, %v2811_v27  ;;  %v10608_v40 = vunpack.i.h.bf16 %v8331_v20  ;;  %v10213_v36 = vunpack.i.h.bf16 %v8366_v26  ;;  %v10212_v59 = vunpack.i.l.bf16 %v8366_v26 }
 0x3f9   : > { %v5670_v63 = vpop.permute.xlu1 %5669  ;;  %v5631_v58 = vunpack.i.l.bf16 %v8348_v28  ;;  %v5632_v14 = vunpack.i.h.bf16 %v8348_v28  ;;  %v10609_v57 = vunpack.i.h.bf16 %v7881_v33  ;;  %v2826_v28 = vsel %vm1316_vm12, %v5616_v32, %v10216_v39 }
 0x3fa   : > { %5053 = vmatpush1.bf16.msra.mxu0 %v5052_v25  ;;  %v2821_v54 = vsel %vm1316_vm12, %v5611_v44, %v10608_v40  ;;  %v5672_v47 = vunpack.i.h.bf16 %v5670_v63  ;;  %v5671_v48 = vunpack.i.l.bf16 %v5670_v63  ;;  %v10610_v63 = vunpack.i.h.bf16 %v7854_v46 }
 0x3fb   : > { %v5665_v53 = vpop.permute.xlu0 %5664  ;;  %5055 = vmatprep.subr.bf16.mxu0 %v5054_v23  ;;  %v10611_v52 = vunpack.i.h.bf16 %v8213_v34  ;;  %v10612_v33 = vunpack.i.h.bf16 %v8215_v18  ;;  %v10613_v39 = vunpack.i.l.bf16 %v8340_v62  ;;  %v10614_v34 = vunpack.i.h.bf16 %v8340_v62 }
 0x3fc   : > { %v5667_v11 = vunpack.i.h.bf16 %v5665_v53  ;;  %v5666_v5 = vunpack.i.l.bf16 %v5665_v53  ;;  %v2562_v25 = vsel %vm1219_vm11, %v5671_v48, %v10212_v59  ;;  %v2567_v23 = vsel %vm1219_vm11, %v5672_v47, %v10213_v36 }
 0x3fd   : > { %v2566_v36 = vsel %vm1219_vm11, %v10611_v52, %v5672_v47  ;;  %v5680_v20 = vpop.permute.xlu1 %5679  ;;  %v5070_v2 = vpack.c.bf16 %v2567_v23, %v2562_v25  ;;  %v2825_v47 = vsel %vm1316_vm12, %v10614_v34, %v5616_v32  ;;  %v5651_v18 = vunpack.i.l.bf16 %v8401_v41 }
 0x3fe   : > { %v2556_v27 = vsel %vm1219_vm11, %v10609_v57, %v5667_v11  ;;  %v2551_v40 = vsel %vm1219_vm11, %v10610_v63, %v5666_v5  ;;  %5057 = vmatpush1.bf16.msra.mxu0 %v5056_v42  ;;  %v2552_v53 = vsel %vm1219_vm11, %v5666_v5, %v5631_v58  ;;  %v2561_v57 = vsel %vm1219_vm11, %v10612_v33, %v5671_v48 }
 0x3ff   : > { %v5068_v59 = vpack.c.bf16 %v2556_v27, %v2551_v40  ;;  %v5675_v50 = vpop.permute.xlu0 %5674  ;;  %v2557_v46 = vsel %vm1219_vm11, %v5667_v11, %v5632_v14  ;;  %5059 = vmatprep.subr.bf16.mxu0 %v5058_v12  ;;  %v2820_v27 = vsel %vm1316_vm12, %v10613_v39, %v5611_v44  ;;  %v5062_v48 = vpack.c.bf16 %v2826_v28, %v2821_v54 }
 0x400   : > { %v5677_v42 = vunpack.i.h.bf16 %v5675_v50  ;;  %v5676_v63 = vunpack.i.l.bf16 %v5675_v50  ;;  %v5066_v5 = vpack.c.bf16 %v2557_v46, %v2552_v53  ;;  %v5652_v52 = vunpack.i.h.bf16 %v8401_v41 }
 0x401   : > { %v5072_v12 = vpack.c.bf16 %v2566_v36, %v2561_v57  ;;  %v5682_v11 = vunpack.i.h.bf16 %v5680_v20  ;;  %v5681_v50 = vunpack.i.l.bf16 %v5680_v20  ;;  %v5064_v23 = vpack.c.bf16 %v2825_v47, %v2820_v27 }
 0x402   : > { %5067 = vmatprep.subr.bf16.mxu1 %v5066_v5  ;;  %5061 = vmatpush1.bf16.msra.mxu0 %v5060_v13  ;;  %v2572_v25 = vsel %vm1219_vm11, %v5676_v63, %v5651_v18  ;;  %v10615_v39 = vunpack.i.l.bf16 %v8352_v1  ;;  %v10616_v32 = vunpack.i.h.bf16 %v8352_v1  ;;  %v2577_v41 = vsel %vm1219_vm11, %v5677_v42, %v5652_v52 }
 0x403   : > { %5069 = vmatpush1.bf16.msra.mxu1 %v5068_v59  ;;  %5063 = vmatprep.subr.bf16.mxu0 %v5062_v48  ;;  %v5647_v13 = vunpack.i.h.bf16 %v8419_v61  ;;  %v5646_v36 = vunpack.i.l.bf16 %v8419_v61  ;;  %v5662_v20 = vunpack.i.h.bf16 %v8448_v19  ;;  %v5661_v59 = vunpack.i.l.bf16 %v8448_v19 }
 0x404   : > { %v2553_v44 = vsel %vm1219_vm11, %v5631_v58, %v10615_v39  ;;  %v2558_v54 = vsel %vm1219_vm11, %v5632_v14, %v10616_v32  ;;  %5071 = vmatprep.subr.bf16.mxu1 %v5070_v2  ;;  %v10617_v40 = vunpack.i.h.bf16 %v8243_v3  ;;  %v10618_v58 = vunpack.i.h.bf16 %v8241_v55  ;;  %v8530_v2 = vld [vmem:[%s10525_s19] sm:$0xff]  ;;  %v8540_v55 = vld [vmem:[%s10525_s19 + $0x18] sm:$0xff] }
 0x405   : > { %v5074_v14 = vpack.c.bf16 %v2577_v41, %v2572_v25  ;;  %v10619_v61 = vpack.c.bf16 %v8380_v16, %v8373_v43  ;;  %v2582_v3 = vsel %vm1219_vm11, %v5681_v50, %v5661_v59  ;;  %v2587_v19 = vsel %vm1219_vm11, %v5682_v11, %v5662_v20 }
 0x406   : > { %v2576_v53 = vsel %vm1219_vm11, %v10617_v40, %v5677_v42  ;;  %v2571_v1 = vsel %vm1219_vm11, %v10618_v58, %v5676_v63  ;;  %5065 = vmatpush1.bf16.msra.mxu0 %v5064_v23  ;;  %v5132_v28 = vpack.c.bf16 %v2558_v54, %v2553_v44  ;;  %v10620_v33 = vunpack.i.l.bf16 %v8384_v8 }
 0x407   : > { %5073 = vmatpush1.bf16.msra.mxu1 %v5072_v12  ;;  %5131 = vmatprep.subr.bf16.mxu0 %v10619_v61  ;;  %v10621_v57 = vunpack.i.l.bf16 %v8366_v26  ;;  %v10622_v42 = vunpack.i.h.bf16 %v8384_v8  ;;  %v10623_v43 = vunpack.i.h.bf16 %v8366_v26  ;;  %v5657_v63 = vunpack.i.h.bf16 %v8462_v29  ;;  %v10632_v61 = vld [vmem:[#allocation130_spill] sm:$0xff] }
 0x408   : > { %5075 = vmatprep.subr.bf16.mxu1 %v5074_v14  ;;  %v5076_v5 = vpack.c.bf16 %v2576_v53, %v2571_v1  ;;  %v10624_v27 = vunpack.i.l.bf16 %v8267_v21  ;;  %v10625_v47 = vunpack.i.h.bf16 %v8267_v21  ;;  %v5656_v8 = vunpack.i.l.bf16 %v8462_v29  ;;  %v8571_v21 = vld [vmem:[%s10525_s19 + $0x10] sm:$0xff]  ;;  %v8605_v53 = vpop.permute.xlu1 %5689  ;;  %v10631_v14 = vld [vmem:[#allocation123_spill] sm:$0xff] }
 0x409   : > { %v2563_v46 = vsel %vm1219_vm11, %v10621_v57, %v10620_v33  ;;  %v2568_v16 = vsel %vm1219_vm11, %v10623_v43, %v10622_v42  ;;  %2991 = vmatmul.mubr.f32.vlgmr.msra.gmra.mrb[60].mxu0 %v8530_v2  ;;  %v10626_v26 = vunpack.i.h.bf16 %v8281_v38  ;;  %v10627_v25 = vunpack.i.h.bf16 %v8262_v22  ;;  %v8579_v22 = vld [vmem:[%s10525_s19 + $0x28] sm:$0xff]  ;;  %v10633_v33 = vld [vmem:[#allocation134_spill] sm:$0xff] }
 0x40a   : > { %v2574_v34 = vsel %vm1219_vm11, %v5646_v36, %v10624_v27  ;;  %v2579_v48 = vsel %vm1219_vm11, %v5647_v13, %v10625_v47  ;;  %v5078_v39 = vpack.c.bf16 %v2587_v19, %v2582_v3  ;;  %5133 = vmatpush1.bf16.msra.mxu0 %v5132_v28  ;;  %2996 = vmatprep.mubr.f32.mxu0 %v8540_v55  ;;  %v10629_v41 = vunpack.i.l.bf16 %v8279_v60  ;;  %v10634_v57 = vld [vmem:[#allocation70_spill] sm:$0xff]  ;;  %v10636_v27 = vld [vmem:[#allocation80_spill] sm:$0xff] }
 0x40b   : > { %v2586_v12 = vsel %vm1219_vm11, %v10626_v26, %v5682_v11  ;;  %v2581_v23 = vsel %vm1219_vm11, %v10627_v25, %v5681_v50  ;;  %5077 = vmatpush1.bf16.msra.mxu1 %v5076_v5  ;;  %v10628_v29 = vpack.c.bf16 %v8415_v10, %v8408_v7  ;;  %v5136_v38 = vpack.c.bf16 %v2568_v16, %v2563_v46  ;;  %v8581_v11 = vpop.permute.xlu0 %5684  ;;  %v8592_v7 = vld [vmem:[%s10525_s19 + $0x20] sm:$0xff]  ;;  %v10640_v26 = vld [vmem:[#allocation81_spill] sm:$0xff] }
 0x40c   : > { %5079 = vmatprep.subr.bf16.mxu1 %v5078_v39  ;;  %v2573_v50 = vsel %vm1219_vm11, %v5651_v18, %v5646_v36  ;;  %v2578_v44 = vsel %vm1219_vm11, %v5652_v52, %v5647_v13  ;;  %v5080_v32 = vpack.c.bf16 %v2586_v12, %v2581_v23  ;;  %v5138_v54 = vpack.c.bf16 %v2579_v48, %v2574_v34  ;;  %v8603_v36 = vld [vmem:[%s10525_s19 + $0x38] sm:$0xff]  ;;  %v8625_v42 = vpop.permute.xlu1 %5699  ;;  %v10637_v34 = vld [vmem:[#allocation54_spill] sm:$0xff]  ;;  %v10641_v12 = vld [vmem:[#allocation75_spill] sm:$0xff] }
 0x40d   : > { %5135 = vmatprep.subr.bf16.mxu0 %v10628_v29  ;;  %2997 = vmatmul.mubr.f32.gmra.mrb[62].mxu0 %v8571_v21  ;;  %v5082_v10 = vpack.c.bf16 %v8164_v15, %v8171_v17  ;;  %v2584_v18 = vsel %vm1219_vm11, %v5656_v8, %v10629_v41  ;;  %v10630_v52 = vunpack.i.h.bf16 %v8279_v60  ;;  %v5140_v40 = vpack.c.bf16 %v2578_v44, %v2573_v50  ;;  %v10642_v23 = vld [vmem:[#allocation83_spill] sm:$0xff]  ;;  %v10645_v50 = vld [vmem:[#allocation106_spill] sm:$0xff] }
 0x40e   : > { %5137 = vmatpush1.bf16.msra.mxu0 %v5136_v38  ;;  %3002 = vmatprep.mubr.f32.mxu0 %v8579_v22  ;;  %v2583_v58 = vsel %vm1219_vm11, %v5661_v59, %v5656_v8  ;;  %v2588_v1 = vsel %vm1219_vm11, %v5662_v20, %v5657_v63  ;;  %v5084_v60 = vpack.c.bf16 %v10632_v61, %v10631_v14  ;;  %v8620_v59 = vld [vmem:[%s10525_s19 + $0x30] sm:$0xff]  ;;  %v10638_v8 = vld [vmem:[#allocation98_spill] sm:$0xff]  ;;  %v10650_v41 = vld [vmem:[#allocation71_spill] sm:$0xff] }
 0x40f   : > { %v2589_v13 = vsel %vm1219_vm11, %v5657_v63, %v10630_v52  ;;  %5081 = vmatpush1.bf16.msra.mxu1 %v5080_v32  ;;  %5139 = vmatprep.subr.bf16.mxu0 %v5138_v54  ;;  %v8612_v19 = vpop.permute.xlu0 %5694  ;;  %v5086_v28 = vpack.c.bf16 %v8158_v51, %v8167_v6  ;;  %v5144_v20 = vpack.c.bf16 %v2588_v1, %v2583_v58  ;;  %v10644_v38 = vld [vmem:[#allocation100_spill] sm:$0xff]  ;;  %v10646_v32 = vld [vmem:[#allocation97_spill] sm:$0xff]  ;;  %v10651_v52 = vld [vmem:[#allocation119_spill] sm:$0xff] }
 0x410   : > { %5083 = vmatprep.subr.bf16.mxu1 %v5082_v10  ;;  %v5142_v3 = vpack.c.bf16 %v2589_v13, %v2584_v18  ;;  %v5088_v46 = vpack.c.bf16 %v10634_v57, %v10633_v33  ;;  %v5090_v43 = vpack.c.bf16 %v8183_v30, %v8192_v49  ;;  %v10635_v16 = vpack.c.bf16 %v7748_v24, %v7744_v9  ;;  %v8644_v24 = vpop.permute.xlu1 %5709  ;;  %v10647_v54 = vld [vmem:[#allocation93_spill] sm:$0xff]  ;;  %v10649_v10 = vld [vmem:[#allocation76_spill] sm:$0xff] }
 0x411   : > { %3003 = vmatmul.mubr.f32.gmra.mrb[64].mxu0 %v8592_v7  ;;  %v5148_v5 = vpack.c.bf16 %v8067_v31, %v8083_v37  ;;  %v5092_v47 = vpack.c.bf16 %v10637_v34, %v10636_v27  ;;  %v5094_v48 = vpack.c.bf16 %v8178_v45, %v8188_v4  ;;  %v10639_v9 = vpack.c.bf16 %v7757_v35, %v10638_v8  ;;  %v10652_v13 = vld [vmem:[#allocation129_spill] sm:$0xff]  ;;  %v10653_v1 = vld [vmem:[#allocation104_spill] sm:$0xff] }
 0x412   : > { %5141 = vmatpush1.bf16.msra.mxu0 %v5140_v40  ;;  %3008 = vmatprep.mubr.f32.mxu0 %v8603_v36  ;;  %v5152_v25 = vpack.c.bf16 %v10641_v12, %v10640_v26  ;;  %v5098_v44 = vpack.c.bf16 %v10645_v50, %v10644_v38  ;;  %v10648_v35 = vpack.c.bf16 %v10646_v32, %v10647_v54  ;;  %v10661_v8 = vld [vmem:[#allocation124_spill] sm:$0xff] }
 0x413   : > { %5085 = vmatpush1.bf16.msra.mxu1 %v5084_v60  ;;  %5143 = vmatprep.subr.bf16.mxu0 %v5142_v3  ;;  %v8632_v63 = vpop.permute.xlu0 %5704  ;;  %v5156_v18 = vpack.c.bf16 %v10650_v41, %v10649_v10  ;;  %v5100_v40 = vpack.c.bf16 %v10652_v13, %v10651_v52  ;;  %v10654_v60 = vld [vmem:[#allocation109_spill] sm:$0xff]  ;;  %v10669_v41 = vld [vmem:[#allocation68_spill] sm:$0xff]  ;;  %v10670_v10 = vld [vmem:[#allocation127_spill] sm:$0xff] }
 0x414   : > { %5087 = vmatprep.subr.bf16.mxu1 %v5086_v28  ;;  %v8661_v58 = vpop.permute.xlu1 %5719  ;;  %v5102_v3 = vpack.c.bf16 %v10654_v60, %v10653_v1  ;;  %v10655_v28 = vld [vmem:[#allocation102_spill] sm:$0xff]  ;;  %v5108_v12 = vpack.c.bf16 %v10670_v10, %v10669_v41  ;;  %v10676_v10 = vld [vmem:[#allocation65_spill] sm:$0xff]  ;;  %v10689_v13 = vld [vmem:[#allocation88_spill] sm:$0xff] }
 0x415   : > { %3009 = vmatmul.mubr.f32.gmra.mrb[66].mxu0 %v8620_v59  ;;  %v10682_v60 = vld [vmem:[#allocation62_spill] sm:$0xff] }
 0x416   : > { %5145 = vmatpush1.bf16.msra.mxu0 %v5144_v20  ;;  %3168 = vmatprep.mubr.f32.mxu0 %v8080_v56  ;;  %v10643_v56 = vld [vmem:[#allocation138_spill] sm:$0xff] }
 0x417   : > { %5089 = vmatpush1.bf16.msra.mxu1 %v5088_v46  ;;  %5147 = vmatprep.subr.bf16.mxu0 %v10635_v16  ;;  %v5096_v39 = vpack.c.bf16 %v10643_v56, %v10642_v23  ;;  %v8650_v29 = vpop.permute.xlu0 %5714  ;;  %v10656_v20 = vld [vmem:[#allocation94_spill] sm:$0xff] }
 0x418   : > { %5091 = vmatprep.subr.bf16.mxu1 %v5090_v43  ;;  %v10657_v46 = vpack.c.bf16 %v10655_v28, %v10656_v20  ;;  %v10658_v16 = vld [vmem:[#allocation90_spill] sm:$0xff]  ;;  %v5730_v28 = vpop.permute.xlu1 %5729  ;;  %v10668_v20 = vld [vmem:[#allocation105_spill] sm:$0xff] }
 0x419   : > { %v5731_v26 = vunpack.i.l.bf16 %v5730_v28 }
 0x41a   : > { %5149 = vmatpush1.bf16.msra.mxu0 %v5148_v5  ;;  %v10659_v5 = vld [vmem:[#allocation84_spill] sm:$0xff] }
 0x41b   : > { %5093 = vmatpush1.bf16.msra.mxu1 %v5092_v47  ;;  %5151 = vmatprep.subr.bf16.mxu0 %v10639_v9  ;;  %v5725_v43 = vpop.permute.xlu0 %5724  ;;  %v5160_v47 = vpack.c.bf16 %v10659_v5, %v10658_v16  ;;  %v5692_v5 = vunpack.i.h.bf16 %v8605_v53  ;;  %v5691_v16 = vunpack.i.l.bf16 %v8605_v53  ;;  %v5686_v53 = vunpack.i.l.bf16 %v8581_v11 }
 0x41c   : > { %5095 = vmatprep.subr.bf16.mxu1 %v5094_v48  ;;  %v10660_v48 = vld [vmem:[#allocation116_spill] sm:$0xff]  ;;  %v5727_v32 = vunpack.i.h.bf16 %v5725_v43  ;;  %v5726_v54 = vunpack.i.l.bf16 %v5725_v43 }
 0x41d   : > { %v5104_v9 = vpack.c.bf16 %v10661_v8, %v10660_v48  ;;  %v10683_v8 = vunpack.i.h.bf16 %v10682_v60 }
 0x41e   : > { %5153 = vmatpush1.bf16.msra.mxu0 %v5152_v25  ;;  %v10662_v25 = vld [vmem:[#allocation117_spill] sm:$0xff] }
 0x41f   : > { %5097 = vmatpush1.bf16.msra.mxu1 %v5096_v39  ;;  %5155 = vmatprep.subr.bf16.mxu0 %v10648_v35  ;;  %v10663_v39 = vld [vmem:[#allocation118_spill] sm:$0xff]  ;;  %v10664_v35 = vld [vmem:[#allocation133_spill] sm:$0xff]  ;;  %v2797_v37 = vsel %vm1316_vm12, %v10683_v8, %v5727_v32 }
 0x420   : > { %5099 = vmatprep.subr.bf16.mxu1 %v5098_v44  ;;  %v5106_v44 = vpack.c.bf16 %v10663_v39, %v10662_v25  ;;  %v10672_v39 = vld [vmem:[#allocation131_spill] sm:$0xff]  ;;  %v10677_v25 = vld [vmem:[#allocation108_spill] sm:$0xff] }
 0x421   : > { %v5112_v41 = vpack.c.bf16 %v10677_v25, %v10676_v10 }
 0x422   : > { %5157 = vmatpush1.bf16.msra.mxu0 %v5156_v18  ;;  %v10665_v18 = vld [vmem:[#allocation132_spill] sm:$0xff] }
 0x423   : > { %5101 = vmatpush1.bf16.msra.mxu1 %v5100_v40  ;;  %5159 = vmatprep.subr.bf16.mxu0 %v10657_v46  ;;  %v10666_v40 = vpack.c.bf16 %v10664_v35, %v10665_v18  ;;  %v10673_v35 = vld [vmem:[#allocation78_spill] sm:$0xff]  ;;  %v10674_v18 = vld [vmem:[#allocation72_spill] sm:$0xff] }
 0x424   : > { %5103 = vmatprep.subr.bf16.mxu1 %v5102_v3  ;;  %v10667_v3 = vld [vmem:[#allocation99_spill] sm:$0xff] }
 0x425   : > { %v5164_v46 = vpack.c.bf16 %v10668_v20, %v10667_v3  ;;  %v2798_v20 = vsel %vm1316_vm12, %v5727_v32, %v5692_v5  ;;  %v5735_v3 = vpop.permute.xlu0 %5734  ;;  %v2794_v32 = vsel %vm1316_vm12, %v5691_v16, %v5686_v53 }
 0x426   : > { %5161 = vmatpush1.bf16.msra.mxu0 %v5160_v47  ;;  %v10671_v47 = vld [vmem:[#allocation122_spill] sm:$0xff]  ;;  %v5737_v48 = vunpack.i.h.bf16 %v5735_v3  ;;  %v5736_v50 = vunpack.i.l.bf16 %v5735_v3  ;;  %v5712_v3 = vunpack.i.h.bf16 %v8644_v24 }
 0x427   : > { %5105 = vmatpush1.bf16.msra.mxu1 %v5104_v9  ;;  %5163 = vmatprep.subr.bf16.mxu0 %v10666_v40  ;;  %v5110_v43 = vpack.c.bf16 %v10672_v39, %v10671_v47  ;;  %v5732_v9 = vunpack.i.h.bf16 %v5730_v28  ;;  %v2793_v40 = vsel %vm1316_vm12, %v5726_v54, %v5691_v16  ;;  %v10678_v39 = vld [vmem:[#allocation50_spill] sm:$0xff]  ;;  %v5702_v28 = vunpack.i.h.bf16 %v8625_v42 }
 0x428   : > { %5107 = vmatprep.subr.bf16.mxu1 %v5106_v44  ;;  %v10675_v44 = vpack.c.bf16 %v10673_v35, %v10674_v18  ;;  %v5701_v35 = vunpack.i.l.bf16 %v8625_v42  ;;  %v10680_v18 = vld [vmem:[#allocation128_spill] sm:$0xff]  ;;  %v5114_v10 = vpack.c.bf16 %v2798_v20, %v2793_v40  ;;  %v5740_v20 = vpop.permute.xlu1 %5739 }
 0x429   : > { %v10688_v42 = vld [vmem:[#allocation136_spill] sm:$0xff]  ;;  %v2808_v8 = vsel %vm1316_vm12, %v5732_v9, %v5702_v28  ;;  %v5741_v52 = vunpack.i.l.bf16 %v5740_v20 }
 0x42a   : > { %5165 = vmatpush1.bf16.msra.mxu0 %v5164_v46  ;;  %v10679_v46 = vld [vmem:[#allocation111_spill] sm:$0xff]  ;;  %v10690_v38 = vpack.c.bf16 %v10688_v42, %v10689_v13  ;;  %v2803_v60 = vsel %vm1316_vm12, %v5731_v26, %v5701_v35 }
 0x42b   : > { %5109 = vmatpush1.bf16.msra.mxu1 %v5108_v12  ;;  %5167 = vmatprep.subr.bf16.mxu0 %v10675_v44  ;;  %v5168_v47 = vpack.c.bf16 %v10679_v46, %v10678_v39  ;;  %v5687_v12 = vunpack.i.h.bf16 %v8581_v11  ;;  %v10681_v44 = vld [vmem:[#allocation120_spill] sm:$0xff]  ;;  %v10686_v46 = vld [vmem:[#allocation125_spill] sm:$0xff] }
 0x42c   : > { %5111 = vmatprep.subr.bf16.mxu1 %v5110_v43  ;;  %v5172_v31 = vpack.c.bf16 %v10681_v44, %v10680_v18  ;;  %v10684_v43 = vld [vmem:[#allocation67_spill] sm:$0xff]  ;;  %v10687_v39 = vld [vmem:[#allocation56_spill] sm:$0xff] }
 0x42d   : > { %v10685_v1 = vunpack.i.h.bf16 %v10684_v43  ;;  %v5176_v11 = vpack.c.bf16 %v10687_v39, %v10686_v46  ;;  %v2799_v16 = vsel %vm1316_vm12, %v5692_v5, %v5687_v12  ;;  %v10694_v39 = vld [vmem:[#allocation69_spill] sm:$0xff]  ;;  %v2818_v5 = vsel %vm1316_vm12, %v5737_v48, %v5712_v3 }
 0x42e   : > { %5169 = vmatpush1.bf16.msra.mxu0 %v5168_v47  ;;  %v10691_v47 = vld [vmem:[#allocation63_spill] sm:$0xff]  ;;  %v10695_v46 = vunpack.i.h.bf16 %v10694_v39  ;;  %v5707_v39 = vunpack.i.h.bf16 %v8632_v63 }
 0x42f   : > { %v2792_v25 = vsel %vm1316_vm12, %v10685_v1, %v5726_v54  ;;  %5113 = vmatpush1.bf16.msra.mxu1 %v5112_v41  ;;  %5171 = vmatprep.subr.bf16.mxu0 %v10690_v38  ;;  %v5697_v1 = vunpack.i.h.bf16 %v8612_v19  ;;  %v5696_v54 = vunpack.i.l.bf16 %v8612_v19  ;;  %v10692_v40 = vunpack.i.l.bf16 %v10691_v47 }
 0x430   : > { %5115 = vmatprep.subr.bf16.mxu1 %v5114_v10  ;;  %v5711_v38 = vunpack.i.l.bf16 %v8644_v24  ;;  %v5116_v13 = vpack.c.bf16 %v2797_v37, %v2792_v25  ;;  %v10693_v43 = vunpack.i.h.bf16 %v10691_v47  ;;  %v2802_v19 = vsel %vm1316_vm12, %v10695_v46, %v5731_v26  ;;  %v10696_v10 = vld [vmem:[#allocation66_spill] sm:$0xff]  ;;  %v10698_v37 = vld [vmem:[#allocation137_spill] sm:$0xff]  ;;  %v10701_v46 = vld [vmem:[#allocation64_spill] sm:$0xff] }
 0x431   : > { %v2886_v41 = vsel %vm1316_vm12, %v5686_v53, %v10692_v40  ;;  %v10697_v44 = vunpack.i.h.bf16 %v10696_v10  ;;  %v5118_v53 = vpack.c.bf16 %v2808_v8, %v2803_v60  ;;  %v5742_v40 = vunpack.i.h.bf16 %v5740_v20  ;;  %v10699_v24 = vld [vmem:[#allocation89_spill] sm:$0xff] }
 0x432   : > { %v2887_v42 = vsel %vm1316_vm12, %v5687_v12, %v10693_v43  ;;  %5173 = vmatpush1.bf16.msra.mxu0 %v5172_v31  ;;  %v10700_v25 = vpack.c.bf16 %v10698_v37, %v10699_v24  ;;  %v2813_v47 = vsel %vm1316_vm12, %v5736_v50, %v5711_v38  ;;  %v10702_v12 = vunpack.i.l.bf16 %v10701_v46  ;;  %v10704_v43 = vld [vmem:[#allocation87_spill] sm:$0xff] }
 0x433   : > { %v2807_v18 = vsel %vm1316_vm12, %v10697_v44, %v5732_v9  ;;  %5117 = vmatpush1.bf16.msra.mxu1 %v5116_v13  ;;  %v5178_v26 = vpack.c.bf16 %v2887_v42, %v2886_v41  ;;  %v10703_v31 = vunpack.i.h.bf16 %v10701_v46  ;;  %v5706_v60 = vunpack.i.l.bf16 %v8632_v63  ;;  %v10707_v46 = vld [vmem:[#allocation82_spill] sm:$0xff] }
 0x434   : > { %5175 = vmatprep.subr.bf16.mxu0 %v10700_v25  ;;  %5119 = vmatprep.subr.bf16.mxu1 %v5118_v53  ;;  %v2888_v9 = vsel %vm1316_vm12, %v5696_v54, %v10702_v12  ;;  %v5722_v8 = vunpack.i.h.bf16 %v8661_v58  ;;  %v5721_v20 = vunpack.i.l.bf16 %v8661_v58  ;;  %v5120_v13 = vpack.c.bf16 %v2807_v18, %v2802_v19 }
 0x435   : > { %v2889_v44 = vsel %vm1316_vm12, %v5697_v1, %v10703_v31  ;;  %v10705_v10 = vunpack.i.h.bf16 %v10704_v43  ;;  %v10706_v41 = vunpack.i.h.bf16 %v8324_v0  ;;  %v5122_v37 = vpack.c.bf16 %v2818_v5, %v2813_v47 }
 0x436   : > { %5177 = vmatpush1.bf16.msra.mxu0 %v5176_v11  ;;  %v2823_v24 = vsel %vm1316_vm12, %v5741_v52, %v5721_v20  ;;  %v2828_v63 = vsel %vm1316_vm12, %v5742_v40, %v5722_v8  ;;  %v5180_v25 = vpack.c.bf16 %v2799_v16, %v2794_v32  ;;  %v2804_v58 = vsel %vm1316_vm12, %v5701_v35, %v5696_v54  ;;  %v10710_v32 = vld [vmem:[#allocation77_spill] sm:$0xff] }
 0x437   : > { %v2817_v53 = vsel %vm1316_vm12, %v10705_v10, %v5737_v48  ;;  %v2812_v42 = vsel %vm1316_vm12, %v10706_v41, %v5736_v50  ;;  %5121 = vmatpush1.bf16.msra.mxu1 %v5120_v13  ;;  %5179 = vmatprep.subr.bf16.mxu0 %v5178_v26  ;;  %v2809_v18 = vsel %vm1316_vm12, %v5702_v28, %v5697_v1  ;;  %v5717_v48 = vunpack.i.h.bf16 %v8650_v29  ;;  %v10712_v28 = vld [vmem:[#allocation73_spill] sm:$0xff] }
 0x438   : > { %5123 = vmatprep.subr.bf16.mxu1 %v5122_v37  ;;  %v5182_v19 = vpack.c.bf16 %v2889_v44, %v2888_v9  ;;  %v5124_v0 = vpack.c.bf16 %v2817_v53, %v2812_v42  ;;  %v10708_v50 = vunpack.i.l.bf16 %v10707_v46  ;;  %v10709_v47 = vunpack.i.h.bf16 %v10707_v46 }
 0x439   : > { %v5716_v26 = vunpack.i.l.bf16 %v8650_v29  ;;  %v10711_v16 = vunpack.i.h.bf16 %v10710_v32  ;;  %v10713_v1 = vunpack.i.h.bf16 %v10712_v28  ;;  %v5126_v12 = vpack.c.bf16 %v2828_v63, %v2823_v24  ;;  %v10717_v63 = vld [vmem:[#allocation20_spill] sm:$0xff] }
 0x43a   : > { %v2890_v11 = vsel %vm1316_vm12, %v5706_v60, %v10708_v50  ;;  %v2891_v5 = vsel %vm1316_vm12, %v5707_v39, %v10709_v47  ;;  %5181 = vmatpush1.bf16.msra.mxu0 %v5180_v25  ;;  %v5184_v9 = vpack.c.bf16 %v2809_v18, %v2804_v58  ;;  %v2814_v31 = vsel %vm1316_vm12, %v5711_v38, %v5706_v60  ;;  %v10719_v50 = vld [vmem:[#allocation18_spill] sm:$0xff] }
 0x43b   : > { %v2822_v35 = vsel %vm1316_vm12, %v10711_v16, %v5741_v52  ;;  %v2827_v54 = vsel %vm1316_vm12, %v10713_v1, %v5742_v40  ;;  %5125 = vmatpush1.bf16.msra.mxu1 %v5124_v0  ;;  %5183 = vmatprep.subr.bf16.mxu0 %v5182_v19  ;;  %v2819_v44 = vsel %vm1316_vm12, %v5712_v3, %v5707_v39  ;;  %v10714_v43 = vunpack.i.l.bf16 %v8340_v62  ;;  %v10718_v19 = vld [vmem:[#allocation21_spill] sm:$0xff]  ;;  %v10721_v1 = vld [vmem:[#allocation22_spill] sm:$0xff] }
 0x43c   : > { %5127 = vmatprep.subr.bf16.mxu1 %v5126_v12  ;;  %v5128_v13 = vpack.c.bf16 %v2827_v54, %v2822_v35  ;;  %v5186_v29 = vpack.c.bf16 %v2891_v5, %v2890_v11  ;;  %v10715_v10 = vunpack.i.h.bf16 %v8340_v62  ;;  %v5188_v53 = vpack.c.bf16 %v2819_v44, %v2814_v31  ;;  %v10722_v31 = vld [vmem:[#allocation23_spill] sm:$0xff] }
 0x43d   : > { %v2892_v52 = vsel %vm1316_vm12, %v5716_v26, %v10714_v43  ;;  %v2824_v41 = vsel %vm1316_vm12, %v5721_v20, %v5716_v26  ;;  %v2829_v38 = vsel %vm1316_vm12, %v5722_v8, %v5717_v48  ;;  %v10716_v62 = vmov 0.0   ;;  %v8803_v20 = vpop.permute.xlu1 %2913  ;;  %v10720_v26 = vld [vmem:[#allocation19_spill] sm:$0xff] }
 0x43e   : > { %5185 = vmatpush1.bf16.msra.mxu0 %v5184_v9  ;;  %v2893_v40 = vsel %vm1316_vm12, %v5717_v48, %v10715_v10  ;;  %v5192_v3 = vpack.c.bf16 %v2829_v38, %v2824_v41  ;;  %v8798_v39 = vstv %s4790_s14  ;;  %s10835_s14 = sld [smem:[#allocation9_spill]] (%p10834_p2) }
 0x43f   : > { %5129 = vmatpush1.bf16.msra.mxu1 %v5128_v13  ;;  %5187 = vmatprep.subr.bf16.mxu0 %v5186_v29  ;;  %v5190_v60 = vpack.c.bf16 %v2893_v40, %v2892_v52 }
 0x441   : > { %v8827_v43 = vpop.permute.xlu1 %2923 }
 0x442   : > { %3080 = vmatmul.mubr.f32.vlgmr.msra.gmra.mrb[60].mxu1 %v8530_v2  ;;  %5189 = vmatpush1.bf16.msra.mxu0 %v5188_v53 }
 0x443   : > { %3085 = vmatprep.mubr.f32.mxu1 %v8540_v55  ;;  %5191 = vmatprep.subr.bf16.mxu0 %v5190_v60 }
 0x444   : > { %s4901_s15 = sshll.u32 (%p10834_p2), %s10835_s14, 2 }
 0x446   : > { %3086 = vmatmul.mubr.f32.gmra.mrb[62].mxu1 %v8571_v21  ;;  %5193 = vmatpush1.bf16.msra.mxu0 %v5192_v3  ;;  %v10723_v3 = vld [vmem:[#allocation24_spill] sm:$0xff] }
 0x447   : > { %3091 = vmatprep.mubr.f32.mxu1 %v8579_v22 }
 0x449   : > { %3169 = vmatmul.mubr.f32.vlgmr.msra.gmra.mrb[68].mxu0 %v8530_v2  ;;  %v8796_v2 = vpop.permute.xlu0 %2908 }
 0x44a   : > { %3092 = vmatmul.mubr.f32.gmra.mrb[64].mxu1 %v8592_v7  ;;  %3174 = vmatprep.mubr.f32.mxu0 %v8540_v55 }
 0x44b   : > { %3097 = vmatprep.mubr.f32.mxu1 %v8603_v36 }
 0x44d   : > { %3175 = vmatmul.mubr.f32.gmra.mrb[70].mxu0 %v8571_v21  ;;  %v8811_v46 = vpop.permute.xlu0 %2918 }
 0x44e   : > { %3098 = vmatmul.mubr.f32.gmra.mrb[66].mxu1 %v8620_v59  ;;  %3180 = vmatprep.mubr.f32.mxu0 %v8579_v22 }
 0x44f   : > { %3762 = vmatprep.mubr.f32.mxu1 %v10716_v62 }
 0x451   : > { %3181 = vmatmul.mubr.f32.gmra.mrb[72].mxu0 %v8592_v7 }
 0x452   : > { %3186 = vmatprep.mubr.f32.mxu0 %v8603_v36 }
 0x455   : > { %3187 = vmatmul.mubr.f32.gmra.mrb[74].mxu0 %v8620_v59 }
 0x456   : > { %3907 = vmatprep.mubr.f32.mxu0 %v10716_v62 }
 0x4dc   : > { %v2992_v55 = vpop.f32.mrb[60].mxu0 }
 0x4dd   : > { %v2993_v21 = vadd.f32 %v2992_v55, %v8796_v2  ;;  %v2994_v8 = vpop.f32.mrb[61].mxu0 }
 0x4de   : > { %v2995_v22 = vadd.f32 %v2994_v8, %v8796_v2 }
 0x4df   : > { %vm3193_vm3 = vcmp.gt.f32.partialorder %v2993_v21, 0.0  ;;  %v3218_v7 = vmul.f32 %v8798_v39, %v2993_v21 }
 0x4e0   : > { %vm3194_vm4 = vcmp.gt.f32.partialorder %v2995_v22, 0.0  ;;  %v3219_v36 = vmul.f32 %v8798_v39, %v2995_v22  ;;  %v2998_v59 = vpop.f32.mrb[62].mxu0 }
 0x4e1   : > { %v3242_v42 = vsel %vm3193_vm3, %v2993_v21, %v3218_v7  ;;  %v2999_v37 = vadd.f32 %v2998_v59, %v8803_v20  ;;  %v3000_v24 = vpop.f32.mrb[63].mxu0  ;;  %v10724_v7 = vld [vmem:[#allocation25_spill] sm:$0xff] }
 0x4e2   : > { %v3266_v25 = vsub.f32 %v3242_v42, %v10717_v63  ;;  %v3243_v58 = vsel %vm3194_vm4, %v2995_v22, %v3219_v36  ;;  %v3001_v18 = vadd.f32 %v3000_v24, %v8803_v20 }
 0x4e3   : > { %v3267_v48 = vsub.f32 %v3243_v58, %v10718_v19  ;;  %vm3199_vm5 = vcmp.gt.f32.partialorder %v2999_v37, 0.0  ;;  %v3224_v0 = vmul.f32 %v8798_v39, %v2999_v37 }
 0x4e4   : > { %v8814_v11 = vmul.f32 %v10719_v50, %v3266_v25  ;;  %vm3200_vm6 = vcmp.gt.f32.partialorder %v3001_v18, 0.0  ;;  %v3225_v47 = vmul.f32 %v8798_v39, %v3001_v18  ;;  %v3004_v5 = vpop.f32.mrb[64].mxu0 }
 0x4e5   : > { %v8818_v32 = vmul.f32 %v10720_v26, %v3267_v48  ;;  %v3248_v16 = vsel %vm3199_vm5, %v2999_v37, %v3224_v0  ;;  %v3005_v35 = vadd.f32 %v3004_v5, %v8811_v46  ;;  %v3006_v28 = vpop.f32.mrb[65].mxu0  ;;  %v10726_v0 = vld [vmem:[#allocation31_spill] sm:$0xff] }
 0x4e6   : > { %v3272_v54 = vsub.f32 %v3248_v16, %v10721_v1  ;;  %v3249_v12 = vsel %vm3200_vm6, %v3001_v18, %v3225_v47  ;;  %v3007_v9 = vadd.f32 %v3006_v28, %v8811_v46  ;;  %v10725_v18 = vld [vmem:[#allocation30_spill] sm:$0xff]  ;;  %v10740_v28 = vld [vmem:[#allocation40_spill] sm:$0xff] }
 0x4e7   : > { %v3273_v44 = vsub.f32 %v3249_v12, %v10722_v31  ;;  %vm3205_vm7 = vcmp.gt.f32.partialorder %v3005_v35, 0.0  ;;  %v3230_v13 = vmul.f32 %v8798_v39, %v3005_v35  ;;  %v5743_v29 = vpack.i.bf16 %v8818_v32, %v8814_v11  ;;  %v10739_v12 = vld [vmem:[#allocation46_spill] sm:$0xff] }
 0x4e8   : > { %v8830_v52 = vmul.f32 %v10719_v50, %v3272_v54  ;;  %vm3206_vm8 = vcmp.gt.f32.partialorder %v3007_v9, 0.0  ;;  %v3231_v10 = vmul.f32 %v8798_v39, %v3007_v9  ;;  %v3010_v40 = vpop.f32.mrb[66].mxu0 }
 0x4e9   : > { %v8834_v53 = vmul.f32 %v10720_v26, %v3273_v44  ;;  %v3254_v41 = vsel %vm3205_vm7, %v3005_v35, %v3230_v13  ;;  %v3011_v38 = vadd.f32 %v3010_v40, %v8827_v43  ;;  %v3012_v60 = vpop.f32.mrb[67].mxu0  ;;  %5744 = vrot.lane.b32.xlu0 %v5743_v29, %s5973_s25 }
 0x4ea   : > { %v3278_v55 = vsub.f32 %v3254_v41, %v10723_v3  ;;  %v3255_v21 = vsel %vm3206_vm8, %v3007_v9, %v3231_v10  ;;  %v3013_v8 = vadd.f32 %v3012_v60, %v8827_v43 }
 0x4eb   : > { %v3279_v36 = vsub.f32 %v3255_v21, %v10724_v7  ;;  %vm3211_vm9 = vcmp.gt.f32.partialorder %v3011_v38, 0.0  ;;  %v3236_v59 = vmul.f32 %v8798_v39, %v3011_v38  ;;  %v5748_v42 = vpack.i.bf16 %v8834_v53, %v8830_v52  ;;  %v10728_v7 = vld [vmem:[#allocation41_spill] sm:$0xff] }
 0x4ec   : > { %v8847_v37 = vmul.f32 %v10719_v50, %v3278_v55  ;;  %vm3212_vm10 = vcmp.gt.f32.partialorder %v3013_v8, 0.0  ;;  %v3237_v24 = vmul.f32 %v8798_v39, %v3013_v8 }
 0x4ed   : > { %v8851_v63 = vmul.f32 %v10720_v26, %v3279_v36  ;;  %v3260_v25 = vsel %vm3211_vm9, %v3011_v38, %v3236_v59  ;;  %5749 = vrot.lane.b32.xlu1 %v5748_v42, %s5973_s25  ;;  %v10727_v38 = vld [vmem:[#allocation32_spill] sm:$0xff] }
 0x4ee   : > { %v3284_v19 = vsub.f32 %v3260_v25, %v10725_v18  ;;  %v3261_v48 = vsel %vm3212_vm10, %v3013_v8, %v3237_v24 }
 0x4ef   : > { %v3285_v47 = vsub.f32 %v3261_v48, %v10726_v0  ;;  %v5753_v5 = vpack.i.bf16 %v8851_v63, %v8847_v37 }
 0x4f0   : > { %v8861_v16 = vmul.f32 %v10719_v50, %v3284_v19 }
 0x4f1   : > { %v8864_v35 = vmul.f32 %v10720_v26, %v3285_v47  ;;  %5754 = vrot.lane.b32.xlu1 %v5753_v5, %s5973_s25  ;;  %v10729_v47 = vld [vmem:[#allocation27_spill] sm:$0xff] }
 0x4f3   : > { %v5763_v54 = vpack.i.bf16 %v8864_v35, %v8861_v16 }
 0x515   : > { %v3081_v9 = vpop.f32.mrb[60].mxu1 }
 0x516   : > { %v3082_v50 = vadd.f32 %v3081_v9, %v8796_v2  ;;  %v3083_v31 = vpop.f32.mrb[61].mxu1 }
 0x517   : > { %v3084_v26 = vadd.f32 %v3083_v31, %v8796_v2  ;;  %v10730_v31 = vld [vmem:[#allocation35_spill] sm:$0xff] }
 0x518   : > { %vm3195_vm14 = vcmp.gt.f32.partialorder %v3082_v50, 0.0  ;;  %v3220_v44 = vmul.f32 %v8798_v39, %v3082_v50 }
 0x519   : > { %vm3196_vm15 = vcmp.gt.f32.partialorder %v3084_v26, 0.0  ;;  %v3221_v13 = vmul.f32 %v8798_v39, %v3084_v26  ;;  %v3087_v29 = vpop.f32.mrb[62].mxu1 }
 0x51a   : > { %v3244_v10 = vsel %vm3195_vm14, %v3082_v50, %v3220_v44  ;;  %v3088_v40 = vadd.f32 %v3087_v29, %v8803_v20  ;;  %v3089_v41 = vpop.f32.mrb[63].mxu1 }
 0x51b   : > { %v3268_v60 = vsub.f32 %v3244_v10, %v10727_v38  ;;  %v3245_v3 = vsel %vm3196_vm15, %v3084_v26, %v3221_v13  ;;  %v3090_v55 = vadd.f32 %v3089_v41, %v8803_v20  ;;  %v10731_v10 = vld [vmem:[#allocation37_spill] sm:$0xff]  ;;  %v10732_v41 = vld [vmem:[#allocation42_spill] sm:$0xff] }
 0x51c   : > { %vm3201_vm0 = vcmp.gt.f32.partialorder %v3088_v40, 0.0  ;;  %v3226_v21 = vmul.f32 %v8798_v39, %v3088_v40  ;;  %v3170_v8 = vpop.f32.mrb[68].mxu0  ;;  %v3269_v36 = vsub.f32 %v3245_v3, %v10728_v7 }
 0x51d   : > { %vm3202_vm1 = vcmp.gt.f32.partialorder %v3090_v55, 0.0  ;;  %v3227_v59 = vmul.f32 %v8798_v39, %v3090_v55  ;;  %v3093_v42 = vpop.f32.mrb[64].mxu1  ;;  %v3171_v24 = vadd.f32 %v3170_v8, %v8796_v2  ;;  %v3172_v25 = vpop.f32.mrb[69].mxu0  ;;  %v8889_v5 = vmul.f32 %v10729_v47, %v3268_v60 }
 0x51e   : > { %v3250_v18 = vsel %vm3201_vm0, %v3088_v40, %v3226_v21  ;;  %v3094_v19 = vadd.f32 %v3093_v42, %v8811_v46  ;;  %v3095_v48 = vpop.f32.mrb[65].mxu1  ;;  %v3173_v0 = vadd.f32 %v3172_v25, %v8796_v2  ;;  %v8896_v40 = vmul.f32 %v10731_v10, %v3269_v36 }
 0x51f   : > { %v3251_v9 = vsel %vm3202_vm1, %v3090_v55, %v3227_v59  ;;  %v3096_v50 = vadd.f32 %v3095_v48, %v8811_v46  ;;  %vm3197_vm2 = vcmp.gt.f32.partialorder %v3171_v24, 0.0  ;;  %v3274_v26 = vsub.f32 %v3250_v18, %v10730_v31  ;;  %v10733_v59 = vld [vmem:[#allocation36_spill] sm:$0xff]  ;;  %v10734_v18 = vld [vmem:[#allocation43_spill] sm:$0xff] }
 0x520   : > { %vm3207_vm3 = vcmp.gt.f32.partialorder %v3094_v19, 0.0  ;;  %v3232_v44 = vmul.f32 %v8798_v39, %v3094_v19  ;;  %v3222_v13 = vmul.f32 %v8798_v39, %v3171_v24  ;;  %v3176_v29 = vpop.f32.mrb[70].mxu0  ;;  %v3275_v2 = vsub.f32 %v3251_v9, %v10732_v41 }
 0x521   : > { %vm3208_vm4 = vcmp.gt.f32.partialorder %v3096_v50, 0.0  ;;  %v3233_v38 = vmul.f32 %v8798_v39, %v3096_v50  ;;  %v3099_v60 = vpop.f32.mrb[66].mxu1  ;;  %v3178_v3 = vpop.f32.mrb[71].mxu0  ;;  %vm3198_vm5 = vcmp.gt.f32.partialorder %v3173_v0, 0.0  ;;  %v3223_v36 = vmul.f32 %v8798_v39, %v3173_v0 }
 0x522   : > { %v3256_v55 = vsel %vm3207_vm3, %v3094_v19, %v3232_v44  ;;  %v3246_v21 = vsel %vm3197_vm2, %v3171_v24, %v3222_v13  ;;  %v3100_v8 = vadd.f32 %v3099_v60, %v8827_v43  ;;  %v3101_v7 = vpop.f32.mrb[67].mxu1  ;;  %v8905_v9 = vmul.f32 %v10729_v47, %v3274_v26  ;;  %v10735_v13 = vld [vmem:[#allocation45_spill] sm:$0xff]  ;;  %v10736_v26 = vld [vmem:[#allocation39_spill] sm:$0xff] }
 0x523   : > { %v3280_v42 = vsub.f32 %v3256_v55, %v10733_v59  ;;  %v3257_v25 = vsel %vm3208_vm4, %v3096_v50, %v3233_v38  ;;  %v3270_v48 = vsub.f32 %v3246_v21, %v10734_v18  ;;  %v3102_v19 = vadd.f32 %v3101_v7, %v8827_v43  ;;  %v10737_v18 = vld [vmem:[#allocation29_spill] sm:$0xff] }
 0x524   : > { %vm3213_vm6 = vcmp.gt.f32.partialorder %v3100_v8, 0.0  ;;  %v3238_v31 = vmul.f32 %v8798_v39, %v3100_v8  ;;  %v3182_v24 = vpop.f32.mrb[72].mxu0  ;;  %v8910_v44 = vmul.f32 %v10731_v10, %v3275_v2  ;;  %v3281_v41 = vsub.f32 %v3257_v25, %v10735_v13  ;;  %v10738_v25 = vld [vmem:[#allocation38_spill] sm:$0xff] }
 0x525   : > { %v3247_v60 = vsel %vm3198_vm5, %v3173_v0, %v3223_v36  ;;  %v3177_v50 = vadd.f32 %v3176_v29, %v8803_v20  ;;  %v3184_v38 = vpop.f32.mrb[73].mxu0  ;;  %v8915_v55 = vmul.f32 %v10729_v47, %v3280_v42  ;;  %v8918_v21 = vmul.f32 %v10736_v26, %v3270_v48 }
 0x526   : > { %v3262_v59 = vsel %vm3213_vm6, %v3100_v8, %v3238_v31  ;;  %vm3214_vm7 = vcmp.gt.f32.partialorder %v3102_v19, 0.0  ;;  %v3271_v7 = vsub.f32 %v3247_v60, %v10737_v18  ;;  %v3239_v1 = vmul.f32 %v8798_v39, %v3102_v19 }
 0x527   : > { %vm3203_vm8 = vcmp.gt.f32.partialorder %v3177_v50, 0.0  ;;  %v3228_v2 = vmul.f32 %v8798_v39, %v3177_v50  ;;  %v3286_v0 = vsub.f32 %v3262_v59, %v10738_v25  ;;  %v3179_v29 = vadd.f32 %v3178_v3, %v8803_v20  ;;  %v10743_v25 = vld [vmem:[#allocation47_spill] sm:$0xff] }
 0x528   : > { %v3183_v36 = vadd.f32 %v3182_v24, %v8811_v46  ;;  %v3185_v42 = vadd.f32 %v3184_v38, %v8811_v46  ;;  %v3188_v13 = vpop.f32.mrb[74].mxu0  ;;  %v8928_v48 = vmul.f32 %v10731_v10, %v3281_v41  ;;  %v3263_v8 = vsel %vm3214_vm7, %v3102_v19, %v3239_v1  ;;  %v10741_v1 = vld [vmem:[#allocation26_spill] sm:$0xff] }
 0x529   : > { %v3252_v31 = vsel %vm3203_vm8, %v3177_v50, %v3228_v2  ;;  %v3189_v60 = vadd.f32 %v3188_v13, %v8827_v43  ;;  %v3190_v18 = vpop.f32.mrb[75].mxu0  ;;  %v3287_v58 = vsub.f32 %v3263_v8, %v10739_v12  ;;  %vm3204_vm9 = vcmp.gt.f32.partialorder %v3179_v29, 0.0  ;;  %v10742_v12 = vld [vmem:[#allocation28_spill] sm:$0xff]  ;;  %v10744_v8 = vld [vmem:[#allocation33_spill] sm:$0xff] }
 0x52a   : > { %v3276_v22 = vsub.f32 %v3252_v31, %v10740_v28  ;;  %v3229_v20 = vmul.f32 %v8798_v39, %v3179_v29  ;;  %vm3209_vm10 = vcmp.gt.f32.partialorder %v3183_v36, 0.0  ;;  %v3234_v3 = vmul.f32 %v8798_v39, %v3183_v36 }
 0x52b   : > { %vm3210_vm14 = vcmp.gt.f32.partialorder %v3185_v42, 0.0  ;;  %v3235_v46 = vmul.f32 %v8798_v39, %v3185_v42  ;;  %v8937_v24 = vmul.f32 %v10729_v47, %v3286_v0  ;;  %v8940_v19 = vmul.f32 %v10741_v1, %v3271_v7 }
 0x52c   : > { %v3253_v41 = vsel %vm3204_vm9, %v3179_v29, %v3229_v20  ;;  %vm3215_vm15 = vcmp.gt.f32.partialorder %v3189_v60, 0.0  ;;  %v3258_v28 = vsel %vm3209_vm10, %v3183_v36, %v3234_v3  ;;  %v3240_v59 = vmul.f32 %v8798_v39, %v3189_v60  ;;  %v10745_v20 = vld [vmem:[#allocation44_spill] sm:$0xff] }
 0x52d   : > { %v3277_v50 = vsub.f32 %v3253_v41, %v10742_v12  ;;  %v3259_v38 = vsel %vm3210_vm14, %v3185_v42, %v3235_v46  ;;  %v8945_v2 = vmul.f32 %v10736_v26, %v3276_v22  ;;  %v3282_v13 = vsub.f32 %v3258_v28, %v10743_v25 }
 0x52e   : > { %v3283_v31 = vsub.f32 %v3259_v38, %v10744_v8  ;;  %v3191_v47 = vadd.f32 %v3190_v18, %v8827_v43  ;;  %v8951_v7 = vmul.f32 %v10731_v10, %v3287_v58  ;;  %v3264_v29 = vsel %vm3215_vm15, %v3189_v60, %v3240_v59  ;;  %v10746_v38 = vld [vmem:[#allocation34_spill] sm:$0xff] }
 0x52f   : > { %v8954_v0 = vmul.f32 %v10741_v1, %v3277_v50  ;;  %v5788_v36 = vpack.i.bf16 %v8915_v55, %v8851_v63  ;;  %v8959_v42 = vmul.f32 %v10736_v26, %v3282_v13  ;;  %v3288_v3 = vsub.f32 %v3264_v29, %v10745_v20 }
 0x530   : > { %v8962_v22 = vmul.f32 %v10741_v1, %v3283_v31  ;;  %vm3216_vm0 = vcmp.gt.f32.partialorder %v3191_v47, 0.0  ;;  %v3241_v43 = vmul.f32 %v8798_v39, %v3191_v47  ;;  %v5793_v10 = vpack.i.bf16 %v8937_v24, %v8864_v35 }
 0x531   : > { %v5758_v58 = vpack.i.bf16 %v8954_v0, %v8940_v19  ;;  %v5803_v60 = vpack.i.bf16 %v8896_v40, %v8889_v5  ;;  %v8973_v18 = vmul.f32 %v10736_v26, %v3288_v3  ;;  %v5808_v46 = vpack.i.bf16 %v8910_v44, %v8905_v9 }
 0x532   : > { %v5813_v41 = vpack.i.bf16 %v8945_v2, %v8918_v21  ;;  %v5818_v39 = vpack.i.bf16 %v8928_v48, %v8915_v55  ;;  %v3265_v12 = vsel %vm3216_vm0, %v3191_v47, %v3241_v43  ;;  %v5823_v50 = vpack.i.bf16 %v8951_v7, %v8937_v24 }
 0x533   : > { %5759 = vrot.lane.b32.xlu0 %v5758_v58, %s5973_s25  ;;  %v5833_v28 = vpack.i.bf16 %v8918_v21, %v8896_v40  ;;  %v5838_v26 = vpack.i.bf16 %v8945_v2, %v8910_v44  ;;  %v3289_v59 = vsub.f32 %v3265_v12, %v10746_v38  ;;  %v5828_v25 = vpack.i.bf16 %v8973_v18, %v8959_v42 }
 0x534   : > { %v5848_v13 = vpack.i.bf16 %v8959_v42, %v8928_v48  ;;  %v5853_v8 = vpack.i.bf16 %v8973_v18, %v8951_v7  ;;  %v5773_v43 = vpack.i.bf16 %v8889_v5, %v8818_v32  ;;  %v5778_v12 = vpack.i.bf16 %v8905_v9, %v8834_v53 }
 0x535   : > { %v9002_v20 = vmul.f32 %v10741_v1, %v3289_v59  ;;  %v10748_v38 = vpack.i.bf16 %v8861_v16, %v8847_v37 }
 0x537   : > { %5764 = vrot.lane.b32.xlu0 %v5763_v54, %s5973_s25  ;;  %v5768_v1 = vpack.i.bf16 %v9002_v20, %v8962_v22  ;;  %v10747_v54 = vpack.i.bf16 %v8830_v52, %v8814_v11 }
 0x539   : > { %5769 = vrot.lane.b32.xlu1 %v5768_v1, %s5973_s25 }
 0x53b   : > { %5774 = vrot.lane.b32.xlu0 %v5773_v43, %s5974_s16  ;;  %v3558_v43 = vld [vmem:[%s10749_s8 + $0x20] sm:$0xff] }
 0x53d   : > { %5779 = vrot.lane.b32.xlu1 %v5778_v12, %s5974_s16  ;;  %v3559_v12 = vld [vmem:[%s10749_s8 + $0x28] sm:$0xff] }
 0x53f   : > { %5784 = vrot.lane.b32.xlu0 %v10747_v54, %s5974_s16  ;;  %v3562_v54 = vld [vmem:[%s10749_s8 + $0x40] sm:$0xff] }
 0x541   : > { %5789 = vrot.lane.b32.xlu1 %v5788_v36, %s5974_s16 }
 0x543   : > { %5794 = vrot.lane.b32.xlu0 %v5793_v10, %s5974_s16  ;;  %v3554_v10 = vld [vmem:[%s10749_s8] sm:$0xff] }
 0x545   : > { %5799 = vrot.lane.b32.xlu1 %v10748_v38, %s5974_s16  ;;  %v3560_v38 = vld [vmem:[%s10749_s8 + $0x30] sm:$0xff] }
 0x547   : > { %5804 = vrot.lane.b32.xlu0 %v5803_v60, %s5973_s25 }
 0x549   : > { %5809 = vrot.lane.b32.xlu1 %v5808_v46, %s5973_s25 }
 0x54b   : > { %5814 = vrot.lane.b32.xlu0 %v5813_v41, %s5973_s25 }
 0x54d   : > { %5819 = vrot.lane.b32.xlu1 %v5818_v39, %s5973_s25  ;;  %v3556_v39 = vld [vmem:[%s10749_s8 + $0x10] sm:$0xff] }
 0x54f   : > { %5824 = vrot.lane.b32.xlu0 %v5823_v50, %s5973_s25 }
 0x551   : > { %5829 = vrot.lane.b32.xlu1 %v5828_v25, %s5973_s25  ;;  %s4902_s25 = sshll.u32 (%p10834_p2), %s10836_s6, 8 }
 0x552   : > { %s4479_s29 = sadd.s32 (%p10834_p2), %s4902_s25, %s4901_s15 }
 0x553   : > { %5834 = vrot.lane.b32.xlu0 %v5833_v28, %s5974_s16  ;;  %s4903_s20 = sshll.u32 (%p10834_p2), %s4479_s29, 3 }
 0x554   : > { %s9794_s17 = scalar_lea.vmem (%p10834_p2), %s10837_s27, %s4903_s20 }
 0x555   : > { %5839 = vrot.lane.b32.xlu1 %v5838_v26, %s5974_s16 }
 0x557   : > { %5844 = vrot.lane.b32.xlu0 %v5758_v58, %s5974_s16  ;;  %v3555_v58 = vld [vmem:[%s10749_s8 + $0x8] sm:$0xff] }
 0x559   : > { %5849 = vrot.lane.b32.xlu1 %v5848_v13, %s5974_s16  ;;  %v3557_v13 = vld [vmem:[%s10749_s8 + $0x18] sm:$0xff] }
 0x55b   : > { %5854 = vrot.lane.b32.xlu0 %v5853_v8, %s5974_s16  ;;  %v9048_v36 = vpop.permute.xlu0 %5744 }
 0x55c   : > { %v10226_v60 = vunpack.i.h.bf16 %v9048_v36  ;;  %v5746_v46 = vunpack.i.l.bf16 %v9048_v36 }
 0x55d   : > { %5859 = vrot.lane.b32.xlu1 %v5768_v1, %s5974_s16  ;;  %v3561_v1 = vld [vmem:[%s10749_s8 + $0x38] sm:$0xff]  ;;  %s10760_s16 = sld [smem:[#allocation143_spill]] }
 0x55e   : > { %v3390_v26 = vsel %vm1219_vm11, %v5746_v46, %v10226_v60 }
 0x55f   : > { %3572 = vperm.xlu0 %5381, %v3554_v10   ;;  %v9059_v41 = vpop.permute.xlu1 %5749  ;;  %v3563_v10 = vld [vmem:[%s10749_s8 + $0x48] sm:$0xff] }
 0x560   : > { %v10225_v50 = vunpack.i.h.bf16 %v9059_v41  ;;  %v5751_v28 = vunpack.i.l.bf16 %v9059_v41 }
 0x561   : > { %3577 = vperm.xlu1 %5382, %v3555_v58   ;;  %v3564_v58 = vld [vmem:[%s10749_s8 + $0x50] sm:$0xff] }
 0x562   : > { %v3395_v25 = vsel %vm1219_vm11, %v5751_v28, %v10225_v50  ;;  %v10751_v50 = vpack.c.bf16 %v8864_v35, %v8851_v63 }
 0x563   : > { %3582 = vperm.xlu0 %5381, %v3556_v39   ;;  %v5194_v8 = vpack.c.bf16 %v3395_v25, %v3390_v26  ;;  %v3565_v39 = vld [vmem:[%s10749_s8 + $0x58] sm:$0xff]  ;;  %v3566_v26 = vld [vmem:[%s10749_s8 + $0x60] sm:$0xff]  ;;  %v3567_v25 = vld [vmem:[%s10749_s8 + $0x68] sm:$0xff] }
 0x565   : > { %5195 = vmatprep.subr.bf16.mxu1 %v5194_v8  ;;  %3587 = vperm.xlu1 %5382, %v3557_v13   ;;  %v3568_v13 = vld [vmem:[%s10749_s8 + $0x70] sm:$0xff]  ;;  %v3569_v8 = vld [vmem:[%s10749_s8 + $0x78] sm:$0xff] }
 0x567   : > { %3592 = vperm.xlu0 %5381, %v3558_v43   ;;  %v9111_v43 = vpop.permute.xlu1 %5754 }
 0x569   : > { %3597 = vperm.xlu1 %5382, %v3559_v12  }
 0x56b   : > { %3602 = vperm.xlu0 %5381, %v3560_v38  }
 0x56d   : > { %3607 = vperm.xlu1 %5382, %v3561_v1  }
 0x56f   : > { %3612 = vperm.xlu0 %5381, %v3562_v54   ;;  %v10219_v54 = vunpack.i.h.bf16 %v9111_v43 }
 0x571   : > { %3617 = vperm.xlu1 %5382, %v3563_v10   ;;  %v5756_v10 = vunpack.i.l.bf16 %v9111_v43 }
 0x573   : > { %3622 = vperm.xlu0 %5381, %v3564_v58   ;;  %v3400_v29 = vsel %vm1219_vm11, %v5756_v10, %v10219_v54 }
 0x575   : > { %3627 = vperm.xlu1 %5382, %v3565_v39  }
 0x577   : > { %3632 = vperm.xlu0 %5381, %v3566_v26  }
 0x579   : > { %3637 = vperm.xlu1 %5382, %v3567_v25  }
 0x57b   : > { %3642 = vperm.xlu0 %5381, %v3568_v13  }
 0x57d   : > { %3647 = vperm.xlu1 %5382, %v3569_v8  }
 0x5a5   : > { %v9113_v12 = vpop.permute.xlu0 %5759 }
 0x5a6   : > { %v10221_v38 = vunpack.i.h.bf16 %v9113_v12  ;;  %v10222_v1 = vunpack.i.l.bf16 %v9113_v12 }
 0x5a8   : > { %v3435_v58 = vsel %vm1219_vm11, %v10221_v38, %v5751_v28  ;;  %v3434_v39 = vsel %vm1219_vm11, %v10222_v1, %v5746_v46 }
 0x5a9   : > { %v5196_v26 = vpack.c.bf16 %v3435_v58, %v3434_v39  ;;  %v9125_v25 = vpop.permute.xlu0 %5764 }
 0x5aa   : > { %v10220_v13 = vunpack.i.h.bf16 %v9125_v25  ;;  %v5766_v8 = vunpack.i.l.bf16 %v9125_v25 }
 0x5ab   : > { %5197 = vmatpush1.bf16.msra.mxu1 %v5196_v26  ;;  %v9129_v59 = vpop.permute.xlu1 %5769 }
 0x5ac   : > { %v3405_v28 = vsel %vm1219_vm11, %v5766_v8, %v10220_v13  ;;  %v10223_v46 = vunpack.i.h.bf16 %v9129_v59  ;;  %v10224_v58 = vunpack.i.l.bf16 %v9129_v59 }
 0x5ad   : > { %v9139_v39 = vpop.permute.xlu0 %5774  ;;  %v5198_v3 = vpack.c.bf16 %v3405_v28, %v3400_v29  ;;  %v5202_v29 = vpack.c.bf16 %v8834_v53, %v8818_v32 }
 0x5ae   : > { %v3436_v26 = vsel %vm1219_vm11, %v10224_v58, %v5756_v10  ;;  %v3437_v47 = vsel %vm1219_vm11, %v10223_v46, %v5766_v8  ;;  %v10228_v10 = vunpack.i.h.bf16 %v9139_v39  ;;  %v5776_v28 = vunpack.i.l.bf16 %v9139_v39 }
 0x5af   : > { %5199 = vmatprep.subr.bf16.mxu1 %v5198_v3  ;;  %v5200_v31 = vpack.c.bf16 %v3437_v47, %v3436_v26  ;;  %v9147_v54 = vpop.permute.xlu1 %5779 }
 0x5b0   : > { %v10227_v13 = vunpack.i.h.bf16 %v9147_v54  ;;  %v5781_v38 = vunpack.i.l.bf16 %v9147_v54  ;;  %v3487_v60 = vsel %vm1316_vm12, %v5776_v28, %v10228_v10 }
 0x5b1   : > { %v9151_v1 = vpop.permute.xlu0 %5784  ;;  %5201 = vmatpush1.bf16.msra.mxu1 %v5200_v31 }
 0x5b2   : > { %5203 = vmatprep.subr.bf16.mxu1 %v5202_v29  ;;  %v10229_v3 = vunpack.i.h.bf16 %v9151_v1  ;;  %v10230_v47 = vunpack.i.l.bf16 %v9151_v1  ;;  %v3492_v32 = vsel %vm1316_vm12, %v5781_v38, %v10227_v13  ;;  %v10750_v29 = vpack.c.bf16 %v8830_v52, %v8814_v11 }
 0x5b3   : > { %v9159_v8 = vpop.permute.xlu1 %5789  ;;  %v5210_v11 = vpack.c.bf16 %v3492_v32, %v3487_v60 }
 0x5b4   : > { %v5791_v46 = vunpack.i.l.bf16 %v9159_v8  ;;  %v3491_v13 = vsel %vm1316_vm12, %v10229_v3, %v5781_v38  ;;  %v3486_v53 = vsel %vm1316_vm12, %v10230_v47, %v5776_v28  ;;  %v10754_v3 = vpack.c.bf16 %v8861_v16, %v8847_v37 }
 0x5b5   : > { %v9163_v58 = vpop.permute.xlu0 %5794  ;;  %5205 = vmatpush1.bf16.msra.mxu1 %v10750_v29  ;;  %v5212_v60 = vpack.c.bf16 %v3491_v13, %v3486_v53  ;;  %v10756_v16 = vunpack.i.h.bf16 %v9048_v36 }
 0x5b6   : > { %v5796_v31 = vunpack.i.l.bf16 %v9163_v58  ;;  %5207 = vmatprep.subr.bf16.mxu1 %v10751_v50  ;;  %v10752_v50 = vunpack.i.h.bf16 %v9159_v8  ;;  %v10753_v10 = vunpack.i.h.bf16 %v9163_v58 }
 0x5b7   : > { %v9185_v26 = vpop.permute.xlu1 %5799 }
 0x5b8   : > { %v5801_v63 = vunpack.i.l.bf16 %v9185_v26  ;;  %v3497_v29 = vsel %vm1316_vm12, %v5791_v46, %v10752_v50  ;;  %v3502_v38 = vsel %vm1316_vm12, %v5796_v31, %v10753_v10  ;;  %v10755_v50 = vunpack.i.h.bf16 %v9185_v26 }
 0x5b9   : > { %v5805_v35 = vpop.permute.xlu0 %5804  ;;  %5209 = vmatpush1.bf16.msra.mxu1 %v10754_v3  ;;  %v5214_v52 = vpack.c.bf16 %v3502_v38, %v3497_v29  ;;  %v10757_v3 = vunpack.i.h.bf16 %v9059_v41  ;;  %v10758_v41 = vunpack.i.l.bf16 %v9113_v12 }
 0x5ba   : > { %v5807_v28 = vunpack.i.h.bf16 %v5805_v35  ;;  %v5806_v47 = vunpack.i.l.bf16 %v5805_v35  ;;  %5211 = vmatprep.subr.bf16.mxu1 %v5210_v11  ;;  %v3496_v45 = vsel %vm1316_vm12, %v5801_v63, %v5791_v46  ;;  %v3501_v56 = vsel %vm1316_vm12, %v10755_v50, %v5796_v31 }
 0x5bb   : > { %v5810_v32 = vpop.permute.xlu1 %5809  ;;  %v5216_v31 = vpack.c.bf16 %v3501_v56, %v3496_v45  ;;  %v10759_v45 = vunpack.i.h.bf16 %v9113_v12 }
 0x5bc   : > { %v5812_v4 = vunpack.i.h.bf16 %v5810_v32  ;;  %v5811_v10 = vunpack.i.l.bf16 %v5810_v32  ;;  %v3391_v13 = vsel %vm1219_vm11, %v10756_v16, %v5806_v47  ;;  %v3392_v46 = vsel %vm1219_vm11, %v5806_v47, %v5807_v28 }
 0x5bd   : > { %v5815_v23 = vpop.permute.xlu0 %5814  ;;  %5213 = vmatpush1.bf16.msra.mxu1 %v5212_v60  ;;  %v10761_v47 = vunpack.i.h.bf16 %v9111_v43 }
 0x5be   : > { %v5817_v30 = vunpack.i.h.bf16 %v5815_v23  ;;  %v5816_v37 = vunpack.i.l.bf16 %v5815_v23  ;;  %v3396_v53 = vsel %vm1219_vm11, %v10757_v3, %v5811_v10  ;;  %5215 = vmatprep.subr.bf16.mxu1 %v5214_v52  ;;  %v3397_v11 = vsel %vm1219_vm11, %v5811_v10, %v5812_v4 }
 0x5bf   : > { %v5220_v35 = vpack.c.bf16 %v3396_v53, %v3391_v13  ;;  %v5820_v38 = vpop.permute.xlu1 %5819  ;;  %v5218_v23 = vpack.c.bf16 %v3397_v11, %v3392_v46  ;;  %v10762_v53 = vunpack.i.h.bf16 %v9125_v25  ;;  %v9239_v25 = vld [vmem:[%s10760_s16 + $0x8] sm:$0xff] }
 0x5c0   : > { %v3398_v29 = vsel %vm1219_vm11, %v5812_v4, %v5817_v30  ;;  %v3393_v60 = vsel %vm1219_vm11, %v5807_v28, %v5816_v37  ;;  %v5822_v36 = vunpack.i.h.bf16 %v5820_v38  ;;  %v5821_v32 = vunpack.i.l.bf16 %v5820_v38  ;;  %v9223_v4 = vld [vmem:[%s10760_s16] sm:$0xff] }
 0x5c1   : > { %v5825_v50 = vpop.permute.xlu0 %5824  ;;  %v3394_v16 = vsel %vm1219_vm11, %v5816_v37, %v10758_v41  ;;  %5217 = vmatpush1.bf16.msra.mxu1 %v5216_v31  ;;  %5219 = vmatprep.subr.bf16.mxu0 %v5218_v23  ;;  %v3399_v56 = vsel %vm1219_vm11, %v5817_v30, %v10759_v45  ;;  %v5244_v13 = vpack.c.bf16 %v3398_v29, %v3393_v60  ;;  %v10763_v60 = vunpack.i.l.bf16 %v9129_v59 }
 0x5c2   : > { %v5827_v52 = vunpack.i.h.bf16 %v5825_v50  ;;  %v5826_v3 = vunpack.i.l.bf16 %v5825_v50  ;;  %v3401_v28 = vsel %vm1219_vm11, %v10761_v47, %v5821_v32  ;;  %5221 = vmatpush1.bf16.msra.mxu0 %v5220_v35  ;;  %v5242_v10 = vpack.c.bf16 %v3399_v56, %v3394_v16 }
 0x5c3   : > { %v3402_v37 = vsel %vm1219_vm11, %v5821_v32, %v5822_v36  ;;  %v5830_v46 = vpop.permute.xlu1 %5829  ;;  %v10764_v50 = vunpack.i.h.bf16 %v9129_v59  ;;  %v9258_v59 = vld [vmem:[%s10760_s16 + $0x10] sm:$0xff] }
 0x5c4   : > { %v3406_v12 = vsel %vm1219_vm11, %v10762_v53, %v5826_v3  ;;  %v3407_v30 = vsel %vm1219_vm11, %v5826_v3, %v5827_v52  ;;  %5243 = vmatprep.subr.bf16.mxu1 %v5242_v10  ;;  %v5832_v31 = vunpack.i.h.bf16 %v5830_v46  ;;  %v5831_v38 = vunpack.i.l.bf16 %v5830_v46  ;;  %4852 = vmatmul.mubr.msk.f32.vlgmr.msra.gmra.mrb[68].mxu1 %vm1481_vm13, %v9223_v4 }
 0x5c5   : > { %v5224_v11 = vpack.c.bf16 %v3406_v12, %v3401_v28  ;;  %v5835_v23 = vpop.permute.xlu0 %5834  ;;  %v5222_v43 = vpack.c.bf16 %v3407_v30, %v3402_v37  ;;  %5245 = vmatpush1.bf16.msra.mxu1 %v5244_v13  ;;  %3767 = vmatprep.mubr.f32.mxu1 %v10716_v62  ;;  %v10767_v53 = vpack.c.bf16 %v8954_v0, %v8940_v19  ;;  %v9280_v0 = vld [vmem:[%s10760_s16 + $0x18] sm:$0xff] }
 0x5c6   : > { %v3403_v35 = vsel %vm1219_vm11, %v5822_v36, %v5831_v38  ;;  %v3408_v29 = vsel %vm1219_vm11, %v5827_v52, %v5832_v31  ;;  %v3404_v32 = vsel %vm1219_vm11, %v5831_v38, %v10763_v60  ;;  %v3409_v41 = vsel %vm1219_vm11, %v5832_v31, %v10764_v50 }
 0x5c7   : > { %5223 = vmatprep.subr.bf16.mxu0 %v5222_v43  ;;  %v5248_v16 = vpack.c.bf16 %v3408_v29, %v3403_v35  ;;  %v5840_v3 = vpop.permute.xlu1 %5839  ;;  %v5246_v45 = vpack.c.bf16 %v3409_v41, %v3404_v32  ;;  %v10765_v36 = vpack.c.bf16 %v8910_v44, %v8896_v40  ;;  %v5837_v52 = vunpack.i.h.bf16 %v5835_v23 }
 0x5c8   : > { %5225 = vmatpush1.bf16.msra.mxu0 %v5224_v11  ;;  %v5842_v56 = vunpack.i.h.bf16 %v5840_v3  ;;  %v5841_v47 = vunpack.i.l.bf16 %v5840_v3  ;;  %4853 = vmatmul.mubr.msk.f32.gmra.mrb[70].mxu1 %vm1481_vm13, %v9239_v25  ;;  %v5836_v10 = vunpack.i.l.bf16 %v5835_v23  ;;  %v10766_v40 = vpack.c.bf16 %v8905_v9, %v8889_v5 }
 0x5c9   : > { %v5845_v28 = vpop.permute.xlu0 %5844  ;;  %5227 = vmatprep.subr.bf16.mxu0 %v10765_v36  ;;  %5247 = vmatprep.subr.bf16.mxu1 %v5246_v45  ;;  %v10768_v31 = vpack.c.bf16 %v8951_v7, %v8928_v48  ;;  %v10769_v5 = vunpack.i.h.bf16 %v9147_v54  ;;  %v10770_v48 = vpack.c.bf16 %v8945_v2, %v8918_v21  ;;  %v10771_v54 = vunpack.i.l.bf16 %v9151_v1 }
 0x5ca   : > { %3772 = vmatprep.mubr.f32.mxu1 %v10716_v62  ;;  %v5847_v37 = vunpack.i.h.bf16 %v5845_v28  ;;  %v5846_v13 = vunpack.i.l.bf16 %v5845_v28  ;;  %5249 = vmatpush1.bf16.msra.mxu1 %v5248_v16  ;;  %v3494_v12 = vsel %vm1316_vm12, %v5841_v47, %v5842_v56  ;;  %v3489_v19 = vsel %vm1316_vm12, %v5836_v10, %v5837_v52 }
 0x5cb   : > { %v5850_v44 = vpop.permute.xlu1 %5849  ;;  %5251 = vmatprep.subr.bf16.mxu1 %v10767_v53  ;;  %v3493_v9 = vsel %vm1316_vm12, %v10769_v5, %v5841_v47  ;;  %v5234_v7 = vpack.c.bf16 %v3494_v12, %v3489_v19  ;;  %v10772_v35 = vunpack.i.h.bf16 %v9151_v1  ;;  %v10773_v60 = vunpack.i.h.bf16 %v9139_v39  ;;  %v9313_v47 = vld [vmem:[%s10760_s16 + $0x20] sm:$0xff]  ;;  %v9354_v53 = vld [vmem:[%s10760_s16 + $0x38] sm:$0xff]  ;;  %v3551_v5 = vld [vmem:[%s10760_s16 + $0x68] sm:$0xff] }
 0x5cc   : > { %5229 = vmatpush1.bf16.msra.mxu0 %v10766_v40  ;;  %v5852_v46 = vunpack.i.h.bf16 %v5850_v44  ;;  %v5851_v30 = vunpack.i.l.bf16 %v5850_v44  ;;  %4854 = vmatmul.mubr.msk.f32.gmra.mrb[72].mxu1 %vm1481_vm13, %v9258_v59  ;;  %v3534_v43 = vsel %vm1316_vm12, %v5846_v13, %v10771_v54  ;;  %v10774_v50 = vpack.c.bf16 %v8937_v24, %v8915_v55  ;;  %v9343_v44 = vld [vmem:[%s10760_s16 + $0x30] sm:$0xff]  ;;  %v9365_v12 = vld [vmem:[%s10760_s16 + $0x40] sm:$0xff] }
 0x5cd   : > { %v5855_v11 = vpop.permute.xlu0 %5854  ;;  %5231 = vmatprep.subr.bf16.mxu0 %v10768_v31  ;;  %3777 = vmatprep.mubr.f32.mxu1 %v10716_v62  ;;  %v3535_v29 = vsel %vm1316_vm12, %v5847_v37, %v10772_v35  ;;  %v3488_v32 = vsel %vm1316_vm12, %v10773_v60, %v5836_v10  ;;  %v10775_v21 = vpack.c.bf16 %v9002_v20, %v8962_v22  ;;  %v10776_v24 = vunpack.i.h.bf16 %v9159_v8  ;;  %v3550_v31 = vld [vmem:[%s10760_s16 + $0x60] sm:$0xff]  ;;  %v10780_v35 = vld [vmem:[#allocation95_spill] sm:$0xff] }
 0x5ce   : > { %v5857_v38 = vunpack.i.h.bf16 %v5855_v11  ;;  %v5856_v23 = vunpack.i.l.bf16 %v5855_v11  ;;  %5253 = vmatpush1.bf16.msra.mxu1 %v10770_v48  ;;  %v3499_v2 = vsel %vm1316_vm12, %v5851_v30, %v5852_v46  ;;  %v5236_v1 = vpack.c.bf16 %v3493_v9, %v3488_v32  ;;  %v3549_v11 = vld [vmem:[%s10760_s16 + $0x58] sm:$0xff]  ;;  %v3552_v9 = vld [vmem:[%s10760_s16 + $0x70] sm:$0xff] }
 0x5cf   : > { %v5860_v41 = vpop.permute.xlu1 %5859  ;;  %5255 = vmatprep.subr.bf16.mxu1 %v10775_v21  ;;  %v3495_v39 = vsel %vm1316_vm12, %v5842_v56, %v5847_v37  ;;  %v3490_v55 = vsel %vm1316_vm12, %v5837_v52, %v5846_v13  ;;  %v3498_v22 = vsel %vm1316_vm12, %v10776_v24, %v5851_v30  ;;  %v5258_v20 = vpack.c.bf16 %v3535_v29, %v3534_v43  ;;  %v3548_v30 = vld [vmem:[%s10760_s16 + $0x50] sm:$0xff] }
 0x5d0   : > { %5233 = vmatpush1.bf16.msra.mxu0 %v10774_v50  ;;  %v3504_v16 = vsel %vm1316_vm12, %v5856_v23, %v5857_v38  ;;  %v5862_v3 = vunpack.i.h.bf16 %v5860_v41  ;;  %v5861_v45 = vunpack.i.l.bf16 %v5860_v41  ;;  %4855 = vmatmul.mubr.msk.f32.gmra.mrb[74].mxu1 %vm1481_vm13, %v9280_v0  ;;  %v10777_v28 = vunpack.i.h.bf16 %v9163_v58 }
 0x5d1   : > { %5235 = vmatprep.subr.bf16.mxu0 %v5234_v7  ;;  %3782 = vmatprep.mubr.f32.mxu1 %v10716_v62  ;;  %v10778_v56 = vpack.c.bf16 %v8973_v18, %v8959_v42  ;;  %v5238_v52 = vpack.c.bf16 %v3504_v16, %v3499_v2  ;;  %v10779_v10 = vunpack.i.h.bf16 %v9185_v26  ;;  %v5260_v13 = vpack.c.bf16 %v3495_v39, %v3490_v55  ;;  %v9335_v26 = vld [vmem:[%s10760_s16 + $0x28] sm:$0xff]  ;;  %v10781_v16 = vld [vmem:[#allocation101_spill] sm:$0xff] }
 0x5d2   : > { %v3503_v36 = vsel %vm1316_vm12, %v10777_v28, %v5856_v23  ;;  %v3536_v8 = vsel %vm1316_vm12, %v5861_v45, %v5801_v63  ;;  %v3500_v42 = vsel %vm1316_vm12, %v5852_v46, %v5861_v45  ;;  %v3505_v18 = vsel %vm1316_vm12, %v5857_v38, %v5862_v3  ;;  %v9376_v46 = vld [vmem:[%s10760_s16 + $0x48] sm:$0xff]  ;;  %v3553_v38 = vld [vmem:[%s10760_s16 + $0x78] sm:$0xff] }
 0x5d3   : > { %5257 = vmatpush1.bf16.msra.mxu1 %v10778_v56  ;;  %v3537_v37 = vsel %vm1316_vm12, %v5862_v3, %v10779_v10  ;;  %v5240_v58 = vpack.c.bf16 %v3503_v36, %v3498_v22  ;;  %v5264_v63 = vpack.c.bf16 %v3505_v18, %v3500_v42  ;;  %v9486_v23 = vstv %s4791_s21 }
 0x5d4   : > { %5237 = vmatpush1.bf16.msra.mxu0 %v5236_v1  ;;  %5259 = vmatprep.subr.bf16.mxu1 %v5258_v20  ;;  %v5262_v40 = vpack.c.bf16 %v3537_v37, %v3536_v8  ;;  %v10782_v20 = vld [vmem:[#allocation107_spill] sm:$0xff]  ;;  %v10783_v37 = vld [vmem:[#allocation110_spill] sm:$0xff] }
 0x5d5   : > { %5239 = vmatprep.subr.bf16.mxu0 %v5238_v52  ;;  %4856 = vmatmul.mubr.msk.f32.gmra.mrb[76].mxu1 %vm1481_vm13, %v9313_v47 }
 0x5d6   : > { %3787 = vmatprep.mubr.f32.mxu1 %v10716_v62 }
 0x5d7   : > { %5261 = vmatpush1.bf16.msra.mxu1 %v5260_v13 }
 0x5d8   : > { %5241 = vmatpush1.bf16.msra.mxu0 %v5240_v58  ;;  %5263 = vmatprep.subr.bf16.mxu1 %v5262_v40 }
 0x5d9   : > { %4857 = vmatmul.mubr.msk.f32.gmra.mrb[78].mxu1 %vm1481_vm13, %v9335_v26 }
 0x5da   : > { %3792 = vmatprep.mubr.f32.mxu1 %v10716_v62 }
 0x5db   : > { %4868 = vmatmul.mubr.msk.f32.vlgmr.msra.gmra.mrb[76].mxu0 %vm1481_vm13, %v9223_v4  ;;  %5265 = vmatpush1.bf16.msra.mxu1 %v5264_v63 }
 0x5dc   : > { %3913 = vmatprep.mubr.f32.mxu0 %v10716_v62 }
 0x5dd   : > { %4858 = vmatmul.mubr.msk.f32.gmra.mrb[80].mxu1 %vm1481_vm13, %v9343_v44 }
 0x5de   : > { %3797 = vmatprep.mubr.f32.mxu1 %v10716_v62 }
 0x5df   : > { %4869 = vmatmul.mubr.msk.f32.gmra.mrb[78].mxu0 %vm1481_vm13, %v9239_v25 }
 0x5e0   : > { %3919 = vmatprep.mubr.f32.mxu0 %v10716_v62  ;;  %v9492_v7 = vpop.permute.xlu1 %3577 }
 0x5e1   : > { %4859 = vmatmul.mubr.msk.f32.gmra.mrb[82].mxu1 %vm1481_vm13, %v9354_v53 }
 0x5e2   : > { %3802 = vmatprep.mubr.f32.mxu1 %v10716_v62 }
 0x5e3   : > { %4870 = vmatmul.mubr.msk.f32.gmra.mrb[80].mxu0 %vm1481_vm13, %v9258_v59 }
 0x5e4   : > { %3925 = vmatprep.mubr.f32.mxu0 %v10716_v62  ;;  %v9505_v39 = vpop.permute.xlu1 %3587 }
 0x5e5   : > { %4860 = vmatmul.mubr.msk.f32.gmra.mrb[84].mxu1 %vm1481_vm13, %v9365_v12 }
 0x5e6   : > { %3807 = vmatprep.mubr.f32.mxu1 %v10716_v62 }
 0x5e7   : > { %4871 = vmatmul.mubr.msk.f32.gmra.mrb[82].mxu0 %vm1481_vm13, %v9280_v0 }
 0x5e8   : > { %3931 = vmatprep.mubr.f32.mxu0 %v10716_v62  ;;  %v9517_v18 = vpop.permute.xlu1 %3597 }
 0x5e9   : > { %4861 = vmatmul.mubr.msk.f32.gmra.mrb[86].mxu1 %vm1481_vm13, %v9376_v46 }
 0x5ea   : > { %3812 = vmatprep.mubr.f32.mxu1 %v10716_v62 }
 0x5eb   : > { %4872 = vmatmul.mubr.msk.f32.gmra.mrb[84].mxu0 %vm1481_vm13, %v9313_v47 }
 0x5ec   : > { %3937 = vmatprep.mubr.f32.mxu0 %v10716_v62 }
 0x5ed   : > { %4862 = vmatmul.mubr.msk.f32.gmra.mrb[88].mxu1 %vm1481_vm13, %v3548_v30 }
 0x5ee   : > { %3817 = vmatprep.mubr.f32.mxu1 %v10716_v62 }
 0x5ef   : > { %4873 = vmatmul.mubr.msk.f32.gmra.mrb[86].mxu0 %vm1481_vm13, %v9335_v26 }
 0x5f0   : > { %3943 = vmatprep.mubr.f32.mxu0 %v10716_v62 }
 0x5f1   : > { %4863 = vmatmul.mubr.msk.f32.gmra.mrb[90].mxu1 %vm1481_vm13, %v3549_v11 }
 0x5f2   : > { %3822 = vmatprep.mubr.f32.mxu1 %v10716_v62 }
 0x5f3   : > { %4874 = vmatmul.mubr.msk.f32.gmra.mrb[88].mxu0 %vm1481_vm13, %v9343_v44 }
 0x5f4   : > { %3949 = vmatprep.mubr.f32.mxu0 %v10716_v62 }
 0x5f5   : > { %4864 = vmatmul.mubr.msk.f32.gmra.mrb[92].mxu1 %vm1481_vm13, %v3550_v31 }
 0x5f6   : > { %3827 = vmatprep.mubr.f32.mxu1 %v10716_v62 }
 0x5f7   : > { %4875 = vmatmul.mubr.msk.f32.gmra.mrb[90].mxu0 %vm1481_vm13, %v9354_v53 }
 0x5f8   : > { %3955 = vmatprep.mubr.f32.mxu0 %v10716_v62 }
 0x5f9   : > { %4865 = vmatmul.mubr.msk.f32.gmra.mrb[94].mxu1 %vm1481_vm13, %v3551_v5 }
 0x5fa   : > { %3832 = vmatprep.mubr.f32.mxu1 %v10716_v62 }
 0x5fb   : > { %4876 = vmatmul.mubr.msk.f32.gmra.mrb[92].mxu0 %vm1481_vm13, %v9365_v12 }
 0x5fc   : > { %3961 = vmatprep.mubr.f32.mxu0 %v10716_v62 }
 0x5fd   : > { %4866 = vmatmul.mubr.msk.f32.gmra.mrb[96].mxu1 %vm1481_vm13, %v3552_v9 }
 0x5fe   : > { %3837 = vmatprep.mubr.f32.mxu1 %v10716_v62 }
 0x5ff   : > { %4877 = vmatmul.mubr.msk.f32.gmra.mrb[94].mxu0 %vm1481_vm13, %v9376_v46 }
 0x600   : > { %3967 = vmatprep.mubr.f32.mxu0 %v10716_v62 }
 0x601   : > { %4867 = vmatmul.mubr.msk.f32.gmra.mrb[98].mxu1 %vm1481_vm13, %v3553_v38 }
 0x602   : > { %4068 = vmatprep.mubr.f32.mxu1 %v10716_v62 }
 0x603   : > { %4878 = vmatmul.mubr.msk.f32.gmra.mrb[96].mxu0 %vm1481_vm13, %v3548_v30 }
 0x604   : > { %3973 = vmatprep.mubr.f32.mxu0 %v10716_v62 }
 0x605   : > { %4884 = vmatmul.mubr.msk.f32.vlgmr.msra.gmra.mrb[100].mxu1 %vm1481_vm13, %v9223_v4 }
 0x606   : > { %4073 = vmatprep.mubr.f32.mxu1 %v10716_v62 }
 0x607   : > { %4879 = vmatmul.mubr.msk.f32.gmra.mrb[98].mxu0 %vm1481_vm13, %v3549_v11 }
 0x608   : > { %3979 = vmatprep.mubr.f32.mxu0 %v10716_v62 }
 0x609   : > { %4885 = vmatmul.mubr.msk.f32.gmra.mrb[102].mxu1 %vm1481_vm13, %v9239_v25  ;;  %v9484_v25 = vpop.permute.xlu0 %3572 }
 0x60a   : > { %4078 = vmatprep.mubr.f32.mxu1 %v10716_v62 }
 0x60b   : > { %4880 = vmatmul.mubr.msk.f32.gmra.mrb[100].mxu0 %vm1481_vm13, %v3550_v31 }
 0x60c   : > { %3985 = vmatprep.mubr.f32.mxu0 %v10716_v62 }
 0x60d   : > { %4886 = vmatmul.mubr.msk.f32.gmra.mrb[104].mxu1 %vm1481_vm13, %v9258_v59  ;;  %v9497_v50 = vpop.permute.xlu0 %3582 }
 0x60e   : > { %4083 = vmatprep.mubr.f32.mxu1 %v10716_v62 }
 0x60f   : > { %4881 = vmatmul.mubr.msk.f32.gmra.mrb[102].mxu0 %vm1481_vm13, %v3551_v5 }
 0x610   : > { %3991 = vmatprep.mubr.f32.mxu0 %v10716_v62 }
 0x611   : > { %4887 = vmatmul.mubr.msk.f32.gmra.mrb[106].mxu1 %vm1481_vm13, %v9280_v0  ;;  %v9511_v56 = vpop.permute.xlu0 %3592 }
 0x612   : > { %4088 = vmatprep.mubr.f32.mxu1 %v10716_v62 }
 0x613   : > { %4882 = vmatmul.mubr.msk.f32.gmra.mrb[104].mxu0 %vm1481_vm13, %v3552_v9 }
 0x614   : > { %3997 = vmatprep.mubr.f32.mxu0 %v10716_v62 }
 0x615   : > { %4888 = vmatmul.mubr.msk.f32.gmra.mrb[108].mxu1 %vm1481_vm13, %v9313_v47 }
 0x616   : > { %4093 = vmatprep.mubr.f32.mxu1 %v10716_v62 }
 0x617   : > { %4883 = vmatmul.mubr.msk.f32.gmra.mrb[106].mxu0 %vm1481_vm13, %v3553_v38 }
 0x619   : > { %4889 = vmatmul.mubr.msk.f32.gmra.mrb[110].mxu1 %vm1481_vm13, %v9335_v26 }
 0x61a   : > { %4098 = vmatprep.mubr.f32.mxu1 %v10716_v62 }
 0x61d   : > { %4890 = vmatmul.mubr.msk.f32.gmra.mrb[112].mxu1 %vm1481_vm13, %v9343_v44 }
 0x61e   : > { %4103 = vmatprep.mubr.f32.mxu1 %v10716_v62 }
 0x621   : > { %4891 = vmatmul.mubr.msk.f32.gmra.mrb[114].mxu1 %vm1481_vm13, %v9354_v53  ;;  %v10784_v53 = vld [vmem:[#allocation112_spill] sm:$0xff] }
 0x622   : > { %4108 = vmatprep.mubr.f32.mxu1 %v10716_v62 }
 0x625   : > { %4892 = vmatmul.mubr.msk.f32.gmra.mrb[116].mxu1 %vm1481_vm13, %v9365_v12 }
 0x626   : > { %4113 = vmatprep.mubr.f32.mxu1 %v10716_v62 }
 0x629   : > { %4893 = vmatmul.mubr.msk.f32.gmra.mrb[118].mxu1 %vm1481_vm13, %v9376_v46 }
 0x62a   : > { %4118 = vmatprep.mubr.f32.mxu1 %v10716_v62 }
 0x62d   : > { %4894 = vmatmul.mubr.msk.f32.gmra.mrb[120].mxu1 %vm1481_vm13, %v3548_v30 }
 0x62e   : > { %4123 = vmatprep.mubr.f32.mxu1 %v10716_v62 }
 0x631   : > { %4895 = vmatmul.mubr.msk.f32.gmra.mrb[122].mxu1 %vm1481_vm13, %v3549_v11 }
 0x632   : > { %4128 = vmatprep.mubr.f32.mxu1 %v10716_v62 }
 0x635   : > { %4896 = vmatmul.mubr.msk.f32.gmra.mrb[124].mxu1 %vm1481_vm13, %v3550_v31 }
 0x636   : > { %4133 = vmatprep.mubr.f32.mxu1 %v10716_v62 }
 0x639   : > { %4897 = vmatmul.mubr.msk.f32.gmra.mrb[126].mxu1 %vm1481_vm13, %v3551_v5 }
 0x63a   : > { %4138 = vmatprep.mubr.f32.mxu1 %v10716_v62 }
 0x63d   : > { %4898 = vmatmul.mubr.msk.f32.gmra.mrb[128].mxu1 %vm1481_vm13, %v3552_v9  ;;  %v9525_v9 = vpop.permute.xlu0 %3602 }
 0x63e   : > { %4143 = vmatprep.mubr.f32.mxu1 %v10716_v62 }
 0x641   : > { %4899 = vmatmul.mubr.msk.f32.gmra.mrb[130].mxu1 %vm1481_vm13, %v3553_v38 }
 0x697   : > { %v3764_v4 = vpop.f32.mrb[68].mxu1 }
 0x698   : > { %v3765_v59 = vpop.f32.mrb[69].mxu1 }
 0x699   : > { %v3766_v19 = vadd.f32 %v3765_v59, %v9484_v25 }
 0x69b   : > { %vm4149_vm11 = vcmp.gt.f32.partialorder %v3766_v19, 0.0  ;;  %v4214_v0 = vmul.f32 %v9486_v23, %v3766_v19  ;;  %v3769_v48 = vpop.f32.mrb[70].mxu1 }
 0x69c   : > { %v3770_v62 = vpop.f32.mrb[71].mxu1 }
 0x69d   : > { %v4278_v54 = vsel %vm4149_vm11, %v3766_v19, %v4214_v0  ;;  %v3771_v43 = vadd.f32 %v3770_v62, %v9492_v7  ;;  %v10785_v62 = vld [vmem:[#allocation115_spill] sm:$0xff] }
 0x69e   : > { %v4342_v29 = vadd.f32 %v4278_v54, %v10780_v35 }
 0x69f   : > { %vm4153_vm12 = vcmp.gt.f32.partialorder %v3771_v43, 0.0  ;;  %v4218_v60 = vmul.f32 %v9486_v23, %v3771_v43  ;;  %v3774_v32 = vpop.f32.mrb[72].mxu1 }
 0x6a0   : > { %4406 = vst [vmem:[%s9499_s23] sm:$0xff] %v4342_v29  ;;  %v3775_v41 = vpop.f32.mrb[73].mxu1 }
 0x6a1   : > { %v4282_v21 = vsel %vm4153_vm12, %v3771_v43, %v4218_v60  ;;  %v3776_v2 = vadd.f32 %v3775_v41, %v9497_v50 }
 0x6a2   : > { %v4346_v1 = vadd.f32 %v4282_v21, %v10781_v16 }
 0x6a3   : > { %vm4157_vm13 = vcmp.gt.f32.partialorder %v3776_v2, 0.0  ;;  %v4222_v3 = vmul.f32 %v9486_v23, %v3776_v2  ;;  %v3779_v45 = vpop.f32.mrb[74].mxu1 }
 0x6a4   : > { %4410 = vst [vmem:[%s9499_s23 + $0x20] sm:$0xff] %v4346_v1  ;;  %v3780_v55 = vpop.f32.mrb[75].mxu1 }
 0x6a5   : > { %v4286_v24 = vsel %vm4157_vm13, %v3776_v2, %v4222_v3  ;;  %v3781_v22 = vadd.f32 %v3780_v55, %v9505_v39  ;;  %v9535_v2 = vpop.permute.xlu1 %3607 }
 0x6a6   : > { %v4350_v47 = vadd.f32 %v4286_v24, %v10782_v20 }
 0x6a7   : > { %vm4161_vm1 = vcmp.gt.f32.partialorder %v3781_v22, 0.0  ;;  %v4226_v28 = vmul.f32 %v9486_v23, %v3781_v22 }
 0x6a8   : > { %v3784_v36 = vpop.f32.mrb[76].mxu1  ;;  %4414 = vst [vmem:[%s9499_s23 + $0x40] sm:$0xff] %v4350_v47 }
 0x6a9   : > { %v3785_v52 = vpop.f32.mrb[77].mxu1  ;;  %v4290_v8 = vsel %vm4161_vm1, %v3781_v22, %v4226_v28  ;;  %v10786_v22 = vld [vmem:[#allocation96_spill] sm:$0xff] }
 0x6aa   : > { %v3786_v10 = vadd.f32 %v3785_v52, %v9511_v56  ;;  %v4354_v13 = vadd.f32 %v4290_v8, %v10783_v37 }
 0x6ac   : > { %vm4165_vm2 = vcmp.gt.f32.partialorder %v3786_v10, 0.0  ;;  %v4230_v58 = vmul.f32 %v9486_v23, %v3786_v10  ;;  %v3789_v42 = vpop.f32.mrb[78].mxu1  ;;  %4418 = vst [vmem:[%s9499_s23 + $0x60] sm:$0xff] %v4354_v13 }
 0x6ad   : > { %v3790_v40 = vpop.f32.mrb[79].mxu1  ;;  %v9551_v42 = vpop.permute.xlu0 %3612 }
 0x6ae   : > { %v4294_v26 = vsel %vm4165_vm2, %v3786_v10, %v4230_v58  ;;  %v3791_v63 = vadd.f32 %v3790_v40, %v9517_v18  ;;  %v3909_v44 = vpop.f32.mrb[76].mxu0 }
 0x6af   : > { %v4358_v12 = vadd.f32 %v4294_v26, %v10784_v53  ;;  %v3910_v46 = vadd.f32 %v3909_v44, %v9484_v25  ;;  %v3911_v30 = vpop.f32.mrb[77].mxu0  ;;  %v10787_v44 = vld [vmem:[#allocation103_spill] sm:$0xff] }
 0x6b0   : > { %vm4169_vm3 = vcmp.gt.f32.partialorder %v3791_v63, 0.0  ;;  %v4234_v11 = vmul.f32 %v9486_v23, %v3791_v63  ;;  %v3912_v31 = vadd.f32 %v3911_v30, %v9484_v25  ;;  %v3794_v5 = vpop.f32.mrb[80].mxu1 }
 0x6b1   : > { %4422 = vst [vmem:[%s9499_s23 + $0x80] sm:$0xff] %v4358_v12  ;;  %vm4150_vm4 = vcmp.gt.f32.partialorder %v3910_v46, 0.0  ;;  %v4215_v38 = vmul.f32 %v9486_v23, %v3910_v46  ;;  %v3795_v4 = vpop.f32.mrb[81].mxu1 }
 0x6b2   : > { %v4298_v59 = vsel %vm4169_vm3, %v3791_v63, %v4234_v11  ;;  %vm4151_vm5 = vcmp.gt.f32.partialorder %v3912_v31, 0.0  ;;  %v4216_v19 = vmul.f32 %v9486_v23, %v3912_v31  ;;  %v3796_v0 = vadd.f32 %v3795_v4, %v9525_v9  ;;  %v3915_v48 = vpop.f32.mrb[78].mxu0 }
 0x6b3   : > { %v4362_v54 = vadd.f32 %v4298_v59, %v10785_v62  ;;  %v4279_v43 = vsel %vm4150_vm4, %v3910_v46, %v4215_v38  ;;  %v3916_v35 = vadd.f32 %v3915_v48, %v9492_v7  ;;  %v3917_v29 = vpop.f32.mrb[79].mxu0 }
 0x6b4   : > { %v4343_v60 = vadd.f32 %v4279_v43, %v10631_v14  ;;  %v4280_v32 = vsel %vm4151_vm5, %v3912_v31, %v4216_v19  ;;  %vm4173_vm6 = vcmp.gt.f32.partialorder %v3796_v0, 0.0  ;;  %v4238_v41 = vmul.f32 %v9486_v23, %v3796_v0  ;;  %v3799_v21 = vpop.f32.mrb[82].mxu1 }
 0x6b5   : > { %4426 = vst [vmem:[%s9499_s23 + $0xa0] sm:$0xff] %v4362_v54  ;;  %v4344_v16 = vadd.f32 %v4280_v32, %v8171_v17  ;;  %vm4154_vm7 = vcmp.gt.f32.partialorder %v3916_v35, 0.0  ;;  %v4219_v1 = vmul.f32 %v9486_v23, %v3916_v35  ;;  %v3918_v3 = vadd.f32 %v3917_v29, %v9492_v7  ;;  %v3800_v45 = vpop.f32.mrb[83].mxu1  ;;  %v10788_v32 = vld [vmem:[#allocation48_spill] sm:$0xff] }
 0x6b6   : > { %4407 = vst [vmem:[%s9499_s23 + $0x8] sm:$0xff] %v4343_v60  ;;  %v4302_v14 = vsel %vm4173_vm6, %v3796_v0, %v4238_v41  ;;  %v3801_v55 = vadd.f32 %v3800_v45, %v9535_v2  ;;  %v3921_v24 = vpop.f32.mrb[80].mxu0  ;;  %v9565_v0 = vpop.permute.xlu1 %3617 }
 0x6b7   : > { %4408 = vst [vmem:[%s9499_s23 + $0x10] sm:$0xff] %v4344_v16  ;;  %v4366_v20 = vadd.f32 %v4302_v14, %v10786_v22  ;;  %v4283_v47 = vsel %vm4154_vm7, %v3916_v35, %v4219_v1  ;;  %vm4155_vm8 = vcmp.gt.f32.partialorder %v3918_v3, 0.0  ;;  %v4220_v17 = vmul.f32 %v9486_v23, %v3918_v3  ;;  %v3923_v28 = vpop.f32.mrb[81].mxu0 }
 0x6b8   : > { %v4347_v36 = vadd.f32 %v4283_v47, %v10632_v61  ;;  %vm4177_vm9 = vcmp.gt.f32.partialorder %v3801_v55, 0.0  ;;  %v4242_v52 = vmul.f32 %v9486_v23, %v3801_v55  ;;  %v3922_v8 = vadd.f32 %v3921_v24, %v9497_v50  ;;  %v3804_v10 = vpop.f32.mrb[84].mxu1 }
 0x6b9   : > { %4430 = vst [vmem:[%s9499_s23 + $0xc0] sm:$0xff] %v4366_v20  ;;  %v4284_v37 = vsel %vm4155_vm8, %v3918_v3, %v4220_v17  ;;  %v3924_v13 = vadd.f32 %v3923_v28, %v9497_v50  ;;  %v3805_v58 = vpop.f32.mrb[85].mxu1 }
 0x6ba   : > { %4411 = vst [vmem:[%s9499_s23 + $0x28] sm:$0xff] %v4347_v36  ;;  %v4348_v40 = vadd.f32 %v4284_v37, %v8164_v15  ;;  %v4306_v26 = vsel %vm4177_vm9, %v3801_v55, %v4242_v52  ;;  %vm4158_vm10 = vcmp.gt.f32.partialorder %v3922_v8, 0.0  ;;  %v4223_v61 = vmul.f32 %v9486_v23, %v3922_v8  ;;  %v3927_v63 = vpop.f32.mrb[82].mxu0  ;;  %v9578_v55 = vpop.permute.xlu0 %3622  ;;  %v10789_v52 = vld [vmem:[#allocation51_spill] sm:$0xff] }
 0x6bb   : > { %v4370_v53 = vadd.f32 %v4306_v26, %v10787_v44  ;;  %vm4159_vm14 = vcmp.gt.f32.partialorder %v3924_v13, 0.0  ;;  %v4224_v12 = vmul.f32 %v9486_v23, %v3924_v13  ;;  %v3806_v46 = vadd.f32 %v3805_v58, %v9551_v42  ;;  %v3929_v30 = vpop.f32.mrb[83].mxu0 }
 0x6bc   : > { %4412 = vst [vmem:[%s9499_s23 + $0x30] sm:$0xff] %v4348_v40  ;;  %v4287_v11 = vsel %vm4158_vm10, %v3922_v8, %v4223_v61  ;;  %v3928_v31 = vadd.f32 %v3927_v63, %v9505_v39  ;;  %v3930_v15 = vadd.f32 %v3929_v30, %v9505_v39  ;;  %v3809_v5 = vpop.f32.mrb[86].mxu1  ;;  %v9592_v61 = vpop.permute.xlu1 %3627 }
 0x6bd   : > { %4434 = vst [vmem:[%s9499_s23 + $0xe0] sm:$0xff] %v4370_v53  ;;  %v4351_v38 = vadd.f32 %v4287_v11, %v10633_v33  ;;  %v4288_v4 = vsel %vm4159_vm14, %v3924_v13, %v4224_v12  ;;  %vm4181_vm15 = vcmp.gt.f32.partialorder %v3806_v46, 0.0  ;;  %v4246_v59 = vmul.f32 %v9486_v23, %v3806_v46  ;;  %v3810_v19 = vpop.f32.mrb[87].mxu1 }
 0x6be   : > { %v4352_v48 = vadd.f32 %v4288_v4, %v8167_v6  ;;  %vm4162_vm0 = vcmp.gt.f32.partialorder %v3928_v31, 0.0  ;;  %v4227_v62 = vmul.f32 %v9486_v23, %v3928_v31  ;;  %vm4163_vm11 = vcmp.gt.f32.partialorder %v3930_v15, 0.0  ;;  %v3933_v54 = vpop.f32.mrb[84].mxu0 }
 0x6bf   : > { %4415 = vst [vmem:[%s9499_s23 + $0x48] sm:$0xff] %v4351_v38  ;;  %v4310_v43 = vsel %vm4181_vm15, %v3806_v46, %v4246_v59  ;;  %v4228_v33 = vmul.f32 %v9486_v23, %v3930_v15  ;;  %v3811_v35 = vadd.f32 %v3810_v19, %v9565_v0  ;;  %v3934_v29 = vadd.f32 %v3933_v54, %v9511_v56  ;;  %v3935_v60 = vpop.f32.mrb[85].mxu0  ;;  %v10791_v54 = vld [vmem:[#allocation86_spill] sm:$0xff] }
 0x6c0   : > { %4416 = vst [vmem:[%s9499_s23 + $0x50] sm:$0xff] %v4352_v48  ;;  %v4374_v41 = vadd.f32 %v4310_v43, %v10788_v32  ;;  %v4291_v6 = vsel %vm4162_vm0, %v3928_v31, %v4227_v62  ;;  %v3936_v21 = vadd.f32 %v3935_v60, %v9511_v56  ;;  %v3814_v16 = vpop.f32.mrb[88].mxu1  ;;  %v10790_v31 = vld [vmem:[#allocation52_spill] sm:$0xff]  ;;  %v9606_v62 = vpop.permute.xlu0 %3632 }
 0x6c1   : > { %v4355_v1 = vadd.f32 %v4291_v6, %v10634_v57  ;;  %v4292_v3 = vsel %vm4163_vm11, %v3930_v15, %v4228_v33  ;;  %vm4185_vm12 = vcmp.gt.f32.partialorder %v3811_v35, 0.0  ;;  %v4250_v45 = vmul.f32 %v9486_v23, %v3811_v35  ;;  %v3815_v14 = vpop.f32.mrb[89].mxu1  ;;  %v10792_v6 = vld [vmem:[#allocation57_spill] sm:$0xff] }
 0x6c2   : > { %4438 = vst [vmem:[%s9499_s23 + $0x100] sm:$0xff] %v4374_v41  ;;  %v4356_v24 = vadd.f32 %v4292_v3, %v8158_v51  ;;  %vm4166_vm13 = vcmp.gt.f32.partialorder %v3934_v29, 0.0  ;;  %v4231_v22 = vmul.f32 %v9486_v23, %v3934_v29  ;;  %vm4167_vm1 = vcmp.gt.f32.partialorder %v3936_v21, 0.0  ;;  %v3939_v20 = vpop.f32.mrb[86].mxu0 }
 0x6c3   : > { %4419 = vst [vmem:[%s9499_s23 + $0x68] sm:$0xff] %v4355_v1  ;;  %v4314_v47 = vsel %vm4185_vm12, %v3811_v35, %v4250_v45  ;;  %v4232_v57 = vmul.f32 %v9486_v23, %v3936_v21  ;;  %v3816_v17 = vadd.f32 %v3815_v14, %v9578_v55  ;;  %v3940_v28 = vadd.f32 %v3939_v20, %v9517_v18  ;;  %v3941_v36 = vpop.f32.mrb[87].mxu0  ;;  %v10793_v45 = vld [vmem:[#allocation83_spill] sm:$0xff] }
 0x6c4   : > { %4420 = vst [vmem:[%s9499_s23 + $0x70] sm:$0xff] %v4356_v24  ;;  %v4378_v8 = vadd.f32 %v4314_v47, %v10789_v52  ;;  %v4295_v51 = vsel %vm4166_vm13, %v3934_v29, %v4231_v22  ;;  %v3942_v10 = vadd.f32 %v3941_v36, %v9517_v18  ;;  %v3819_v37 = vpop.f32.mrb[90].mxu1  ;;  %v9620_v47 = vpop.permute.xlu1 %3637 }
 0x6c5   : > { %v4359_v13 = vadd.f32 %v4295_v51, %v10636_v27  ;;  %v4296_v58 = vsel %vm4167_vm1, %v3936_v21, %v4232_v57  ;;  %vm4189_vm2 = vcmp.gt.f32.partialorder %v3816_v17, 0.0  ;;  %v4254_v40 = vmul.f32 %v9486_v23, %v3816_v17  ;;  %v3820_v26 = vpop.f32.mrb[91].mxu1  ;;  %v10794_v57 = vld [vmem:[#allocation59_spill] sm:$0xff] }
 0x6c6   : > { %4442 = vst [vmem:[%s9499_s23 + $0x120] sm:$0xff] %v4378_v8  ;;  %v4360_v63 = vadd.f32 %v4296_v58, %v8192_v49  ;;  %vm4170_vm3 = vcmp.gt.f32.partialorder %v3940_v28, 0.0  ;;  %v4235_v44 = vmul.f32 %v9486_v23, %v3940_v28  ;;  %vm4171_vm4 = vcmp.gt.f32.partialorder %v3942_v10, 0.0  ;;  %v3945_v53 = vpop.f32.mrb[88].mxu0 }
 0x6c7   : > { %4423 = vst [vmem:[%s9499_s23 + $0x88] sm:$0xff] %v4359_v13  ;;  %v4318_v12 = vsel %vm4189_vm2, %v3816_v17, %v4254_v40  ;;  %v4236_v27 = vmul.f32 %v9486_v23, %v3942_v10  ;;  %v3821_v46 = vadd.f32 %v3820_v26, %v9592_v61  ;;  %v3946_v30 = vadd.f32 %v3945_v53, %v9525_v9  ;;  %v3947_v11 = vpop.f32.mrb[89].mxu0  ;;  %v10795_v13 = vld [vmem:[#allocation113_spill] sm:$0xff] }
 0x6c8   : > { %4424 = vst [vmem:[%s9499_s23 + $0x90] sm:$0xff] %v4360_v63  ;;  %v4382_v15 = vadd.f32 %v4318_v12, %v10790_v31  ;;  %v4299_v49 = vsel %vm4170_vm3, %v3940_v28, %v4235_v44  ;;  %v3948_v5 = vadd.f32 %v3947_v11, %v9525_v9  ;;  %v3824_v38 = vpop.f32.mrb[92].mxu1  ;;  %v10796_v44 = vld [vmem:[#allocation138_spill] sm:$0xff]  ;;  %v10797_v11 = vld [vmem:[#allocation79_spill] sm:$0xff] }
 0x6c9   : > { %v4363_v4 = vadd.f32 %v4299_v49, %v10637_v34  ;;  %v4300_v59 = vsel %vm4171_vm4, %v3942_v10, %v4236_v27  ;;  %vm4193_vm5 = vcmp.gt.f32.partialorder %v3821_v46, 0.0  ;;  %v4258_v19 = vmul.f32 %v9486_v23, %v3821_v46  ;;  %v3825_v48 = vpop.f32.mrb[93].mxu1 }
 0x6ca   : > { %4446 = vst [vmem:[%s9499_s23 + $0x140] sm:$0xff] %v4382_v15  ;;  %v4364_v43 = vadd.f32 %v4300_v59, %v10791_v54  ;;  %vm4174_vm6 = vcmp.gt.f32.partialorder %v3946_v30, 0.0  ;;  %v4239_v33 = vmul.f32 %v9486_v23, %v3946_v30  ;;  %vm4175_vm7 = vcmp.gt.f32.partialorder %v3948_v5, 0.0  ;;  %v3951_v35 = vpop.f32.mrb[90].mxu0 }
 0x6cb   : > { %4427 = vst [vmem:[%s9499_s23 + $0xa8] sm:$0xff] %v4363_v4  ;;  %v4322_v29 = vsel %vm4193_vm5, %v3821_v46, %v4258_v19  ;;  %v4240_v34 = vmul.f32 %v9486_v23, %v3948_v5  ;;  %v3826_v60 = vadd.f32 %v3825_v48, %v9606_v62  ;;  %v3952_v32 = vadd.f32 %v3951_v35, %v9535_v2  ;;  %v3953_v41 = vpop.f32.mrb[91].mxu0  ;;  %v10798_v48 = vld [vmem:[#allocation61_spill] sm:$0xff] }
 0x6cc   : > { %4428 = vst [vmem:[%s9499_s23 + $0xb0] sm:$0xff] %v4364_v43  ;;  %v4386_v21 = vadd.f32 %v4322_v29, %v10792_v6  ;;  %v4303_v16 = vsel %vm4174_vm6, %v3946_v30, %v4239_v33  ;;  %v3954_v1 = vadd.f32 %v3953_v41, %v9535_v2  ;;  %v3829_v3 = vpop.f32.mrb[94].mxu1  ;;  %v9634_v30 = vpop.permute.xlu0 %3642  ;;  %v10799_v29 = vld [vmem:[#allocation119_spill] sm:$0xff] }
 0x6cd   : > { %v4367_v14 = vadd.f32 %v4303_v16, %v10793_v45  ;;  %v4304_v24 = vsel %vm4175_vm7, %v3948_v5, %v4240_v34  ;;  %vm4197_vm8 = vcmp.gt.f32.partialorder %v3826_v60, 0.0  ;;  %v4262_v22 = vmul.f32 %v9486_v23, %v3826_v60  ;;  %v3830_v20 = vpop.f32.mrb[95].mxu1  ;;  %v9648_v6 = vpop.permute.xlu1 %3647 }
 0x6ce   : > { %4450 = vst [vmem:[%s9499_s23 + $0x160] sm:$0xff] %v4386_v21  ;;  %v4368_v17 = vadd.f32 %v4304_v24, %v10794_v57  ;;  %vm4178_vm9 = vcmp.gt.f32.partialorder %v3952_v32, 0.0  ;;  %v4243_v28 = vmul.f32 %v9486_v23, %v3952_v32  ;;  %vm4179_vm10 = vcmp.gt.f32.partialorder %v3954_v1, 0.0  ;;  %v3957_v36 = vpop.f32.mrb[92].mxu0  ;;  %v10800_v21 = vld [vmem:[#allocation100_spill] sm:$0xff]  ;;  %v10801_v57 = vld [vmem:[#allocation121_spill] sm:$0xff] }
 0x6cf   : > { %4431 = vst [vmem:[%s9499_s23 + $0xc8] sm:$0xff] %v4367_v14  ;;  %v4326_v52 = vsel %vm4197_vm8, %v3826_v60, %v4262_v22  ;;  %v4244_v8 = vmul.f32 %v9486_v23, %v3954_v1  ;;  %v3831_v51 = vadd.f32 %v3830_v20, %v9620_v47  ;;  %v3958_v10 = vadd.f32 %v3957_v36, %v9551_v42  ;;  %v3959_v37 = vpop.f32.mrb[93].mxu0 }
 0x6d0   : > { %4432 = vst [vmem:[%s9499_s23 + $0xd0] sm:$0xff] %v4368_v17  ;;  %v4390_v58 = vadd.f32 %v4326_v52, %v10795_v13  ;;  %v4307_v40 = vsel %vm4178_vm9, %v3952_v32, %v4243_v28  ;;  %v3960_v26 = vadd.f32 %v3959_v37, %v9551_v42  ;;  %v3834_v63 = vpop.f32.mrb[96].mxu1 }
 0x6d1   : > { %v4371_v53 = vadd.f32 %v4307_v40, %v10796_v44  ;;  %v4308_v12 = vsel %vm4179_vm10, %v3954_v1, %v4244_v8  ;;  %vm4201_vm14 = vcmp.gt.f32.partialorder %v3831_v51, 0.0  ;;  %v4266_v27 = vmul.f32 %v9486_v23, %v3831_v51  ;;  %v3835_v46 = vpop.f32.mrb[97].mxu1  ;;  %v10802_v8 = vld [vmem:[#allocation129_spill] sm:$0xff] }
 0x6d2   : > { %4454 = vst [vmem:[%s9499_s23 + $0x180] sm:$0xff] %v4390_v58  ;;  %v4372_v31 = vadd.f32 %v4308_v12, %v10797_v11  ;;  %vm4182_vm15 = vcmp.gt.f32.partialorder %v3958_v10, 0.0  ;;  %v4247_v15 = vmul.f32 %v9486_v23, %v3958_v10  ;;  %vm4183_vm0 = vcmp.gt.f32.partialorder %v3960_v26, 0.0  ;;  %v3963_v49 = vpop.f32.mrb[94].mxu0  ;;  %v10803_v58 = vld [vmem:[#allocation106_spill] sm:$0xff] }
 0x6d3   : > { %4435 = vst [vmem:[%s9499_s23 + $0xe8] sm:$0xff] %v4371_v53  ;;  %v4330_v5 = vsel %vm4201_vm14, %v3831_v51, %v4266_v27  ;;  %v4248_v38 = vmul.f32 %v9486_v23, %v3960_v26  ;;  %v3836_v4 = vadd.f32 %v3835_v46, %v9634_v30  ;;  %v3964_v59 = vadd.f32 %v3963_v49, %v9565_v0  ;;  %v3965_v19 = vpop.f32.mrb[95].mxu0  ;;  %v10804_v11 = vld [vmem:[#allocation126_spill] sm:$0xff] }
 0x6d4   : > { %4436 = vst [vmem:[%s9499_s23 + $0xf0] sm:$0xff] %v4372_v31  ;;  %v4394_v54 = vadd.f32 %v4330_v5, %v10798_v48  ;;  %v4311_v43 = vsel %vm4182_vm15, %v3958_v10, %v4247_v15  ;;  %v3966_v33 = vadd.f32 %v3965_v19, %v9565_v0  ;;  %v3839_v35 = vpop.f32.mrb[98].mxu1 }
 0x6d5   : > { %v4375_v34 = vadd.f32 %v4311_v43, %v10799_v29  ;;  %v4312_v60 = vsel %vm4183_vm0, %v3960_v26, %v4248_v38  ;;  %vm4205_vm11 = vcmp.gt.f32.partialorder %v3836_v4, 0.0  ;;  %v4270_v32 = vmul.f32 %v9486_v23, %v3836_v4  ;;  %v3840_v41 = vpop.f32.mrb[99].mxu1  ;;  %v10805_v38 = vld [vmem:[#allocation116_spill] sm:$0xff] }
 0x6d6   : > { %4458 = vst [vmem:[%s9499_s23 + $0x1a0] sm:$0xff] %v4394_v54  ;;  %v4376_v16 = vadd.f32 %v4312_v60, %v10800_v21  ;;  %vm4186_vm12 = vcmp.gt.f32.partialorder %v3964_v59, 0.0  ;;  %v4251_v1 = vmul.f32 %v9486_v23, %v3964_v59  ;;  %vm4187_vm13 = vcmp.gt.f32.partialorder %v3966_v33, 0.0  ;;  %v3969_v3 = vpop.f32.mrb[96].mxu0 }
 0x6d7   : > { %4439 = vst [vmem:[%s9499_s23 + $0x108] sm:$0xff] %v4375_v34  ;;  %v4334_v45 = vsel %vm4205_vm11, %v3836_v4, %v4270_v32  ;;  %v4252_v14 = vmul.f32 %v9486_v23, %v3966_v33  ;;  %v3841_v24 = vadd.f32 %v3840_v41, %v9648_v6  ;;  %v3970_v22 = vadd.f32 %v3969_v3, %v9578_v55  ;;  %v3971_v20 = vpop.f32.mrb[97].mxu0  ;;  %v10807_v41 = vld [vmem:[#allocation74_spill] sm:$0xff] }
 0x6d8   : > { %4440 = vst [vmem:[%s9499_s23 + $0x110] sm:$0xff] %v4376_v16  ;;  %v4398_v17 = vadd.f32 %v4334_v45, %v10801_v57  ;;  %v4315_v28 = vsel %vm4186_vm12, %v3964_v59, %v4251_v1  ;;  %v3972_v36 = vadd.f32 %v3971_v20, %v9578_v55  ;;  %v4070_v52 = vpop.f32.mrb[100].mxu1  ;;  %v10808_v45 = vld [vmem:[#allocation124_spill] sm:$0xff] }
 0x6d9   : > { %v4379_v51 = vadd.f32 %v4315_v28, %v10802_v8  ;;  %v4316_v10 = vsel %vm4187_vm13, %v3966_v33, %v4252_v14  ;;  %vm4209_vm1 = vcmp.gt.f32.partialorder %v3841_v24, 0.0  ;;  %v4274_v37 = vmul.f32 %v9486_v23, %v3841_v24  ;;  %v4072_v13 = vpop.f32.mrb[101].mxu1 }
 0x6da   : > { %4462 = vst [vmem:[%s9499_s23 + $0x1c0] sm:$0xff] %v4398_v17  ;;  %v4380_v40 = vadd.f32 %v4316_v10, %v10803_v58  ;;  %vm4190_vm2 = vcmp.gt.f32.partialorder %v3970_v22, 0.0  ;;  %v4255_v26 = vmul.f32 %v9486_v23, %v3970_v22  ;;  %vm4191_vm3 = vcmp.gt.f32.partialorder %v3972_v36, 0.0  ;;  %v3975_v63 = vpop.f32.mrb[98].mxu0 }
 0x6db   : > { %4443 = vst [vmem:[%s9499_s23 + $0x128] sm:$0xff] %v4379_v51  ;;  %v4338_v44 = vsel %vm4209_vm1, %v3841_v24, %v4274_v37  ;;  %v4256_v53 = vmul.f32 %v9486_v23, %v3972_v36  ;;  %v4071_v12 = vadd.f32 %v4070_v52, %v9484_v25  ;;  %v3976_v27 = vadd.f32 %v3975_v63, %v9592_v61  ;;  %v3977_v46 = vpop.f32.mrb[99].mxu0  ;;  %v10806_v25 = vld [vmem:[#allocation104_spill] sm:$0xff]  ;;  %v10810_v37 = vld [vmem:[#allocation135_spill] sm:$0xff] }
 0x6dc   : > { %4444 = vst [vmem:[%s9499_s23 + $0x130] sm:$0xff] %v4380_v40  ;;  %v4402_v31 = vadd.f32 %v4338_v44, %v10804_v11  ;;  %v4319_v15 = vsel %vm4190_vm2, %v3970_v22, %v4255_v26  ;;  %v3978_v49 = vadd.f32 %v3977_v46, %v9592_v61  ;;  %v4075_v5 = vpop.f32.mrb[102].mxu1  ;;  %v10811_v63 = vld [vmem:[#allocation68_spill] sm:$0xff] }
 0x6dd   : > { %v4383_v4 = vadd.f32 %v4319_v15, %v10805_v38  ;;  %v4320_v59 = vsel %vm4191_vm3, %v3972_v36, %v4256_v53  ;;  %vm4152_vm4 = vcmp.gt.f32.partialorder %v4071_v12, 0.0  ;;  %v4217_v19 = vmul.f32 %v9486_v23, %v4071_v12  ;;  %v4077_v48 = vpop.f32.mrb[103].mxu1 }
 0x6de   : > { %4466 = vst [vmem:[%s9499_s23 + $0x1e0] sm:$0xff] %v4402_v31  ;;  %v4384_v54 = vadd.f32 %v4320_v59, %v10806_v25  ;;  %vm4194_vm5 = vcmp.gt.f32.partialorder %v3976_v27, 0.0  ;;  %v4259_v43 = vmul.f32 %v9486_v23, %v3976_v27  ;;  %vm4195_vm6 = vcmp.gt.f32.partialorder %v3978_v49, 0.0  ;;  %v3981_v33 = vpop.f32.mrb[100].mxu0  ;;  %v10813_v59 = vld [vmem:[#allocation81_spill] sm:$0xff] }
 0x6df   : > { %4447 = vst [vmem:[%s9499_s23 + $0x148] sm:$0xff] %v4383_v4  ;;  %v4281_v35 = vsel %vm4152_vm4, %v4071_v12, %v4217_v19  ;;  %v4260_v29 = vmul.f32 %v9486_v23, %v3978_v49  ;;  %v4076_v34 = vadd.f32 %v4075_v5, %v9492_v7  ;;  %v3982_v60 = vadd.f32 %v3981_v33, %v9606_v62  ;;  %v3983_v32 = vpop.f32.mrb[101].mxu0  ;;  %v10809_v7 = vld [vmem:[#allocation109_spill] sm:$0xff] }
 0x6e0   : > { %4448 = vst [vmem:[%s9499_s23 + $0x150] sm:$0xff] %v4384_v54  ;;  %v4345_v21 = vadd.f32 %v4281_v35, %v10807_v41  ;;  %v4323_v16 = vsel %vm4194_vm5, %v3976_v27, %v4259_v43  ;;  %v3984_v1 = vadd.f32 %v3983_v32, %v9606_v62  ;;  %v4080_v3 = vpop.f32.mrb[104].mxu1  ;;  %v10814_v43 = vld [vmem:[#allocation127_spill] sm:$0xff] }
 0x6e1   : > { %v4387_v14 = vadd.f32 %v4323_v16, %v10808_v45  ;;  %v4324_v24 = vsel %vm4195_vm6, %v3978_v49, %v4260_v29  ;;  %vm4156_vm7 = vcmp.gt.f32.partialorder %v4076_v34, 0.0  ;;  %v4221_v22 = vmul.f32 %v9486_v23, %v4076_v34  ;;  %v4082_v20 = vpop.f32.mrb[105].mxu1 }
 0x6e2   : > { %4409 = vst [vmem:[%s9499_s23 + $0x18] sm:$0xff] %v4345_v21  ;;  %v4388_v57 = vadd.f32 %v4324_v24, %v10809_v7  ;;  %vm4198_vm8 = vcmp.gt.f32.partialorder %v3982_v60, 0.0  ;;  %v4263_v17 = vmul.f32 %v9486_v23, %v3982_v60  ;;  %vm4199_vm9 = vcmp.gt.f32.partialorder %v3984_v1, 0.0  ;;  %v3987_v28 = vpop.f32.mrb[102].mxu0 }
 0x6e3   : > { %4451 = vst [vmem:[%s9499_s23 + $0x168] sm:$0xff] %v4387_v14  ;;  %v4285_v36 = vsel %vm4156_vm7, %v4076_v34, %v4221_v22  ;;  %v4264_v52 = vmul.f32 %v9486_v23, %v3984_v1  ;;  %v4081_v8 = vadd.f32 %v4080_v3, %v9497_v50  ;;  %v3988_v51 = vadd.f32 %v3987_v28, %v9620_v47  ;;  %v3989_v10 = vpop.f32.mrb[103].mxu0  ;;  %v10812_v50 = vld [vmem:[#allocation117_spill] sm:$0xff]  ;;  %v10816_v14 = vld [vmem:[#allocation75_spill] sm:$0xff] }
 0x6e4   : > { %4452 = vst [vmem:[%s9499_s23 + $0x170] sm:$0xff] %v4388_v57  ;;  %v4349_v13 = vadd.f32 %v4285_v36, %v10810_v37  ;;  %v4327_v58 = vsel %vm4198_vm8, %v3982_v60, %v4263_v17  ;;  %v3990_v40 = vadd.f32 %v3989_v10, %v9620_v47  ;;  %v4085_v26 = vpop.f32.mrb[106].mxu1  ;;  %v10817_v57 = vld [vmem:[#allocation65_spill] sm:$0xff] }
 0x6e5   : > { %v4391_v44 = vadd.f32 %v4327_v58, %v10811_v63  ;;  %v4328_v53 = vsel %vm4199_vm9, %v3984_v1, %v4264_v52  ;;  %vm4160_vm10 = vcmp.gt.f32.partialorder %v4081_v8, 0.0  ;;  %v4225_v12 = vmul.f32 %v9486_v23, %v4081_v8  ;;  %v4087_v27 = vpop.f32.mrb[107].mxu1  ;;  %v10819_v58 = vld [vmem:[#allocation76_spill] sm:$0xff] }
 0x6e6   : > { %4413 = vst [vmem:[%s9499_s23 + $0x38] sm:$0xff] %v4349_v13  ;;  %v4392_v46 = vadd.f32 %v4328_v53, %v10812_v50  ;;  %vm4202_vm14 = vcmp.gt.f32.partialorder %v3988_v51, 0.0  ;;  %v4267_v11 = vmul.f32 %v9486_v23, %v3988_v51  ;;  %vm4203_vm15 = vcmp.gt.f32.partialorder %v3990_v40, 0.0  ;;  %v3993_v31 = vpop.f32.mrb[104].mxu0 }
 0x6e7   : > { %4455 = vst [vmem:[%s9499_s23 + $0x188] sm:$0xff] %v4391_v44  ;;  %v4289_v15 = vsel %vm4160_vm10, %v4081_v8, %v4225_v12  ;;  %v4268_v49 = vmul.f32 %v9486_v23, %v3990_v40  ;;  %v4086_v5 = vadd.f32 %v4085_v26, %v9505_v39  ;;  %v3994_v38 = vadd.f32 %v3993_v31, %v9634_v30  ;;  %v3995_v4 = vpop.f32.mrb[105].mxu0  ;;  %v10815_v39 = vld [vmem:[#allocation118_spill] sm:$0xff]  ;;  %v10820_v44 = vld [vmem:[#allocation108_spill] sm:$0xff] }
 0x6e8   : > { %4456 = vst [vmem:[%s9499_s23 + $0x190] sm:$0xff] %v4392_v46  ;;  %v4353_v19 = vadd.f32 %v4289_v15, %v10813_v59  ;;  %v4331_v48 = vsel %vm4202_vm14, %v3988_v51, %v4267_v11  ;;  %v3996_v25 = vadd.f32 %v3995_v4, %v9634_v30  ;;  %v4090_v54 = vpop.f32.mrb[108].mxu1  ;;  %v10821_v46 = vld [vmem:[#allocation131_spill] sm:$0xff] }
 0x6e9   : > { %v4395_v33 = vadd.f32 %v4331_v48, %v10814_v43  ;;  %v4332_v35 = vsel %vm4203_vm15, %v3990_v40, %v4268_v49  ;;  %vm4164_vm0 = vcmp.gt.f32.partialorder %v4086_v5, 0.0  ;;  %v4229_v29 = vmul.f32 %v9486_v23, %v4086_v5  ;;  %v4092_v34 = vpop.f32.mrb[109].mxu1  ;;  %v10822_v15 = vld [vmem:[#allocation71_spill] sm:$0xff]  ;;  %v10823_v48 = vld [vmem:[#allocation90_spill] sm:$0xff] }
 0x6ea   : > { %4417 = vst [vmem:[%s9499_s23 + $0x58] sm:$0xff] %v4353_v19  ;;  %v4396_v60 = vadd.f32 %v4332_v35, %v10815_v39  ;;  %vm4206_vm11 = vcmp.gt.f32.partialorder %v3994_v38, 0.0  ;;  %v4271_v32 = vmul.f32 %v9486_v23, %v3994_v38  ;;  %vm4207_vm12 = vcmp.gt.f32.partialorder %v3996_v25, 0.0  ;;  %v3999_v41 = vpop.f32.mrb[106].mxu0 }
 0x6eb   : > { %4459 = vst [vmem:[%s9499_s23 + $0x1a8] sm:$0xff] %v4395_v33  ;;  %v4293_v21 = vsel %vm4164_vm0, %v4086_v5, %v4229_v29  ;;  %v4272_v16 = vmul.f32 %v9486_v23, %v3996_v25  ;;  %v4091_v1 = vadd.f32 %v4090_v54, %v9511_v56  ;;  %v4000_v3 = vadd.f32 %v3999_v41, %v9648_v6  ;;  %v4001_v45 = vpop.f32.mrb[107].mxu0  ;;  %v10818_v56 = vld [vmem:[#allocation122_spill] sm:$0xff]  ;;  %v10824_v29 = vld [vmem:[#allocation84_spill] sm:$0xff] }
 0x6ec   : > { %4460 = vst [vmem:[%s9499_s23 + $0x1b0] sm:$0xff] %v4396_v60  ;;  %v4357_v24 = vadd.f32 %v4293_v21, %v10816_v14  ;;  %v4335_v22 = vsel %vm4206_vm11, %v3994_v38, %v4271_v32  ;;  %v4002_v20 = vadd.f32 %v4001_v45, %v9648_v6  ;;  %v4095_v7 = vpop.f32.mrb[110].mxu1  ;;  %v10825_v21 = vld [vmem:[#allocation99_spill] sm:$0xff] }
 0x6ed   : > { %v4399_v17 = vadd.f32 %v4335_v22, %v10817_v57  ;;  %v4336_v28 = vsel %vm4207_vm12, %v3996_v25, %v4272_v16  ;;  %vm4168_vm13 = vcmp.gt.f32.partialorder %v4091_v1, 0.0  ;;  %v4233_v36 = vmul.f32 %v9486_v23, %v4091_v1  ;;  %v4097_v52 = vpop.f32.mrb[111].mxu1 }
 0x6ee   : > { %4421 = vst [vmem:[%s9499_s23 + $0x78] sm:$0xff] %v4357_v24  ;;  %v4400_v8 = vadd.f32 %v4336_v28, %v10818_v56  ;;  %vm4210_vm1 = vcmp.gt.f32.partialorder %v4000_v3, 0.0  ;;  %v4275_v51 = vmul.f32 %v9486_v23, %v4000_v3  ;;  %vm4211_vm2 = vcmp.gt.f32.partialorder %v4002_v20, 0.0  ;;  %v10826_v24 = vld [vmem:[#allocation105_spill] sm:$0xff]  ;;  %v10827_v28 = vld [vmem:[#allocation50_spill] sm:$0xff] }
 0x6ef   : > { %4463 = vst [vmem:[%s9499_s23 + $0x1c8] sm:$0xff] %v4399_v17  ;;  %v4297_v10 = vsel %vm4168_vm13, %v4091_v1, %v4233_v36  ;;  %v4276_v37 = vmul.f32 %v9486_v23, %v4002_v20  ;;  %v4096_v13 = vadd.f32 %v4095_v7, %v9517_v18 }
 0x6f0   : > { %4464 = vst [vmem:[%s9499_s23 + $0x1d0] sm:$0xff] %v4400_v8  ;;  %v4361_v40 = vadd.f32 %v4297_v10, %v10819_v58  ;;  %v4339_v26 = vsel %vm4210_vm1, %v4000_v3, %v4275_v51  ;;  %v4100_v63 = vpop.f32.mrb[112].mxu1  ;;  %v10828_v10 = vld [vmem:[#allocation111_spill] sm:$0xff] }
 0x6f1   : > { %v4403_v53 = vadd.f32 %v4339_v26, %v10820_v44  ;;  %v4340_v12 = vsel %vm4211_vm2, %v4002_v20, %v4276_v37  ;;  %vm4172_vm3 = vcmp.gt.f32.partialorder %v4096_v13, 0.0  ;;  %v4237_v27 = vmul.f32 %v9486_v23, %v4096_v13  ;;  %v4102_v50 = vpop.f32.mrb[113].mxu1 }
 0x6f2   : > { %4425 = vst [vmem:[%s9499_s23 + $0x98] sm:$0xff] %v4361_v40  ;;  %v4404_v11 = vadd.f32 %v4340_v12, %v10821_v46  ;;  %v4101_v31 = vadd.f32 %v4100_v63, %v9525_v9  ;;  %v10829_v63 = vld [vmem:[#allocation128_spill] sm:$0xff] }
 0x6f3   : > { %4467 = vst [vmem:[%s9499_s23 + $0x1e8] sm:$0xff] %v4403_v53  ;;  %v4301_v18 = vsel %vm4172_vm3, %v4096_v13, %v4237_v27  ;;  %v10830_v46 = vld [vmem:[#allocation120_spill] sm:$0xff] }
 0x6f4   : > { %4468 = vst [vmem:[%s9499_s23 + $0x1f0] sm:$0xff] %v4404_v11  ;;  %v4365_v49 = vadd.f32 %v4301_v18, %v10822_v15  ;;  %vm4176_vm4 = vcmp.gt.f32.partialorder %v4101_v31, 0.0  ;;  %v4241_v5 = vmul.f32 %v9486_v23, %v4101_v31  ;;  %v4105_v38 = vpop.f32.mrb[114].mxu1 }
 0x6f5   : > { %v4106_v4 = vadd.f32 %v4105_v38, %v9535_v2  ;;  %v4107_v59 = vpop.f32.mrb[115].mxu1 }
 0x6f6   : > { %4429 = vst [vmem:[%s9499_s23 + $0xb8] sm:$0xff] %v4365_v49  ;;  %v4305_v19 = vsel %vm4176_vm4, %v4101_v31, %v4241_v5  ;;  %v10831_v5 = vld [vmem:[#allocation125_spill] sm:$0xff]  ;;  %v10832_v59 = vld [vmem:[#allocation56_spill] sm:$0xff] }
 0x6f7   : > { %v4369_v25 = vadd.f32 %v4305_v19, %v10823_v48  ;;  %vm4180_vm5 = vcmp.gt.f32.partialorder %v4106_v4, 0.0  ;;  %v4245_v9 = vmul.f32 %v9486_v23, %v4106_v4  ;;  %v4498_v48 = vld [vmem:[%s9499_s23 + $0x10] sm:$0xff] (%p10834_p2) }
 0x6f8   : > { %v4110_v54 = vpop.f32.mrb[116].mxu1  ;;  %4499 = vst [vmem:[%s9794_s17 + $0x10] sm:$0xff] (%p10834_p2), %v4498_v48 }
 0x6f9   : > { %4433 = vst [vmem:[%s9499_s23 + $0xd8] sm:$0xff] %v4369_v25  ;;  %v4309_v43 = vsel %vm4180_vm5, %v4106_v4, %v4245_v9  ;;  %v4111_v33 = vadd.f32 %v4110_v54, %v9551_v42  ;;  %v4112_v35 = vpop.f32.mrb[117].mxu1  ;;  %v4500_v25 = vld [vmem:[%s9499_s23 + $0x18] sm:$0xff] (%p10834_p2)  ;;  %v4502_v9 = vld [vmem:[%s9499_s23 + $0x20] sm:$0xff] (%p10834_p2)  ;;  %v4504_v54 = vld [vmem:[%s9499_s23 + $0x28] sm:$0xff] (%p10834_p2) }
 0x6fa   : > { %v4373_v34 = vadd.f32 %v4309_v43, %v10824_v29  ;;  %v4506_v43 = vld [vmem:[%s9499_s23 + $0x30] sm:$0xff] (%p10834_p2)  ;;  %v4510_v35 = vld [vmem:[%s9499_s23 + $0x40] sm:$0xff] (%p10834_p2)  ;;  %v4512_v29 = vld [vmem:[%s9499_s23 + $0x48] sm:$0xff] (%p10834_p2)  ;;  %4501 = vst [vmem:[%s9794_s17 + $0x18] sm:$0xff] (%p10834_p2), %v4500_v25 }
 0x6fb   : > { %vm4184_vm6 = vcmp.gt.f32.partialorder %v4111_v33, 0.0  ;;  %v4249_v2 = vmul.f32 %v9486_v23, %v4111_v33  ;;  %4503 = vst [vmem:[%s9794_s17 + $0x80] sm:$0xff] (%p10834_p2), %v4502_v9  ;;  %4505 = vst [vmem:[%s9794_s17 + $0x88] sm:$0xff] (%p10834_p2), %v4504_v54 }
 0x6fc   : > { %4437 = vst [vmem:[%s9499_s23 + $0xf8] sm:$0xff] %v4373_v34  ;;  %v4115_v39 = vpop.f32.mrb[118].mxu1  ;;  %v4514_v34 = vld [vmem:[%s9499_s23 + $0x50] sm:$0xff] (%p10834_p2)  ;;  %4507 = vst [vmem:[%s9794_s17 + $0x90] sm:$0xff] (%p10834_p2), %v4506_v43 }
 0x6fd   : > { %v4313_v60 = vsel %vm4184_vm6, %v4111_v33, %v4249_v2  ;;  %v4116_v32 = vadd.f32 %v4115_v39, %v9565_v0  ;;  %v4117_v41 = vpop.f32.mrb[119].mxu1  ;;  %v4508_v33 = vld [vmem:[%s9499_s23 + $0x38] sm:$0xff] (%p10834_p2)  ;;  %4511 = vst [vmem:[%s9794_s17 + $0x100] sm:$0xff] (%p10834_p2), %v4510_v35  ;;  %4513 = vst [vmem:[%s9794_s17 + $0x108] sm:$0xff] (%p10834_p2), %v4512_v29  ;;  %v4518_v39 = vld [vmem:[%s9499_s23 + $0x60] sm:$0xff] (%p10834_p2) }
 0x6fe   : > { %v4377_v16 = vadd.f32 %v4313_v60, %v10825_v21  ;;  %v4516_v2 = vld [vmem:[%s9499_s23 + $0x58] sm:$0xff] (%p10834_p2)  ;;  %4509 = vst [vmem:[%s9794_s17 + $0x98] sm:$0xff] (%p10834_p2), %v4508_v33  ;;  %4515 = vst [vmem:[%s9794_s17 + $0x110] sm:$0xff] (%p10834_p2), %v4514_v34  ;;  %v4520_v60 = vld [vmem:[%s9499_s23 + $0x68] sm:$0xff] (%p10834_p2) }
 0x6ff   : > { %vm4188_vm7 = vcmp.gt.f32.partialorder %v4116_v32, 0.0  ;;  %v4253_v1 = vmul.f32 %v9486_v23, %v4116_v32  ;;  %4517 = vst [vmem:[%s9794_s17 + $0x118] sm:$0xff] (%p10834_p2), %v4516_v2  ;;  %4519 = vst [vmem:[%s9794_s17 + $0x180] sm:$0xff] (%p10834_p2), %v4518_v39  ;;  %v4524_v41 = vld [vmem:[%s9499_s23 + $0x78] sm:$0xff] (%p10834_p2)  ;;  %v4526_v21 = vld [vmem:[%s9499_s23 + $0x80] sm:$0xff] (%p10834_p2) }
 0x700   : > { %4441 = vst [vmem:[%s9499_s23 + $0x118] sm:$0xff] %v4377_v16  ;;  %v4120_v42 = vpop.f32.mrb[120].mxu1  ;;  %4521 = vst [vmem:[%s9794_s17 + $0x188] sm:$0xff] (%p10834_p2), %v4520_v60  ;;  %v4528_v16 = vld [vmem:[%s9499_s23 + $0x88] sm:$0xff] (%p10834_p2) }
 0x701   : > { %v4317_v3 = vsel %vm4188_vm7, %v4116_v32, %v4253_v1  ;;  %v4121_v45 = vadd.f32 %v4120_v42, %v9578_v55  ;;  %v4122_v14 = vpop.f32.mrb[121].mxu1  ;;  %v4522_v32 = vld [vmem:[%s9499_s23 + $0x70] sm:$0xff] (%p10834_p2)  ;;  %4525 = vst [vmem:[%s9794_s17 + $0x198] sm:$0xff] (%p10834_p2), %v4524_v41  ;;  %4527 = vst [vmem:[%s9794_s17 + $0x200] sm:$0xff] (%p10834_p2), %v4526_v21  ;;  %v4532_v42 = vld [vmem:[%s9499_s23 + $0x98] sm:$0xff] (%p10834_p2) }
 0x702   : > { %v4381_v22 = vadd.f32 %v4317_v3, %v10826_v24  ;;  %4523 = vst [vmem:[%s9794_s17 + $0x190] sm:$0xff] (%p10834_p2), %v4522_v32  ;;  %4529 = vst [vmem:[%s9794_s17 + $0x208] sm:$0xff] (%p10834_p2), %v4528_v16  ;;  %v4530_v1 = vld [vmem:[%s9499_s23 + $0x90] sm:$0xff] (%p10834_p2)  ;;  %v4534_v3 = vld [vmem:[%s9499_s23 + $0xa0] sm:$0xff] (%p10834_p2) }
 0x703   : > { %vm4192_vm8 = vcmp.gt.f32.partialorder %v4121_v45, 0.0  ;;  %v4257_v20 = vmul.f32 %v9486_v23, %v4121_v45  ;;  %4531 = vst [vmem:[%s9794_s17 + $0x210] sm:$0xff] (%p10834_p2), %v4530_v1  ;;  %4533 = vst [vmem:[%s9794_s17 + $0x218] sm:$0xff] (%p10834_p2), %v4532_v42  ;;  %v4538_v14 = vld [vmem:[%s9499_s23 + $0xb0] sm:$0xff] (%p10834_p2)  ;;  %v4540_v24 = vld [vmem:[%s9499_s23 + $0xb8] sm:$0xff] (%p10834_p2) }
 0x704   : > { %4445 = vst [vmem:[%s9499_s23 + $0x138] sm:$0xff] %v4381_v22  ;;  %v4125_v0 = vpop.f32.mrb[122].mxu1  ;;  %4535 = vst [vmem:[%s9794_s17 + $0x280] sm:$0xff] (%p10834_p2), %v4534_v3  ;;  %v4542_v22 = vld [vmem:[%s9499_s23 + $0xc0] sm:$0xff] (%p10834_p2) }
 0x705   : > { %v4321_v7 = vsel %vm4192_vm8, %v4121_v45, %v4257_v20  ;;  %v4126_v57 = vadd.f32 %v4125_v0, %v9592_v61  ;;  %v4127_v17 = vpop.f32.mrb[123].mxu1  ;;  %v4536_v45 = vld [vmem:[%s9499_s23 + $0xa8] sm:$0xff] (%p10834_p2)  ;;  %4539 = vst [vmem:[%s9794_s17 + $0x290] sm:$0xff] (%p10834_p2), %v4538_v14  ;;  %4541 = vst [vmem:[%s9794_s17 + $0x298] sm:$0xff] (%p10834_p2), %v4540_v24  ;;  %v4546_v0 = vld [vmem:[%s9499_s23 + $0xd0] sm:$0xff] (%p10834_p2) }
 0x706   : > { %v4385_v36 = vadd.f32 %v4321_v7, %v10827_v28  ;;  %4537 = vst [vmem:[%s9794_s17 + $0x288] sm:$0xff] (%p10834_p2), %v4536_v45  ;;  %v4544_v20 = vld [vmem:[%s9499_s23 + $0xc8] sm:$0xff] (%p10834_p2)  ;;  %4543 = vst [vmem:[%s9794_s17 + $0x300] sm:$0xff] (%p10834_p2), %v4542_v22  ;;  %v4548_v7 = vld [vmem:[%s9499_s23 + $0xd8] sm:$0xff] (%p10834_p2) }
 0x707   : > { %vm4196_vm9 = vcmp.gt.f32.partialorder %v4126_v57, 0.0  ;;  %v4261_v52 = vmul.f32 %v9486_v23, %v4126_v57  ;;  %4545 = vst [vmem:[%s9794_s17 + $0x308] sm:$0xff] (%p10834_p2), %v4544_v20  ;;  %4547 = vst [vmem:[%s9794_s17 + $0x310] sm:$0xff] (%p10834_p2), %v4546_v0  ;;  %v4552_v17 = vld [vmem:[%s9499_s23 + $0xe8] sm:$0xff] (%p10834_p2)  ;;  %v4554_v28 = vld [vmem:[%s9499_s23 + $0xf0] sm:$0xff] (%p10834_p2) }
 0x708   : > { %4449 = vst [vmem:[%s9499_s23 + $0x158] sm:$0xff] %v4385_v36  ;;  %v4130_v55 = vpop.f32.mrb[124].mxu1  ;;  %4549 = vst [vmem:[%s9794_s17 + $0x318] sm:$0xff] (%p10834_p2), %v4548_v7  ;;  %v4556_v36 = vld [vmem:[%s9499_s23 + $0xf8] sm:$0xff] (%p10834_p2) }
 0x709   : > { %v4325_v56 = vsel %vm4196_vm9, %v4126_v57, %v4261_v52  ;;  %v4131_v8 = vadd.f32 %v4130_v55, %v9606_v62  ;;  %v4132_v51 = vpop.f32.mrb[125].mxu1  ;;  %v4550_v57 = vld [vmem:[%s9499_s23 + $0xe0] sm:$0xff] (%p10834_p2)  ;;  %4553 = vst [vmem:[%s9794_s17 + $0x388] sm:$0xff] (%p10834_p2), %v4552_v17  ;;  %4555 = vst [vmem:[%s9794_s17 + $0x390] sm:$0xff] (%p10834_p2), %v4554_v28  ;;  %v4560_v55 = vld [vmem:[%s9499_s23 + $0x108] sm:$0xff] (%p10834_p2) }
 0x70a   : > { %v4389_v37 = vadd.f32 %v4325_v56, %v10828_v10  ;;  %4551 = vst [vmem:[%s9794_s17 + $0x380] sm:$0xff] (%p10834_p2), %v4550_v57  ;;  %v4558_v52 = vld [vmem:[%s9499_s23 + $0x100] sm:$0xff] (%p10834_p2)  ;;  %4557 = vst [vmem:[%s9794_s17 + $0x398] sm:$0xff] (%p10834_p2), %v4556_v36  ;;  %v4562_v56 = vld [vmem:[%s9499_s23 + $0x110] sm:$0xff] (%p10834_p2) }
 0x70b   : > { %vm4200_vm10 = vcmp.gt.f32.partialorder %v4131_v8, 0.0  ;;  %v4265_v13 = vmul.f32 %v9486_v23, %v4131_v8  ;;  %4559 = vst [vmem:[%s9794_s17 + $0x400] sm:$0xff] (%p10834_p2), %v4558_v52  ;;  %4561 = vst [vmem:[%s9794_s17 + $0x408] sm:$0xff] (%p10834_p2), %v4560_v55  ;;  %v4566_v51 = vld [vmem:[%s9499_s23 + $0x120] sm:$0xff] (%p10834_p2)  ;;  %v4568_v10 = vld [vmem:[%s9499_s23 + $0x128] sm:$0xff] (%p10834_p2) }
 0x70c   : > { %4453 = vst [vmem:[%s9499_s23 + $0x178] sm:$0xff] %v4389_v37  ;;  %v4135_v61 = vpop.f32.mrb[126].mxu1  ;;  %4563 = vst [vmem:[%s9794_s17 + $0x410] sm:$0xff] (%p10834_p2), %v4562_v56  ;;  %v4570_v37 = vld [vmem:[%s9499_s23 + $0x130] sm:$0xff] (%p10834_p2) }
 0x70d   : > { %v4329_v58 = vsel %vm4200_vm10, %v4131_v8, %v4265_v13  ;;  %v4136_v40 = vadd.f32 %v4135_v61, %v9620_v47  ;;  %v4137_v26 = vpop.f32.mrb[127].mxu1  ;;  %v4564_v8 = vld [vmem:[%s9499_s23 + $0x118] sm:$0xff] (%p10834_p2)  ;;  %4567 = vst [vmem:[%s9794_s17 + $0x480] sm:$0xff] (%p10834_p2), %v4566_v51  ;;  %4569 = vst [vmem:[%s9794_s17 + $0x488] sm:$0xff] (%p10834_p2), %v4568_v10  ;;  %v4574_v61 = vld [vmem:[%s9499_s23 + $0x140] sm:$0xff] (%p10834_p2) }
 0x70e   : > { %v4393_v44 = vadd.f32 %v4329_v58, %v10829_v63  ;;  %4565 = vst [vmem:[%s9794_s17 + $0x418] sm:$0xff] (%p10834_p2), %v4564_v8  ;;  %4571 = vst [vmem:[%s9794_s17 + $0x490] sm:$0xff] (%p10834_p2), %v4570_v37  ;;  %v4572_v13 = vld [vmem:[%s9499_s23 + $0x138] sm:$0xff] (%p10834_p2)  ;;  %v4576_v58 = vld [vmem:[%s9499_s23 + $0x148] sm:$0xff] (%p10834_p2) }
 0x70f   : > { %vm4204_vm14 = vcmp.gt.f32.partialorder %v4136_v40, 0.0  ;;  %v4269_v53 = vmul.f32 %v9486_v23, %v4136_v40  ;;  %4573 = vst [vmem:[%s9794_s17 + $0x498] sm:$0xff] (%p10834_p2), %v4572_v13  ;;  %4575 = vst [vmem:[%s9794_s17 + $0x500] sm:$0xff] (%p10834_p2), %v4574_v61  ;;  %v4580_v26 = vld [vmem:[%s9499_s23 + $0x158] sm:$0xff] (%p10834_p2)  ;;  %v4582_v63 = vld [vmem:[%s9499_s23 + $0x160] sm:$0xff] (%p10834_p2) }
 0x710   : > { %4457 = vst [vmem:[%s9499_s23 + $0x198] sm:$0xff] %v4393_v44  ;;  %v4140_v62 = vpop.f32.mrb[128].mxu1  ;;  %4577 = vst [vmem:[%s9794_s17 + $0x508] sm:$0xff] (%p10834_p2), %v4576_v58  ;;  %v4584_v44 = vld [vmem:[%s9499_s23 + $0x168] sm:$0xff] (%p10834_p2) }
 0x711   : > { %v4333_v12 = vsel %vm4204_vm14, %v4136_v40, %v4269_v53  ;;  %v4141_v27 = vadd.f32 %v4140_v62, %v9634_v30  ;;  %v4142_v50 = vpop.f32.mrb[129].mxu1  ;;  %v4578_v40 = vld [vmem:[%s9499_s23 + $0x150] sm:$0xff] (%p10834_p2)  ;;  %4581 = vst [vmem:[%s9794_s17 + $0x518] sm:$0xff] (%p10834_p2), %v4580_v26  ;;  %4583 = vst [vmem:[%s9794_s17 + $0x580] sm:$0xff] (%p10834_p2), %v4582_v63 }
 0x712   : > { %v4397_v11 = vadd.f32 %v4333_v12, %v10830_v46  ;;  %4579 = vst [vmem:[%s9794_s17 + $0x510] sm:$0xff] (%p10834_p2), %v4578_v40  ;;  %v4586_v53 = vld [vmem:[%s9499_s23 + $0x170] sm:$0xff] (%p10834_p2)  ;;  %4585 = vst [vmem:[%s9794_s17 + $0x588] sm:$0xff] (%p10834_p2), %v4584_v44  ;;  %v4590_v12 = vld [vmem:[%s9499_s23 + $0x180] sm:$0xff] (%p10834_p2) }
 0x713   : > { %vm4208_vm15 = vcmp.gt.f32.partialorder %v4141_v27, 0.0  ;;  %v4273_v31 = vmul.f32 %v9486_v23, %v4141_v27  ;;  %v4588_v62 = vld [vmem:[%s9499_s23 + $0x178] sm:$0xff] (%p10834_p2)  ;;  %4587 = vst [vmem:[%s9794_s17 + $0x590] sm:$0xff] (%p10834_p2), %v4586_v53  ;;  %v4594_v50 = vld [vmem:[%s9499_s23 + $0x190] sm:$0xff] (%p10834_p2)  ;;  %4591 = vst [vmem:[%s9794_s17 + $0x600] sm:$0xff] (%p10834_p2), %v4590_v12 }
 0x714   : > { %4461 = vst [vmem:[%s9499_s23 + $0x1b8] sm:$0xff] %v4397_v11  ;;  %v4145_v47 = vpop.f32.mrb[130].mxu1  ;;  %4589 = vst [vmem:[%s9794_s17 + $0x598] sm:$0xff] (%p10834_p2), %v4588_v62  ;;  %v4598_v11 = vld [vmem:[%s9499_s23 + $0x1a0] sm:$0xff] (%p10834_p2) }
 0x715   : > { %v4337_v18 = vsel %vm4208_vm15, %v4141_v27, %v4273_v31  ;;  %v4146_v15 = vadd.f32 %v4145_v47, %v9648_v6  ;;  %v4147_v49 = vpop.f32.mrb[131].mxu1  ;;  %v4496_v6 = vld [vmem:[%s9499_s23 + $0x8] sm:$0xff] (%p10834_p2)  ;;  %4595 = vst [vmem:[%s9794_s17 + $0x610] sm:$0xff] (%p10834_p2), %v4594_v50  ;;  %4599 = vst [vmem:[%s9794_s17 + $0x680] sm:$0xff] (%p10834_p2), %v4598_v11  ;;  %v4602_v47 = vld [vmem:[%s9499_s23 + $0x1b0] sm:$0xff] (%p10834_p2) }
 0x716   : > { %v4401_v38 = vadd.f32 %v4337_v18, %v10831_v5  ;;  %4476 = sbr.rel (!%p10834_p2) target bundleno = 1829 (0x725), region = 175  ;;  %4497 = vst [vmem:[%s9794_s17 + $0x8] sm:$0xff] (%p10834_p2), %v4496_v6  ;;  %v4592_v27 = vld [vmem:[%s9499_s23 + $0x188] sm:$0xff] (%p10834_p2)  ;;  %4603 = vst [vmem:[%s9794_s17 + $0x690] sm:$0xff] (%p10834_p2), %v4602_v47  ;;  %v4610_v5 = vld [vmem:[%s9499_s23 + $0x1d0] sm:$0xff] (%p10834_p2) }
 0x717   : > { %vm4212_vm0 = vcmp.gt.f32.partialorder %v4146_v15, 0.0  ;;  %v4277_v4 = vmul.f32 %v9486_v23, %v4146_v15  ;;  %v4494_v23 = vld [vmem:[%s9499_s23] sm:$0xff] (%p10834_p2)  ;;  %4593 = vst [vmem:[%s9794_s17 + $0x608] sm:$0xff] (%p10834_p2), %v4592_v27  ;;  %v4596_v46 = vld [vmem:[%s9499_s23 + $0x198] sm:$0xff] (%p10834_p2)  ;;  %v4600_v31 = vld [vmem:[%s9499_s23 + $0x1a8] sm:$0xff] (%p10834_p2) }
 0x718   : > { %4465 = vst [vmem:[%s9499_s23 + $0x1d8] sm:$0xff] %v4401_v38  ;;  %4495 = vst [vmem:[%s9794_s17] sm:$0xff] (%p10834_p2), %v4494_v23  ;;  %v4608_v49 = vld [vmem:[%s9499_s23 + $0x1c8] sm:$0xff] (%p10834_p2) }
 0x719   : > { %v4341_v30 = vsel %vm4212_vm0, %v4146_v15, %v4277_v4  ;;  %4597 = vst [vmem:[%s9794_s17 + $0x618] sm:$0xff] (%p10834_p2), %v4596_v46  ;;  %4601 = vst [vmem:[%s9794_s17 + $0x688] sm:$0xff] (%p10834_p2), %v4600_v31  ;;  %v4606_v15 = vld [vmem:[%s9499_s23 + $0x1c0] sm:$0xff] (%p10834_p2) }
 0x71a   : > { %v4405_v19 = vadd.f32 %v4341_v30, %v10832_v59  ;;  %4607 = vst [vmem:[%s9794_s17 + $0x700] sm:$0xff] (%p10834_p2), %v4606_v15  ;;  %4609 = vst [vmem:[%s9794_s17 + $0x708] sm:$0xff] (%p10834_p2), %v4608_v49  ;;  %v4614_v4 = vld [vmem:[%s9499_s23 + $0x1e0] sm:$0xff] (%p10834_p2)  ;;  %v4616_v30 = vld [vmem:[%s9499_s23 + $0x1e8] sm:$0xff] (%p10834_p2) }
 0x71b   : > { %v4604_v18 = vld [vmem:[%s9499_s23 + $0x1b8] sm:$0xff] (%p10834_p2)  ;;  %4611 = vst [vmem:[%s9794_s17 + $0x710] sm:$0xff] (%p10834_p2), %v4610_v5  ;;  %v4618_v59 = vld [vmem:[%s9499_s23 + $0x1f0] sm:$0xff] (%p10834_p2)  ;;  %4615 = vst [vmem:[%s9794_s17 + $0x780] sm:$0xff] (%p10834_p2), %v4614_v4 }
 0x71c   : > { %4469 = vst [vmem:[%s9499_s23 + $0x1f8] sm:$0xff] %v4405_v19  ;;  %4605 = vst [vmem:[%s9794_s17 + $0x698] sm:$0xff] (%p10834_p2), %v4604_v18 }
 0x71d   : > { %4617 = vst [vmem:[%s9794_s17 + $0x788] sm:$0xff] %v4616_v30  ;;  %4619 = vst [vmem:[%s9794_s17 + $0x790] sm:$0xff] %v4618_v59 }
 0x71f   : > { %v4612_v38 = vld [vmem:[%s9499_s23 + $0x1d8] sm:$0xff] }
 0x720   : > { %4613 = vst [vmem:[%s9794_s17 + $0x718] sm:$0xff] %v4612_v38 }
 0x723   : > { %v4620_v19 = vld [vmem:[%s9499_s23 + $0x1f8] sm:$0xff] }
 0x724   : > { %4621 = vst [vmem:[%s9794_s17 + $0x798] sm:$0xff] %v4620_v19 }
 0x725 PF: > { %s23_s13 = sadd.s32 1, %s5968_s13   ;;  %s10838_s28 = sld [smem:[#allocation17_spill]] }
 0x726   : > { %p20_p4 = scmp.ge.s32.totalorder %s23_s13, 10   ;;  %s10839_s12 = sld [smem:[#allocation14_spill]] }
 0x727   : > { %s10840_s10 = sld [smem:[#allocation15_spill]]  ;;  %s10841_s27 = sld [smem:[#allocation11_spill]] }
 0x728   : > { %s10842_s29 = sld [smem:[#allocation12_spill]]  ;;  %s10843_s14 = sld [smem:[#allocation13_spill]] }
 0x729   : > { %s10844_s21 = smov %s5932_s22  ;;  %s10846_s23 = smov %s5940_s24 }
 0x72a   : > { %s10848_s25 = smov %s5948_s26  ;;  %22 = sbr.rel (!%p20_p4) target bundleno = 15 (0xf), region = 246 }
 0x72b   : > { %s10845_s22 = smov %s10838_s28  ;;  %s10850_s28 = smov %s5964_s30 }
 0x72c   : > { %s10847_s24 = smov %s10839_s12 }
 0x72d   : > { %s10849_s26 = smov %s10840_s10 }
 0x72e   : > { %s10851_s30 = smov %s10843_s14 }
 0x731   :  { %4637 = vsyncpa [#allocation6], 1 }
 0x732   :  { %4639 = vsyncpa [#allocation6 + $0x1], 1 }

</bundles_post_ra>
